<compile_context>
chip_gen: v7x
topology: tpu7x:2x2x1
jax: 0.10.0
libtpu: 0.0.40
codegen_flags: <defaults>
</compile_context>

<pallas_src>
import math
import numpy as np
import jax
import jax.numpy as jnp
from jax.experimental import pallas as pl
from jax.experimental.pallas import tpu as pltpu

EPS = 1e-5  # BatchNorm1d eps

# ---------------- small config (scaled down, structurally faithful) ----------------
BATCH = 2
IN_CHANNELS = 8
PATCH = 8
WIDTH = 128
SEQ_LEN = 112                                    # 14 patches
NUM_HEADS = 4
NUM_LAYERS = 2
PROJECTION = 256
NUM_CLASSES = 16
NUM_CLASS_TOKENS = 2
NUM_PATCHES = SEQ_LEN // PATCH                   # Conv1d(stride=patch, padding=0)
NUM_TOKENS = NUM_PATCHES + NUM_CLASS_TOKENS      # 16 tokens (8-aligned)
PK = PATCH * IN_CHANNELS                         # flattened patch features
BT = BATCH * NUM_TOKENS                          # 32 folded token rows
TP = NUM_TOKENS - 1                              # tokens used by the contrastive path


# ------------------------------ fused forward kernel --------------------------------
def _make_forward_kernel(B, T, C, H, L):
    hd = C // H
    bf16 = jnp.bfloat16
    BTtok = B * T

    def kernel(xp_ref, vid_ref, ls_ref,
               convw_ref, table_ref, mask_ref,
               ln1_ref, wqkv_ref, bqkv_ref, wo_ref, bo_ref,
               ln2_ref, wfc_ref, bfc_ref, wpr_ref, bpr_ref,
               lnp_ref, projw_ref, projb_ref, headw_ref, headb_ref,
               x_out_ref, sup_out_ref, li_ref, lv_ref):
        # ---------------- encoder: both batch elements folded into the token axis ----------
        # Conv1d patchify (prenorm folded into convw / add_table): (B*T, PK) @ (PK, C).
        # The two leading (cls/reg) rows per batch are zero in xp, so adding the table
        # reproduces [cls, reg, patches] + pos with no in-kernel concat.
        x2 = jnp.dot(xp_ref[...].astype(bf16), convw_ref[...],
                     preferred_element_type=jnp.float32) + table_ref[...]
        mask = mask_ref[...]          # block-diagonal additive mask (-1e30 off-block)

        for l in range(L):            # static unroll over layers
            # ---- attention branch: ln_1 (folded eval BatchNorm) -> MHA -> (+residual) ----
            h1 = x2 * ln1_ref[l, 0:1, :] + ln1_ref[l, 1:2, :]
            qkv = jnp.dot(h1.astype(bf16), wqkv_ref[l],
                          preferred_element_type=jnp.float32) + bqkv_ref[l]
            attn = jnp.zeros((BTtok, C), jnp.float32)
            for h in range(H):        # static unroll; heads accumulate into wo rows (no concat)
                lo = h * hd
                qh = qkv[:, lo:lo + hd].astype(bf16)           # hd^-0.5 pre-folded into wqkv
                kh = qkv[:, C + lo:C + lo + hd].astype(bf16)
                vh = qkv[:, 2 * C + lo:2 * C + lo + hd].astype(bf16)
                s = jax.lax.dot_general(qh, kh, (((1,), (1,)), ((), ())),
                                        preferred_element_type=jnp.float32) + mask
                s = s - jnp.max(s, axis=-1, keepdims=True)
                e = jnp.exp(s)
                p = e * pl.reciprocal(jnp.sum(e, axis=-1, keepdims=True), approx=True)
                oh = jnp.dot(p.astype(bf16), vh, preferred_element_type=jnp.float32)
                attn = attn + jnp.dot(oh.astype(bf16), wo_ref[l, lo:lo + hd, :],
                                      preferred_element_type=jnp.float32)
            x2 = x2 + attn + bo_ref[l]                         # dropout1 = identity (eval)

            # ---- MLP branch: ln_2 -> c_fc -> QuickGELU -> c_proj -> (+residual) ----
            h2 = x2 * ln2_ref[l, 0:1, :] + ln2_ref[l, 1:2, :]
            m1 = jnp.dot(h2.astype(bf16), wfc_ref[l],
                         preferred_element_type=jnp.float32) + bfc_ref[l]
            m1 = m1 * jax.nn.sigmoid(1.702 * m1)               # QuickGELU (f32)
            m2 = jnp.dot(m1.astype(bf16), wpr_ref[l],
                         preferred_element_type=jnp.float32) + bpr_ref[l]
            x2 = x2 + m2                                       # dropout2 = identity (eval)

        # ---- ln_post + projection ----
        x2 = x2 * lnp_ref[0:1, :] + lnp_ref[1:2, :]
        proj = jnp.dot(x2.astype(bf16), projw_ref[...],
                       preferred_element_type=jnp.float32) + projb_ref[...]   # (B*T, P)
        for b in range(B):
            x_out_ref[b] = proj[b * T:(b + 1) * T, :]          # aligned 16-row slices

        # ---- supervised class head (computed on all rows, trivial; CLS rows stored) ----
        sup = jnp.dot(proj.astype(bf16), headw_ref[...],
                      preferred_element_type=jnp.float32) + headb_ref[...]    # (B*T, NC)
        for b in range(B):
            sup_out_ref[b:b + 1, :] = sup[b * T:b * T + 1, :]

        # ---------------- contrastive logits on tokens 1..T-1 (VPU dot products) ----------
        scale = ls_ref[0, 0]                                   # exp(logit_scale), SMEM scalar
        its, vts, inv_i, inv_v, ssum_i, ssum_v = [], [], [], [], [], []
        for b in range(B):
            it_b = proj[b * T + 1:(b + 1) * T, :]              # (T-1, P), still in registers
            vt_b = vid_ref[b, 1:, :]                           # (T-1, P)
            its.append(it_b)
            vts.append(vt_b)
            sq_i = jnp.sum(it_b * it_b, axis=1, keepdims=True)  # (T-1, 1)
            sq_v = jnp.sum(vt_b * vt_b, axis=1, keepdims=True)
            inv_i.append(jax.lax.rsqrt(sq_i))
            inv_v.append(jax.lax.rsqrt(sq_v))
            ssum_i.append(jnp.sum(sq_i, axis=0, keepdims=True))  # (1,1) flattened sq-norm
            ssum_v.append(jnp.sum(sq_v, axis=0, keepdims=True))

        cols = {}
        for b in range(B):
            for u in range(B):
                raw = jnp.sum(its[b] * vts[u], axis=1, keepdims=True)   # (T-1,1) per-t dots
                seq = raw * inv_i[b] * inv_v[u]                         # sequence-wise cosine
                # flattened cosine reuses the raw per-t dots: numerator = sum_t raw
                flat = (jnp.sum(raw, axis=0, keepdims=True)
                        * jax.lax.rsqrt(ssum_i[b]) * jax.lax.rsqrt(ssum_v[u]))
                cols[(b, u)] = jnp.concatenate([seq, flat], axis=0)     # (T, 1)

        # columns ordered so a free row-major reshape gives (T, B, B):
        #   li[t, b, u]  and  lv[t, u, b] = li[t, b, u]  (logits_per_video transpose)
        li = jnp.concatenate([cols[(b, u)] for b in range(B) for u in range(B)], axis=1)
        lv = jnp.concatenate([cols[(b, u)] for u in range(B) for b in range(B)], axis=1)
        li_ref[...] = scale * li
        lv_ref[...] = scale * lv

    return kernel


def fused_forward_call(enc, xp_full, video_class, ls_exp):
    """Single pallas_call: encoder + class head + both cosine-logit paths."""
    B = BATCH
    weight_order = ["conv_w", "add_table", "attn_mask",
                    "ln1", "wqkv", "bqkv", "wo", "bo",
                    "ln2", "wfc", "bfc", "wpr", "bpr",
                    "ln_post", "proj_w", "proj_b", "head_w", "head_b"]
    weights = [enc[k] for k in weight_order]

    vmem = pl.BlockSpec(memory_space=pltpu.MemorySpace.VMEM)
    smem = pl.BlockSpec(memory_space=pltpu.MemorySpace.SMEM)

    # No grid: single invocation, everything (weights < 1 MiB) resident in VMEM.
    # (Per-batch grid + CORE_PARALLEL is moot once the batch is folded into tokens.)
    # TODO(synk): at production sizes (width=256, layers=8) the per-layer weights should
    # be streamed over an "arbitrary" layer grid axis instead of being fully resident.
    return pl.pallas_call(
        _make_forward_kernel(B, NUM_TOKENS, WIDTH, NUM_HEADS, NUM_LAYERS),
        in_specs=[vmem, vmem, smem] + [vmem] * len(weights),
        out_specs=(vmem, vmem, vmem, vmem),
        out_shape=(jax.ShapeDtypeStruct((B, NUM_TOKENS, PROJECTION), jnp.float32),
                   jax.ShapeDtypeStruct((B, NUM_CLASSES), jnp.float32),
                   jax.ShapeDtypeStruct((TP + 1, B * B), jnp.float32),
                   jax.ShapeDtypeStruct((TP + 1, B * B), jnp.float32)),
    )(xp_full, video_class, ls_exp, *weights)


# --------------------------------- parameters ---------------------------------------
def sinusoidal_pos_embedding(sequence_length, d_model):
    f = np.zeros((sequence_length, d_model), dtype=np.float32)
    for pos in range(sequence_length):
        for i in range(0, d_model, 2):
            div_term = math.pow(10000, 2 * i / d_model)
            f[pos, i] = math.sin(pos / div_term)
            if i + 1 < d_model:
                f[pos, i + 1] = math.cos(pos / div_term)
    return jnp.asarray(f)


def init_params(key):
    keys = iter(jax.random.split(key, 64))
    bf16 = jnp.bfloat16
    C = WIDTH
    hd = C // NUM_HEADS
    att_scale = hd ** -0.5

    def w(shape, scale=0.02):
        return (scale * jax.random.normal(next(keys), shape)).astype(jnp.float32)

    def bn_fold(c):
        # eval-mode BatchNorm1d with default buffers, pre-folded to (scale, shift)
        gamma, beta = jnp.ones((c,)), jnp.zeros((c,))
        mean, var = jnp.zeros((c,)), jnp.ones((c,))
        s = gamma * jax.lax.rsqrt(var + EPS)
        return jnp.stack([s, beta - mean * s]).astype(jnp.float32)      # (2, c)

    # Conv1d weight (O, Cin, K) -> flattened (K*Cin, O); eval-mode prenorm affine folded in
    conv_w = w((WIDTH, IN_CHANNELS, PATCH))
    conv_w_flat = conv_w.transpose(2, 1, 0).reshape(PK, WIDTH)
    pre = bn_fold(IN_CHANNELS)
    s_t = jnp.tile(pre[0], PATCH)                 # scale per flattened (k, c) feature
    t_t = jnp.tile(pre[1], PATCH)
    conv_w_folded = (conv_w_flat * s_t[:, None]).astype(bf16)
    conv_b = jnp.dot(t_t, conv_w_flat)            # (WIDTH,) bias induced by the prenorm shift

    cls_token = w((1, WIDTH), 1.0)
    reg_token = w((NUM_CLASS_TOKENS - 1, WIDTH), 1.0)
    pos = sinusoidal_pos_embedding(NUM_TOKENS, WIDTH)
    tok_prefix = jnp.concatenate([cls_token, reg_token], axis=0) + pos[:NUM_CLASS_TOKENS]
    # single additive table: rows 0..1 = cls/reg(+pos), rows 2.. = pos + conv bias;
    # tiled over the folded batch so the kernel needs no token concat at all.
    table_one = jnp.concatenate([tok_prefix, pos[NUM_CLASS_TOKENS:] + conv_b[None, :]], axis=0)
    add_table = jnp.tile(table_one, (BATCH, 1)).astype(jnp.float32)     # (B*T, C)

    # block-diagonal additive attention mask: folded batch elements stay independent
    bid = np.arange(BT) // NUM_TOKENS
    attn_mask = jnp.asarray(np.where(bid[:, None] == bid[None, :], 0.0, -1e30), jnp.float32)

    # attention scale hd^-0.5 folded into the q columns of the in-projection (and q bias)
    qkv_scale = jnp.concatenate([jnp.full((C,), att_scale),
                                 jnp.ones((2 * C,))]).astype(jnp.float32)

    def make_wqkv():
        return w((3 * C, C)).T * qkv_scale[None, :]

    def stack(fn):
        return jnp.stack([fn() for _ in range(NUM_LAYERS)])

    enc = dict(
        conv_w=conv_w_folded,
        add_table=add_table,
        attn_mask=attn_mask,
        ln1=jnp.stack([bn_fold(C) for _ in range(NUM_LAYERS)]),
        wqkv=stack(make_wqkv).astype(bf16),
        bqkv=jnp.zeros((NUM_LAYERS, 1, 3 * C), jnp.float32),   # zeros; q-part scaling is a no-op
        wo=stack(lambda: w((C, C)).T).astype(bf16),
        bo=jnp.zeros((NUM_LAYERS, 1, C), jnp.float32),
        ln2=jnp.stack([bn_fold(C) for _ in range(NUM_LAYERS)]),
        wfc=stack(lambda: w((4 * C, C)).T).astype(bf16),
        bfc=jnp.zeros((NUM_LAYERS, 1, 4 * C), jnp.float32),
        wpr=stack(lambda: w((C, 4 * C)).T).astype(bf16),
        bpr=jnp.zeros((NUM_LAYERS, 1, C), jnp.float32),
        ln_post=bn_fold(WIDTH),
        proj_w=w((PROJECTION, WIDTH)).T.astype(bf16),
        proj_b=jnp.zeros((1, PROJECTION), jnp.float32),
        head_w=w((NUM_CLASSES, PROJECTION)).T.astype(bf16),
        head_b=jnp.zeros((1, NUM_CLASSES), jnp.float32),
    )
    return dict(enc0=enc, logit_scale=jnp.array([[math.log(1.0 / 0.07)]], jnp.float32))


# --------------------------------- forward pass -------------------------------------
def perceiving_contrastive_forward(params, imu, video_class, video_perceiver,
                                   virtual_batch_size=256, sequence_wise=True):
    enc = params["enc0"]
    B = imu.shape[0]
    if not sequence_wise:
        # TODO(synk): the reference's sequence_wise=False path calls tensor.t() on a 3-D
        # tensor (invalid in PyTorch); only the valid sequence_wise=True path is built.
        raise NotImplementedError("sequence_wise=False path is ill-defined in the reference")
    vbs = B if virtual_batch_size == -1 else virtual_batch_size
    if vbs < B:
        # TODO(synk): multiple virtual batches would need one logits pass per chunk.
        raise NotImplementedError("virtual_batch_size < batch not supported by the fused kernel")

    # Host-side input prep only: patchify + pad two leading (cls/reg) zero rows per batch
    # and fold the batch into the token axis (pure layout plumbing, exact).
    xp = imu[:, :NUM_PATCHES * PATCH, :].reshape(B, NUM_PATCHES, PK)
    xp_full = jnp.concatenate(
        [jnp.zeros((B, NUM_CLASS_TOKENS, PK), imu.dtype), xp], axis=1
    ).reshape(B * NUM_TOKENS, PK)
    ls_exp = jnp.exp(params["logit_scale"]).reshape(1, 1)

    # ONE fused pallas_call: encoder, class head, sequence-wise + flattened cosine logits.
    x_proj, sup, li_flat, lv_flat = fused_forward_call(enc, xp_full, video_class, ls_exp)

    imu_features = [x_proj]
    video_features = video_class
    imu_features_perceiver = None                      # perceiver branch is `if False` in reference
    video_features_perceiver = video_perceiver

    supervised_pred = jnp.vstack([sup])                # class head on CLS token (1 encoder)
    discriminator_pred = None

    processed_imu_features = imu_features[0][:, 1:65, :]
    video_features = video_features[:, 1:65, :]

    # compute_logits (use_perceiver=False), single virtual batch, sequence_wise=True.
    # The (T'+1, B*B) -> (T'+1, B, B) reshape of the contiguous kernel output is a free bitcast.
    logits_per_imu = [li_flat.reshape(TP + 1, B, B)]
    logits_per_video = [lv_flat.reshape(TP + 1, B, B)]

    # NOTE: as in the reference, these slices apply to the ALREADY re-sliced video_features.
    video_sequence = video_features[:, 1:257, :]
    video_features = video_features[:, 0, :]

    return (logits_per_imu, logits_per_video,
            (supervised_pred, discriminator_pred),
            (imu_features[0][:, 0, :], imu_features_perceiver, processed_imu_features),
            (video_features, video_features_perceiver, video_sequence))


# ------------------------------------- main -----------------------------------------
if __name__ == "__main__":
    key = jax.random.PRNGKey(0)
    pkey, ikey, vkey, wkey = jax.random.split(key, 4)
    params = init_params(pkey)

    imu = jax.random.normal(ikey, (BATCH, SEQ_LEN, IN_CHANNELS), jnp.float32)
    video_class = jax.random.normal(vkey, (BATCH, NUM_TOKENS, PROJECTION), jnp.float32)
    video_perceiver = jax.random.normal(wkey, (BATCH, PROJECTION), jnp.float32)

    out = perceiving_contrastive_forward(params, imu, video_class, video_perceiver)
    out = jax.block_until_ready(out)

    assert out[0][0].shape == (TP + 1, BATCH, BATCH)
    assert out[1][0].shape == (TP + 1, BATCH, BATCH)
    assert out[2][0].shape == (BATCH, NUM_CLASSES)
    assert out[3][0].shape == (BATCH, PROJECTION)
    assert out[3][2].shape == (BATCH, TP, PROJECTION)
    assert out[4][0].shape == (BATCH, PROJECTION)
    assert bool(jnp.all(jnp.isfinite(out[0][0])))
    assert bool(jnp.all(jnp.isfinite(out[1][0])))
    assert bool(jnp.all(jnp.isfinite(out[2][0])))
    print("KERNEL_OK")
</pallas_src>

<mosaic_0001>
module attributes {stable_mosaic.version = 11 : i64} {
  func.func @kernel(%arg0: memref<32x64xf32, #tpu.memory_space<vmem>>, %arg1: memref<2x16x256xf32, #tpu.memory_space<vmem>>, %arg2: memref<1x1xf32, #tpu.memory_space<smem>>, %arg3: memref<64x128xbf16, #tpu.memory_space<vmem>>, %arg4: memref<32x128xf32, #tpu.memory_space<vmem>>, %arg5: memref<32x32xf32, #tpu.memory_space<vmem>>, %arg6: memref<2x2x128xf32, #tpu.memory_space<vmem>>, %arg7: memref<2x128x384xbf16, #tpu.memory_space<vmem>>, %arg8: memref<2x1x384xf32, #tpu.memory_space<vmem>>, %arg9: memref<2x128x128xbf16, #tpu.memory_space<vmem>>, %arg10: memref<2x1x128xf32, #tpu.memory_space<vmem>>, %arg11: memref<2x2x128xf32, #tpu.memory_space<vmem>>, %arg12: memref<2x128x512xbf16, #tpu.memory_space<vmem>>, %arg13: memref<2x1x512xf32, #tpu.memory_space<vmem>>, %arg14: memref<2x512x128xbf16, #tpu.memory_space<vmem>>, %arg15: memref<2x1x128xf32, #tpu.memory_space<vmem>>, %arg16: memref<2x128xf32, #tpu.memory_space<vmem>>, %arg17: memref<128x256xbf16, #tpu.memory_space<vmem>>, %arg18: memref<1x256xf32, #tpu.memory_space<vmem>>, %arg19: memref<256x16xbf16, #tpu.memory_space<vmem>>, %arg20: memref<1x16xf32, #tpu.memory_space<vmem>>, %arg21: memref<2x16x256xf32, #tpu.memory_space<vmem>>, %arg22: memref<2x16xf32, #tpu.memory_space<vmem>>, %arg23: memref<16x4xf32, #tpu.memory_space<vmem>>, %arg24: memref<16x4xf32, #tpu.memory_space<vmem>>) attributes {dimension_semantics = [], scalar_prefetch = 0 : i64, scratch_operands = 0 : i64, tpu.core_type = #tpu.core_type<tc>} {
    %c0 = arith.constant 0 : index
    %c0_0 = arith.constant 0 : index
    %0 = vector.load %arg0[%c0, %c0_0] : memref<32x64xf32, #tpu.memory_space<vmem>>, vector<32x64xf32>
    %1 = arith.truncf %0 : vector<32x64xf32> to vector<32x64xbf16>
    %c0_1 = arith.constant 0 : index
    %c0_2 = arith.constant 0 : index
    %2 = vector.load %arg3[%c0_1, %c0_2] : memref<64x128xbf16, #tpu.memory_space<vmem>>, vector<64x128xbf16>
    %cst = arith.constant dense<0.000000e+00> : vector<32x128xf32>
    %3 = tpu.matmul %1, %2, %cst {dimension_numbers = #tpu.dot_dimension_numbers<[1], [0], [0], [1], [0, 0, 1, 1], [], []>} : vector<32x64xbf16>, vector<64x128xbf16>, vector<32x128xf32> -> vector<32x128xf32>
    %c0_3 = arith.constant 0 : index
    %c0_4 = arith.constant 0 : index
    %4 = vector.load %arg4[%c0_3, %c0_4] : memref<32x128xf32, #tpu.memory_space<vmem>>, vector<32x128xf32>
    %5 = arith.addf %3, %4 : vector<32x128xf32>
    %c0_5 = arith.constant 0 : index
    %c0_6 = arith.constant 0 : index
    %6 = vector.load %arg5[%c0_5, %c0_6] : memref<32x32xf32, #tpu.memory_space<vmem>>, vector<32x32xf32>
    %c0_7 = arith.constant 0 : index
    %c0_8 = arith.constant 0 : index
    %c0_9 = arith.constant 0 : index
    %7 = vector.load %arg6[%c0_7, %c0_8, %c0_9] : memref<2x2x128xf32, #tpu.memory_space<vmem>>, vector<1x1x128xf32>
    %8 = vector.shape_cast %7 : vector<1x1x128xf32> to vector<1x128xf32>
    %9 = vector.broadcast %8 : vector<1x128xf32> to vector<32x128xf32>
    %10 = arith.mulf %5, %9 : vector<32x128xf32>
    %c0_10 = arith.constant 0 : index
    %c1 = arith.constant 1 : index
    %c0_11 = arith.constant 0 : index
    %11 = vector.load %arg6[%c0_10, %c1, %c0_11] : memref<2x2x128xf32, #tpu.memory_space<vmem>>, vector<1x1x128xf32>
    %12 = vector.shape_cast %11 : vector<1x1x128xf32> to vector<1x128xf32>
    %13 = vector.broadcast %12 : vector<1x128xf32> to vector<32x128xf32>
    %14 = arith.addf %10, %13 : vector<32x128xf32>
    %15 = arith.truncf %14 : vector<32x128xf32> to vector<32x128xbf16>
    %c0_12 = arith.constant 0 : index
    %c0_13 = arith.constant 0 : index
    %c0_14 = arith.constant 0 : index
    %16 = vector.load %arg7[%c0_12, %c0_13, %c0_14] : memref<2x128x384xbf16, #tpu.memory_space<vmem>>, vector<1x128x384xbf16>
    %17 = vector.shape_cast %16 : vector<1x128x384xbf16> to vector<128x384xbf16>
    %cst_15 = arith.constant dense<0.000000e+00> : vector<32x384xf32>
    %18 = tpu.matmul %15, %17, %cst_15 {dimension_numbers = #tpu.dot_dimension_numbers<[1], [0], [0], [1], [0, 0, 1, 1], [], []>} : vector<32x128xbf16>, vector<128x384xbf16>, vector<32x384xf32> -> vector<32x384xf32>
    %c0_16 = arith.constant 0 : index
    %c0_17 = arith.constant 0 : index
    %c0_18 = arith.constant 0 : index
    %19 = vector.load %arg8[%c0_16, %c0_17, %c0_18] : memref<2x1x384xf32, #tpu.memory_space<vmem>>, vector<1x1x384xf32>
    %20 = vector.shape_cast %19 : vector<1x1x384xf32> to vector<1x384xf32>
    %21 = vector.broadcast %20 : vector<1x384xf32> to vector<32x384xf32>
    %22 = arith.addf %18, %21 : vector<32x384xf32>
    %cst_19 = arith.constant 0.000000e+00 : f32
    %23 = vector.broadcast %cst_19 : f32 to vector<32x128xf32>
    %24 = vector.extract_strided_slice %22 {offsets = [0, 0], sizes = [32, 32], strides = [1, 1]} : vector<32x384xf32> to vector<32x32xf32>
    %25 = arith.truncf %24 : vector<32x32xf32> to vector<32x32xbf16>
    %26 = vector.extract_strided_slice %22 {offsets = [0, 128], sizes = [32, 32], strides = [1, 1]} : vector<32x384xf32> to vector<32x32xf32>
    %27 = arith.truncf %26 : vector<32x32xf32> to vector<32x32xbf16>
    %28 = vector.extract_strided_slice %22 {offsets = [0, 256], sizes = [32, 32], strides = [1, 1]} : vector<32x384xf32> to vector<32x32xf32>
    %29 = arith.truncf %28 : vector<32x32xf32> to vector<32x32xbf16>
    %cst_20 = arith.constant dense<0.000000e+00> : vector<32x32xf32>
    %30 = tpu.matmul %25, %27, %cst_20 {dimension_numbers = #tpu.dot_dimension_numbers<[1], [1], [0], [0], [0, 0, 1, 0], [], []>} : vector<32x32xbf16>, vector<32x32xbf16>, vector<32x32xf32> -> vector<32x32xf32>
    %31 = arith.addf %30, %6 : vector<32x32xf32>
    %cst_21 = arith.constant dense<0xFF800000> : vector<32xf32>
    %32 = vector.multi_reduction <maximumf>, %31, %cst_21 [1] : vector<32x32xf32> to vector<32xf32>
    %33 = vector.shape_cast %32 : vector<32xf32> to vector<32x1xf32>
    %34 = vector.broadcast %33 : vector<32x1xf32> to vector<32x32xf32>
    %35 = arith.subf %31, %34 : vector<32x32xf32>
    %36 = math.exp %35 : vector<32x32xf32>
    %cst_22 = arith.constant dense<0.000000e+00> : vector<32xf32>
    %37 = vector.multi_reduction <add>, %36, %cst_22 [1] : vector<32x32xf32> to vector<32xf32>
    %38 = vector.shape_cast %37 : vector<32xf32> to vector<32x1xf32>
    %39 = tpu.reciprocal %38 {approx = true} : vector<32x1xf32> -> vector<32x1xf32>
    %40 = vector.broadcast %39 : vector<32x1xf32> to vector<32x32xf32>
    %41 = arith.mulf %36, %40 : vector<32x32xf32>
    %42 = arith.truncf %41 : vector<32x32xf32> to vector<32x32xbf16>
    %cst_23 = arith.constant dense<0.000000e+00> : vector<32x32xf32>
    %43 = tpu.matmul %42, %29, %cst_23 {dimension_numbers = #tpu.dot_dimension_numbers<[1], [0], [0], [1], [0, 0, 1, 1], [], []>} : vector<32x32xbf16>, vector<32x32xbf16>, vector<32x32xf32> -> vector<32x32xf32>
    %44 = arith.truncf %43 : vector<32x32xf32> to vector<32x32xbf16>
    %c0_24 = arith.constant 0 : index
    %c0_25 = arith.constant 0 : index
    %c0_26 = arith.constant 0 : index
    %45 = vector.load %arg9[%c0_24, %c0_25, %c0_26] : memref<2x128x128xbf16, #tpu.memory_space<vmem>>, vector<1x32x128xbf16>
    %46 = vector.shape_cast %45 : vector<1x32x128xbf16> to vector<32x128xbf16>
    %cst_27 = arith.constant dense<0.000000e+00> : vector<32x128xf32>
    %47 = tpu.matmul %44, %46, %cst_27 {dimension_numbers = #tpu.dot_dimension_numbers<[1], [0], [0], [1], [0, 0, 1, 1], [], []>} : vector<32x32xbf16>, vector<32x128xbf16>, vector<32x128xf32> -> vector<32x128xf32>
    %48 = arith.addf %23, %47 : vector<32x128xf32>
    %49 = vector.extract_strided_slice %22 {offsets = [0, 32], sizes = [32, 32], strides = [1, 1]} : vector<32x384xf32> to vector<32x32xf32>
    %50 = arith.truncf %49 : vector<32x32xf32> to vector<32x32xbf16>
    %51 = vector.extract_strided_slice %22 {offsets = [0, 160], sizes = [32, 32], strides = [1, 1]} : vector<32x384xf32> to vector<32x32xf32>
    %52 = arith.truncf %51 : vector<32x32xf32> to vector<32x32xbf16>
    %53 = vector.extract_strided_slice %22 {offsets = [0, 288], sizes = [32, 32], strides = [1, 1]} : vector<32x384xf32> to vector<32x32xf32>
    %54 = arith.truncf %53 : vector<32x32xf32> to vector<32x32xbf16>
    %cst_28 = arith.constant dense<0.000000e+00> : vector<32x32xf32>
    %55 = tpu.matmul %50, %52, %cst_28 {dimension_numbers = #tpu.dot_dimension_numbers<[1], [1], [0], [0], [0, 0, 1, 0], [], []>} : vector<32x32xbf16>, vector<32x32xbf16>, vector<32x32xf32> -> vector<32x32xf32>
    %56 = arith.addf %55, %6 : vector<32x32xf32>
    %cst_29 = arith.constant dense<0xFF800000> : vector<32xf32>
    %57 = vector.multi_reduction <maximumf>, %56, %cst_29 [1] : vector<32x32xf32> to vector<32xf32>
    %58 = vector.shape_cast %57 : vector<32xf32> to vector<32x1xf32>
    %59 = vector.broadcast %58 : vector<32x1xf32> to vector<32x32xf32>
    %60 = arith.subf %56, %59 : vector<32x32xf32>
    %61 = math.exp %60 : vector<32x32xf32>
    %cst_30 = arith.constant dense<0.000000e+00> : vector<32xf32>
    %62 = vector.multi_reduction <add>, %61, %cst_30 [1] : vector<32x32xf32> to vector<32xf32>
    %63 = vector.shape_cast %62 : vector<32xf32> to vector<32x1xf32>
    %64 = tpu.reciprocal %63 {approx = true} : vector<32x1xf32> -> vector<32x1xf32>
    %65 = vector.broadcast %64 : vector<32x1xf32> to vector<32x32xf32>
    %66 = arith.mulf %61, %65 : vector<32x32xf32>
    %67 = arith.truncf %66 : vector<32x32xf32> to vector<32x32xbf16>
    %cst_31 = arith.constant dense<0.000000e+00> : vector<32x32xf32>
    %68 = tpu.matmul %67, %54, %cst_31 {dimension_numbers = #tpu.dot_dimension_numbers<[1], [0], [0], [1], [0, 0, 1, 1], [], []>} : vector<32x32xbf16>, vector<32x32xbf16>, vector<32x32xf32> -> vector<32x32xf32>
    %69 = arith.truncf %68 : vector<32x32xf32> to vector<32x32xbf16>
    %c0_32 = arith.constant 0 : index
    %c32 = arith.constant 32 : index
    %c0_33 = arith.constant 0 : index
    %70 = vector.load %arg9[%c0_32, %c32, %c0_33] : memref<2x128x128xbf16, #tpu.memory_space<vmem>>, vector<1x32x128xbf16>
    %71 = vector.shape_cast %70 : vector<1x32x128xbf16> to vector<32x128xbf16>
    %cst_34 = arith.constant dense<0.000000e+00> : vector<32x128xf32>
    %72 = tpu.matmul %69, %71, %cst_34 {dimension_numbers = #tpu.dot_dimension_numbers<[1], [0], [0], [1], [0, 0, 1, 1], [], []>} : vector<32x32xbf16>, vector<32x128xbf16>, vector<32x128xf32> -> vector<32x128xf32>
    %73 = arith.addf %48, %72 : vector<32x128xf32>
    %74 = vector.extract_strided_slice %22 {offsets = [0, 64], sizes = [32, 32], strides = [1, 1]} : vector<32x384xf32> to vector<32x32xf32>
    %75 = arith.truncf %74 : vector<32x32xf32> to vector<32x32xbf16>
    %76 = vector.extract_strided_slice %22 {offsets = [0, 192], sizes = [32, 32], strides = [1, 1]} : vector<32x384xf32> to vector<32x32xf32>
    %77 = arith.truncf %76 : vector<32x32xf32> to vector<32x32xbf16>
    %78 = vector.extract_strided_slice %22 {offsets = [0, 320], sizes = [32, 32], strides = [1, 1]} : vector<32x384xf32> to vector<32x32xf32>
    %79 = arith.truncf %78 : vector<32x32xf32> to vector<32x32xbf16>
    %cst_35 = arith.constant dense<0.000000e+00> : vector<32x32xf32>
    %80 = tpu.matmul %75, %77, %cst_35 {dimension_numbers = #tpu.dot_dimension_numbers<[1], [1], [0], [0], [0, 0, 1, 0], [], []>} : vector<32x32xbf16>, vector<32x32xbf16>, vector<32x32xf32> -> vector<32x32xf32>
    %81 = arith.addf %80, %6 : vector<32x32xf32>
    %cst_36 = arith.constant dense<0xFF800000> : vector<32xf32>
    %82 = vector.multi_reduction <maximumf>, %81, %cst_36 [1] : vector<32x32xf32> to vector<32xf32>
    %83 = vector.shape_cast %82 : vector<32xf32> to vector<32x1xf32>
    %84 = vector.broadcast %83 : vector<32x1xf32> to vector<32x32xf32>
    %85 = arith.subf %81, %84 : vector<32x32xf32>
    %86 = math.exp %85 : vector<32x32xf32>
    %cst_37 = arith.constant dense<0.000000e+00> : vector<32xf32>
    %87 = vector.multi_reduction <add>, %86, %cst_37 [1] : vector<32x32xf32> to vector<32xf32>
    %88 = vector.shape_cast %87 : vector<32xf32> to vector<32x1xf32>
    %89 = tpu.reciprocal %88 {approx = true} : vector<32x1xf32> -> vector<32x1xf32>
    %90 = vector.broadcast %89 : vector<32x1xf32> to vector<32x32xf32>
    %91 = arith.mulf %86, %90 : vector<32x32xf32>
    %92 = arith.truncf %91 : vector<32x32xf32> to vector<32x32xbf16>
    %cst_38 = arith.constant dense<0.000000e+00> : vector<32x32xf32>
    %93 = tpu.matmul %92, %79, %cst_38 {dimension_numbers = #tpu.dot_dimension_numbers<[1], [0], [0], [1], [0, 0, 1, 1], [], []>} : vector<32x32xbf16>, vector<32x32xbf16>, vector<32x32xf32> -> vector<32x32xf32>
    %94 = arith.truncf %93 : vector<32x32xf32> to vector<32x32xbf16>
    %c0_39 = arith.constant 0 : index
    %c64 = arith.constant 64 : index
    %c0_40 = arith.constant 0 : index
    %95 = vector.load %arg9[%c0_39, %c64, %c0_40] : memref<2x128x128xbf16, #tpu.memory_space<vmem>>, vector<1x32x128xbf16>
    %96 = vector.shape_cast %95 : vector<1x32x128xbf16> to vector<32x128xbf16>
    %cst_41 = arith.constant dense<0.000000e+00> : vector<32x128xf32>
    %97 = tpu.matmul %94, %96, %cst_41 {dimension_numbers = #tpu.dot_dimension_numbers<[1], [0], [0], [1], [0, 0, 1, 1], [], []>} : vector<32x32xbf16>, vector<32x128xbf16>, vector<32x128xf32> -> vector<32x128xf32>
    %98 = arith.addf %73, %97 : vector<32x128xf32>
    %99 = vector.extract_strided_slice %22 {offsets = [0, 96], sizes = [32, 32], strides = [1, 1]} : vector<32x384xf32> to vector<32x32xf32>
    %100 = arith.truncf %99 : vector<32x32xf32> to vector<32x32xbf16>
    %101 = vector.extract_strided_slice %22 {offsets = [0, 224], sizes = [32, 32], strides = [1, 1]} : vector<32x384xf32> to vector<32x32xf32>
    %102 = arith.truncf %101 : vector<32x32xf32> to vector<32x32xbf16>
    %103 = vector.extract_strided_slice %22 {offsets = [0, 352], sizes = [32, 32], strides = [1, 1]} : vector<32x384xf32> to vector<32x32xf32>
    %104 = arith.truncf %103 : vector<32x32xf32> to vector<32x32xbf16>
    %cst_42 = arith.constant dense<0.000000e+00> : vector<32x32xf32>
    %105 = tpu.matmul %100, %102, %cst_42 {dimension_numbers = #tpu.dot_dimension_numbers<[1], [1], [0], [0], [0, 0, 1, 0], [], []>} : vector<32x32xbf16>, vector<32x32xbf16>, vector<32x32xf32> -> vector<32x32xf32>
    %106 = arith.addf %105, %6 : vector<32x32xf32>
    %cst_43 = arith.constant dense<0xFF800000> : vector<32xf32>
    %107 = vector.multi_reduction <maximumf>, %106, %cst_43 [1] : vector<32x32xf32> to vector<32xf32>
    %108 = vector.shape_cast %107 : vector<32xf32> to vector<32x1xf32>
    %109 = vector.broadcast %108 : vector<32x1xf32> to vector<32x32xf32>
    %110 = arith.subf %106, %109 : vector<32x32xf32>
    %111 = math.exp %110 : vector<32x32xf32>
    %cst_44 = arith.constant dense<0.000000e+00> : vector<32xf32>
    %112 = vector.multi_reduction <add>, %111, %cst_44 [1] : vector<32x32xf32> to vector<32xf32>
    %113 = vector.shape_cast %112 : vector<32xf32> to vector<32x1xf32>
    %114 = tpu.reciprocal %113 {approx = true} : vector<32x1xf32> -> vector<32x1xf32>
    %115 = vector.broadcast %114 : vector<32x1xf32> to vector<32x32xf32>
    %116 = arith.mulf %111, %115 : vector<32x32xf32>
    %117 = arith.truncf %116 : vector<32x32xf32> to vector<32x32xbf16>
    %cst_45 = arith.constant dense<0.000000e+00> : vector<32x32xf32>
    %118 = tpu.matmul %117, %104, %cst_45 {dimension_numbers = #tpu.dot_dimension_numbers<[1], [0], [0], [1], [0, 0, 1, 1], [], []>} : vector<32x32xbf16>, vector<32x32xbf16>, vector<32x32xf32> -> vector<32x32xf32>
    %119 = arith.truncf %118 : vector<32x32xf32> to vector<32x32xbf16>
    %c0_46 = arith.constant 0 : index
    %c96 = arith.constant 96 : index
    %c0_47 = arith.constant 0 : index
    %120 = vector.load %arg9[%c0_46, %c96, %c0_47] : memref<2x128x128xbf16, #tpu.memory_space<vmem>>, vector<1x32x128xbf16>
    %121 = vector.shape_cast %120 : vector<1x32x128xbf16> to vector<32x128xbf16>
    %cst_48 = arith.constant dense<0.000000e+00> : vector<32x128xf32>
    %122 = tpu.matmul %119, %121, %cst_48 {dimension_numbers = #tpu.dot_dimension_numbers<[1], [0], [0], [1], [0, 0, 1, 1], [], []>} : vector<32x32xbf16>, vector<32x128xbf16>, vector<32x128xf32> -> vector<32x128xf32>
    %123 = arith.addf %98, %122 : vector<32x128xf32>
    %124 = arith.addf %5, %123 : vector<32x128xf32>
    %c0_49 = arith.constant 0 : index
    %c0_50 = arith.constant 0 : index
    %c0_51 = arith.constant 0 : index
    %125 = vector.load %arg10[%c0_49, %c0_50, %c0_51] : memref<2x1x128xf32, #tpu.memory_space<vmem>>, vector<1x1x128xf32>
    %126 = vector.shape_cast %125 : vector<1x1x128xf32> to vector<1x128xf32>
    %127 = vector.broadcast %126 : vector<1x128xf32> to vector<32x128xf32>
    %128 = arith.addf %124, %127 : vector<32x128xf32>
    %c0_52 = arith.constant 0 : index
    %c0_53 = arith.constant 0 : index
    %c0_54 = arith.constant 0 : index
    %129 = vector.load %arg11[%c0_52, %c0_53, %c0_54] : memref<2x2x128xf32, #tpu.memory_space<vmem>>, vector<1x1x128xf32>
    %130 = vector.shape_cast %129 : vector<1x1x128xf32> to vector<1x128xf32>
    %131 = vector.broadcast %130 : vector<1x128xf32> to vector<32x128xf32>
    %132 = arith.mulf %128, %131 : vector<32x128xf32>
    %c0_55 = arith.constant 0 : index
    %c1_56 = arith.constant 1 : index
    %c0_57 = arith.constant 0 : index
    %133 = vector.load %arg11[%c0_55, %c1_56, %c0_57] : memref<2x2x128xf32, #tpu.memory_space<vmem>>, vector<1x1x128xf32>
    %134 = vector.shape_cast %133 : vector<1x1x128xf32> to vector<1x128xf32>
    %135 = vector.broadcast %134 : vector<1x128xf32> to vector<32x128xf32>
    %136 = arith.addf %132, %135 : vector<32x128xf32>
    %137 = arith.truncf %136 : vector<32x128xf32> to vector<32x128xbf16>
    %c0_58 = arith.constant 0 : index
    %c0_59 = arith.constant 0 : index
    %c0_60 = arith.constant 0 : index
    %138 = vector.load %arg12[%c0_58, %c0_59, %c0_60] : memref<2x128x512xbf16, #tpu.memory_space<vmem>>, vector<1x128x512xbf16>
    %139 = vector.shape_cast %138 : vector<1x128x512xbf16> to vector<128x512xbf16>
    %cst_61 = arith.constant dense<0.000000e+00> : vector<32x512xf32>
    %140 = tpu.matmul %137, %139, %cst_61 {dimension_numbers = #tpu.dot_dimension_numbers<[1], [0], [0], [1], [0, 0, 1, 1], [], []>} : vector<32x128xbf16>, vector<128x512xbf16>, vector<32x512xf32> -> vector<32x512xf32>
    %c0_62 = arith.constant 0 : index
    %c0_63 = arith.constant 0 : index
    %c0_64 = arith.constant 0 : index
    %141 = vector.load %arg13[%c0_62, %c0_63, %c0_64] : memref<2x1x512xf32, #tpu.memory_space<vmem>>, vector<1x1x512xf32>
    %142 = vector.shape_cast %141 : vector<1x1x512xf32> to vector<1x512xf32>
    %143 = vector.broadcast %142 : vector<1x512xf32> to vector<32x512xf32>
    %144 = arith.addf %140, %143 : vector<32x512xf32>
    %cst_65 = arith.constant 1.702000e+00 : f32
    %145 = vector.broadcast %cst_65 : f32 to vector<32x512xf32>
    %146 = arith.mulf %145, %144 : vector<32x512xf32>
    %147 = arith.negf %146 : vector<32x512xf32>
    %148 = math.exp %147 : vector<32x512xf32>
    %cst_66 = arith.constant 1.000000e+00 : f32
    %149 = vector.broadcast %cst_66 : f32 to vector<32x512xf32>
    %150 = arith.addf %149, %148 : vector<32x512xf32>
    %151 = arith.divf %149, %150 : vector<32x512xf32>
    %152 = arith.mulf %144, %151 : vector<32x512xf32>
    %153 = arith.truncf %152 : vector<32x512xf32> to vector<32x512xbf16>
    %c0_67 = arith.constant 0 : index
    %c0_68 = arith.constant 0 : index
    %c0_69 = arith.constant 0 : index
    %154 = vector.load %arg14[%c0_67, %c0_68, %c0_69] : memref<2x512x128xbf16, #tpu.memory_space<vmem>>, vector<1x512x128xbf16>
    %155 = vector.shape_cast %154 : vector<1x512x128xbf16> to vector<512x128xbf16>
    %cst_70 = arith.constant dense<0.000000e+00> : vector<32x128xf32>
    %156 = tpu.matmul %153, %155, %cst_70 {dimension_numbers = #tpu.dot_dimension_numbers<[1], [0], [0], [1], [0, 0, 1, 1], [], []>} : vector<32x512xbf16>, vector<512x128xbf16>, vector<32x128xf32> -> vector<32x128xf32>
    %c0_71 = arith.constant 0 : index
    %c0_72 = arith.constant 0 : index
    %c0_73 = arith.constant 0 : index
    %157 = vector.load %arg15[%c0_71, %c0_72, %c0_73] : memref<2x1x128xf32, #tpu.memory_space<vmem>>, vector<1x1x128xf32>
    %158 = vector.shape_cast %157 : vector<1x1x128xf32> to vector<1x128xf32>
    %159 = vector.broadcast %158 : vector<1x128xf32> to vector<32x128xf32>
    %160 = arith.addf %156, %159 : vector<32x128xf32>
    %161 = arith.addf %128, %160 : vector<32x128xf32>
    %c1_74 = arith.constant 1 : index
    %c0_75 = arith.constant 0 : index
    %c0_76 = arith.constant 0 : index
    %162 = vector.load %arg6[%c1_74, %c0_75, %c0_76] : memref<2x2x128xf32, #tpu.memory_space<vmem>>, vector<1x1x128xf32>
    %163 = vector.shape_cast %162 : vector<1x1x128xf32> to vector<1x128xf32>
    %164 = vector.broadcast %163 : vector<1x128xf32> to vector<32x128xf32>
    %165 = arith.mulf %161, %164 : vector<32x128xf32>
    %c1_77 = arith.constant 1 : index
    %c1_78 = arith.constant 1 : index
    %c0_79 = arith.constant 0 : index
    %166 = vector.load %arg6[%c1_77, %c1_78, %c0_79] : memref<2x2x128xf32, #tpu.memory_space<vmem>>, vector<1x1x128xf32>
    %167 = vector.shape_cast %166 : vector<1x1x128xf32> to vector<1x128xf32>
    %168 = vector.broadcast %167 : vector<1x128xf32> to vector<32x128xf32>
    %169 = arith.addf %165, %168 : vector<32x128xf32>
    %170 = arith.truncf %169 : vector<32x128xf32> to vector<32x128xbf16>
    %c1_80 = arith.constant 1 : index
    %c0_81 = arith.constant 0 : index
    %c0_82 = arith.constant 0 : index
    %171 = vector.load %arg7[%c1_80, %c0_81, %c0_82] : memref<2x128x384xbf16, #tpu.memory_space<vmem>>, vector<1x128x384xbf16>
    %172 = vector.shape_cast %171 : vector<1x128x384xbf16> to vector<128x384xbf16>
    %cst_83 = arith.constant dense<0.000000e+00> : vector<32x384xf32>
    %173 = tpu.matmul %170, %172, %cst_83 {dimension_numbers = #tpu.dot_dimension_numbers<[1], [0], [0], [1], [0, 0, 1, 1], [], []>} : vector<32x128xbf16>, vector<128x384xbf16>, vector<32x384xf32> -> vector<32x384xf32>
    %c1_84 = arith.constant 1 : index
    %c0_85 = arith.constant 0 : index
    %c0_86 = arith.constant 0 : index
    %174 = vector.load %arg8[%c1_84, %c0_85, %c0_86] : memref<2x1x384xf32, #tpu.memory_space<vmem>>, vector<1x1x384xf32>
    %175 = vector.shape_cast %174 : vector<1x1x384xf32> to vector<1x384xf32>
    %176 = vector.broadcast %175 : vector<1x384xf32> to vector<32x384xf32>
    %177 = arith.addf %173, %176 : vector<32x384xf32>
    %cst_87 = arith.constant 0.000000e+00 : f32
    %178 = vector.broadcast %cst_87 : f32 to vector<32x128xf32>
    %179 = vector.extract_strided_slice %177 {offsets = [0, 0], sizes = [32, 32], strides = [1, 1]} : vector<32x384xf32> to vector<32x32xf32>
    %180 = arith.truncf %179 : vector<32x32xf32> to vector<32x32xbf16>
    %181 = vector.extract_strided_slice %177 {offsets = [0, 128], sizes = [32, 32], strides = [1, 1]} : vector<32x384xf32> to vector<32x32xf32>
    %182 = arith.truncf %181 : vector<32x32xf32> to vector<32x32xbf16>
    %183 = vector.extract_strided_slice %177 {offsets = [0, 256], sizes = [32, 32], strides = [1, 1]} : vector<32x384xf32> to vector<32x32xf32>
    %184 = arith.truncf %183 : vector<32x32xf32> to vector<32x32xbf16>
    %cst_88 = arith.constant dense<0.000000e+00> : vector<32x32xf32>
    %185 = tpu.matmul %180, %182, %cst_88 {dimension_numbers = #tpu.dot_dimension_numbers<[1], [1], [0], [0], [0, 0, 1, 0], [], []>} : vector<32x32xbf16>, vector<32x32xbf16>, vector<32x32xf32> -> vector<32x32xf32>
    %186 = arith.addf %185, %6 : vector<32x32xf32>
    %cst_89 = arith.constant dense<0xFF800000> : vector<32xf32>
    %187 = vector.multi_reduction <maximumf>, %186, %cst_89 [1] : vector<32x32xf32> to vector<32xf32>
    %188 = vector.shape_cast %187 : vector<32xf32> to vector<32x1xf32>
    %189 = vector.broadcast %188 : vector<32x1xf32> to vector<32x32xf32>
    %190 = arith.subf %186, %189 : vector<32x32xf32>
    %191 = math.exp %190 : vector<32x32xf32>
    %cst_90 = arith.constant dense<0.000000e+00> : vector<32xf32>
    %192 = vector.multi_reduction <add>, %191, %cst_90 [1] : vector<32x32xf32> to vector<32xf32>
    %193 = vector.shape_cast %192 : vector<32xf32> to vector<32x1xf32>
    %194 = tpu.reciprocal %193 {approx = true} : vector<32x1xf32> -> vector<32x1xf32>
    %195 = vector.broadcast %194 : vector<32x1xf32> to vector<32x32xf32>
    %196 = arith.mulf %191, %195 : vector<32x32xf32>
    %197 = arith.truncf %196 : vector<32x32xf32> to vector<32x32xbf16>
    %cst_91 = arith.constant dense<0.000000e+00> : vector<32x32xf32>
    %198 = tpu.matmul %197, %184, %cst_91 {dimension_numbers = #tpu.dot_dimension_numbers<[1], [0], [0], [1], [0, 0, 1, 1], [], []>} : vector<32x32xbf16>, vector<32x32xbf16>, vector<32x32xf32> -> vector<32x32xf32>
    %199 = arith.truncf %198 : vector<32x32xf32> to vector<32x32xbf16>
    %c1_92 = arith.constant 1 : index
    %c0_93 = arith.constant 0 : index
    %c0_94 = arith.constant 0 : index
    %200 = vector.load %arg9[%c1_92, %c0_93, %c0_94] : memref<2x128x128xbf16, #tpu.memory_space<vmem>>, vector<1x32x128xbf16>
    %201 = vector.shape_cast %200 : vector<1x32x128xbf16> to vector<32x128xbf16>
    %cst_95 = arith.constant dense<0.000000e+00> : vector<32x128xf32>
    %202 = tpu.matmul %199, %201, %cst_95 {dimension_numbers = #tpu.dot_dimension_numbers<[1], [0], [0], [1], [0, 0, 1, 1], [], []>} : vector<32x32xbf16>, vector<32x128xbf16>, vector<32x128xf32> -> vector<32x128xf32>
    %203 = arith.addf %178, %202 : vector<32x128xf32>
    %204 = vector.extract_strided_slice %177 {offsets = [0, 32], sizes = [32, 32], strides = [1, 1]} : vector<32x384xf32> to vector<32x32xf32>
    %205 = arith.truncf %204 : vector<32x32xf32> to vector<32x32xbf16>
    %206 = vector.extract_strided_slice %177 {offsets = [0, 160], sizes = [32, 32], strides = [1, 1]} : vector<32x384xf32> to vector<32x32xf32>
    %207 = arith.truncf %206 : vector<32x32xf32> to vector<32x32xbf16>
    %208 = vector.extract_strided_slice %177 {offsets = [0, 288], sizes = [32, 32], strides = [1, 1]} : vector<32x384xf32> to vector<32x32xf32>
    %209 = arith.truncf %208 : vector<32x32xf32> to vector<32x32xbf16>
    %cst_96 = arith.constant dense<0.000000e+00> : vector<32x32xf32>
    %210 = tpu.matmul %205, %207, %cst_96 {dimension_numbers = #tpu.dot_dimension_numbers<[1], [1], [0], [0], [0, 0, 1, 0], [], []>} : vector<32x32xbf16>, vector<32x32xbf16>, vector<32x32xf32> -> vector<32x32xf32>
    %211 = arith.addf %210, %6 : vector<32x32xf32>
    %cst_97 = arith.constant dense<0xFF800000> : vector<32xf32>
    %212 = vector.multi_reduction <maximumf>, %211, %cst_97 [1] : vector<32x32xf32> to vector<32xf32>
    %213 = vector.shape_cast %212 : vector<32xf32> to vector<32x1xf32>
    %214 = vector.broadcast %213 : vector<32x1xf32> to vector<32x32xf32>
    %215 = arith.subf %211, %214 : vector<32x32xf32>
    %216 = math.exp %215 : vector<32x32xf32>
    %cst_98 = arith.constant dense<0.000000e+00> : vector<32xf32>
    %217 = vector.multi_reduction <add>, %216, %cst_98 [1] : vector<32x32xf32> to vector<32xf32>
    %218 = vector.shape_cast %217 : vector<32xf32> to vector<32x1xf32>
    %219 = tpu.reciprocal %218 {approx = true} : vector<32x1xf32> -> vector<32x1xf32>
    %220 = vector.broadcast %219 : vector<32x1xf32> to vector<32x32xf32>
    %221 = arith.mulf %216, %220 : vector<32x32xf32>
    %222 = arith.truncf %221 : vector<32x32xf32> to vector<32x32xbf16>
    %cst_99 = arith.constant dense<0.000000e+00> : vector<32x32xf32>
    %223 = tpu.matmul %222, %209, %cst_99 {dimension_numbers = #tpu.dot_dimension_numbers<[1], [0], [0], [1], [0, 0, 1, 1], [], []>} : vector<32x32xbf16>, vector<32x32xbf16>, vector<32x32xf32> -> vector<32x32xf32>
    %224 = arith.truncf %223 : vector<32x32xf32> to vector<32x32xbf16>
    %c1_100 = arith.constant 1 : index
    %c32_101 = arith.constant 32 : index
    %c0_102 = arith.constant 0 : index
    %225 = vector.load %arg9[%c1_100, %c32_101, %c0_102] : memref<2x128x128xbf16, #tpu.memory_space<vmem>>, vector<1x32x128xbf16>
    %226 = vector.shape_cast %225 : vector<1x32x128xbf16> to vector<32x128xbf16>
    %cst_103 = arith.constant dense<0.000000e+00> : vector<32x128xf32>
    %227 = tpu.matmul %224, %226, %cst_103 {dimension_numbers = #tpu.dot_dimension_numbers<[1], [0], [0], [1], [0, 0, 1, 1], [], []>} : vector<32x32xbf16>, vector<32x128xbf16>, vector<32x128xf32> -> vector<32x128xf32>
    %228 = arith.addf %203, %227 : vector<32x128xf32>
    %229 = vector.extract_strided_slice %177 {offsets = [0, 64], sizes = [32, 32], strides = [1, 1]} : vector<32x384xf32> to vector<32x32xf32>
    %230 = arith.truncf %229 : vector<32x32xf32> to vector<32x32xbf16>
    %231 = vector.extract_strided_slice %177 {offsets = [0, 192], sizes = [32, 32], strides = [1, 1]} : vector<32x384xf32> to vector<32x32xf32>
    %232 = arith.truncf %231 : vector<32x32xf32> to vector<32x32xbf16>
    %233 = vector.extract_strided_slice %177 {offsets = [0, 320], sizes = [32, 32], strides = [1, 1]} : vector<32x384xf32> to vector<32x32xf32>
    %234 = arith.truncf %233 : vector<32x32xf32> to vector<32x32xbf16>
    %cst_104 = arith.constant dense<0.000000e+00> : vector<32x32xf32>
    %235 = tpu.matmul %230, %232, %cst_104 {dimension_numbers = #tpu.dot_dimension_numbers<[1], [1], [0], [0], [0, 0, 1, 0], [], []>} : vector<32x32xbf16>, vector<32x32xbf16>, vector<32x32xf32> -> vector<32x32xf32>
    %236 = arith.addf %235, %6 : vector<32x32xf32>
    %cst_105 = arith.constant dense<0xFF800000> : vector<32xf32>
    %237 = vector.multi_reduction <maximumf>, %236, %cst_105 [1] : vector<32x32xf32> to vector<32xf32>
    %238 = vector.shape_cast %237 : vector<32xf32> to vector<32x1xf32>
    %239 = vector.broadcast %238 : vector<32x1xf32> to vector<32x32xf32>
    %240 = arith.subf %236, %239 : vector<32x32xf32>
    %241 = math.exp %240 : vector<32x32xf32>
    %cst_106 = arith.constant dense<0.000000e+00> : vector<32xf32>
    %242 = vector.multi_reduction <add>, %241, %cst_106 [1] : vector<32x32xf32> to vector<32xf32>
    %243 = vector.shape_cast %242 : vector<32xf32> to vector<32x1xf32>
    %244 = tpu.reciprocal %243 {approx = true} : vector<32x1xf32> -> vector<32x1xf32>
    %245 = vector.broadcast %244 : vector<32x1xf32> to vector<32x32xf32>
    %246 = arith.mulf %241, %245 : vector<32x32xf32>
    %247 = arith.truncf %246 : vector<32x32xf32> to vector<32x32xbf16>
    %cst_107 = arith.constant dense<0.000000e+00> : vector<32x32xf32>
    %248 = tpu.matmul %247, %234, %cst_107 {dimension_numbers = #tpu.dot_dimension_numbers<[1], [0], [0], [1], [0, 0, 1, 1], [], []>} : vector<32x32xbf16>, vector<32x32xbf16>, vector<32x32xf32> -> vector<32x32xf32>
    %249 = arith.truncf %248 : vector<32x32xf32> to vector<32x32xbf16>
    %c1_108 = arith.constant 1 : index
    %c64_109 = arith.constant 64 : index
    %c0_110 = arith.constant 0 : index
    %250 = vector.load %arg9[%c1_108, %c64_109, %c0_110] : memref<2x128x128xbf16, #tpu.memory_space<vmem>>, vector<1x32x128xbf16>
    %251 = vector.shape_cast %250 : vector<1x32x128xbf16> to vector<32x128xbf16>
    %cst_111 = arith.constant dense<0.000000e+00> : vector<32x128xf32>
    %252 = tpu.matmul %249, %251, %cst_111 {dimension_numbers = #tpu.dot_dimension_numbers<[1], [0], [0], [1], [0, 0, 1, 1], [], []>} : vector<32x32xbf16>, vector<32x128xbf16>, vector<32x128xf32> -> vector<32x128xf32>
    %253 = arith.addf %228, %252 : vector<32x128xf32>
    %254 = vector.extract_strided_slice %177 {offsets = [0, 96], sizes = [32, 32], strides = [1, 1]} : vector<32x384xf32> to vector<32x32xf32>
    %255 = arith.truncf %254 : vector<32x32xf32> to vector<32x32xbf16>
    %256 = vector.extract_strided_slice %177 {offsets = [0, 224], sizes = [32, 32], strides = [1, 1]} : vector<32x384xf32> to vector<32x32xf32>
    %257 = arith.truncf %256 : vector<32x32xf32> to vector<32x32xbf16>
    %258 = vector.extract_strided_slice %177 {offsets = [0, 352], sizes = [32, 32], strides = [1, 1]} : vector<32x384xf32> to vector<32x32xf32>
    %259 = arith.truncf %258 : vector<32x32xf32> to vector<32x32xbf16>
    %cst_112 = arith.constant dense<0.000000e+00> : vector<32x32xf32>
    %260 = tpu.matmul %255, %257, %cst_112 {dimension_numbers = #tpu.dot_dimension_numbers<[1], [1], [0], [0], [0, 0, 1, 0], [], []>} : vector<32x32xbf16>, vector<32x32xbf16>, vector<32x32xf32> -> vector<32x32xf32>
    %261 = arith.addf %260, %6 : vector<32x32xf32>
    %cst_113 = arith.constant dense<0xFF800000> : vector<32xf32>
    %262 = vector.multi_reduction <maximumf>, %261, %cst_113 [1] : vector<32x32xf32> to vector<32xf32>
    %263 = vector.shape_cast %262 : vector<32xf32> to vector<32x1xf32>
    %264 = vector.broadcast %263 : vector<32x1xf32> to vector<32x32xf32>
    %265 = arith.subf %261, %264 : vector<32x32xf32>
    %266 = math.exp %265 : vector<32x32xf32>
    %cst_114 = arith.constant dense<0.000000e+00> : vector<32xf32>
    %267 = vector.multi_reduction <add>, %266, %cst_114 [1] : vector<32x32xf32> to vector<32xf32>
    %268 = vector.shape_cast %267 : vector<32xf32> to vector<32x1xf32>
    %269 = tpu.reciprocal %268 {approx = true} : vector<32x1xf32> -> vector<32x1xf32>
    %270 = vector.broadcast %269 : vector<32x1xf32> to vector<32x32xf32>
    %271 = arith.mulf %266, %270 : vector<32x32xf32>
    %272 = arith.truncf %271 : vector<32x32xf32> to vector<32x32xbf16>
    %cst_115 = arith.constant dense<0.000000e+00> : vector<32x32xf32>
    %273 = tpu.matmul %272, %259, %cst_115 {dimension_numbers = #tpu.dot_dimension_numbers<[1], [0], [0], [1], [0, 0, 1, 1], [], []>} : vector<32x32xbf16>, vector<32x32xbf16>, vector<32x32xf32> -> vector<32x32xf32>
    %274 = arith.truncf %273 : vector<32x32xf32> to vector<32x32xbf16>
    %c1_116 = arith.constant 1 : index
    %c96_117 = arith.constant 96 : index
    %c0_118 = arith.constant 0 : index
    %275 = vector.load %arg9[%c1_116, %c96_117, %c0_118] : memref<2x128x128xbf16, #tpu.memory_space<vmem>>, vector<1x32x128xbf16>
    %276 = vector.shape_cast %275 : vector<1x32x128xbf16> to vector<32x128xbf16>
    %cst_119 = arith.constant dense<0.000000e+00> : vector<32x128xf32>
    %277 = tpu.matmul %274, %276, %cst_119 {dimension_numbers = #tpu.dot_dimension_numbers<[1], [0], [0], [1], [0, 0, 1, 1], [], []>} : vector<32x32xbf16>, vector<32x128xbf16>, vector<32x128xf32> -> vector<32x128xf32>
    %278 = arith.addf %253, %277 : vector<32x128xf32>
    %279 = arith.addf %161, %278 : vector<32x128xf32>
    %c1_120 = arith.constant 1 : index
    %c0_121 = arith.constant 0 : index
    %c0_122 = arith.constant 0 : index
    %280 = vector.load %arg10[%c1_120, %c0_121, %c0_122] : memref<2x1x128xf32, #tpu.memory_space<vmem>>, vector<1x1x128xf32>
    %281 = vector.shape_cast %280 : vector<1x1x128xf32> to vector<1x128xf32>
    %282 = vector.broadcast %281 : vector<1x128xf32> to vector<32x128xf32>
    %283 = arith.addf %279, %282 : vector<32x128xf32>
    %c1_123 = arith.constant 1 : index
    %c0_124 = arith.constant 0 : index
    %c0_125 = arith.constant 0 : index
    %284 = vector.load %arg11[%c1_123, %c0_124, %c0_125] : memref<2x2x128xf32, #tpu.memory_space<vmem>>, vector<1x1x128xf32>
    %285 = vector.shape_cast %284 : vector<1x1x128xf32> to vector<1x128xf32>
    %286 = vector.broadcast %285 : vector<1x128xf32> to vector<32x128xf32>
    %287 = arith.mulf %283, %286 : vector<32x128xf32>
    %c1_126 = arith.constant 1 : index
    %c1_127 = arith.constant 1 : index
    %c0_128 = arith.constant 0 : index
    %288 = vector.load %arg11[%c1_126, %c1_127, %c0_128] : memref<2x2x128xf32, #tpu.memory_space<vmem>>, vector<1x1x128xf32>
    %289 = vector.shape_cast %288 : vector<1x1x128xf32> to vector<1x128xf32>
    %290 = vector.broadcast %289 : vector<1x128xf32> to vector<32x128xf32>
    %291 = arith.addf %287, %290 : vector<32x128xf32>
    %292 = arith.truncf %291 : vector<32x128xf32> to vector<32x128xbf16>
    %c1_129 = arith.constant 1 : index
    %c0_130 = arith.constant 0 : index
    %c0_131 = arith.constant 0 : index
    %293 = vector.load %arg12[%c1_129, %c0_130, %c0_131] : memref<2x128x512xbf16, #tpu.memory_space<vmem>>, vector<1x128x512xbf16>
    %294 = vector.shape_cast %293 : vector<1x128x512xbf16> to vector<128x512xbf16>
    %cst_132 = arith.constant dense<0.000000e+00> : vector<32x512xf32>
    %295 = tpu.matmul %292, %294, %cst_132 {dimension_numbers = #tpu.dot_dimension_numbers<[1], [0], [0], [1], [0, 0, 1, 1], [], []>} : vector<32x128xbf16>, vector<128x512xbf16>, vector<32x512xf32> -> vector<32x512xf32>
    %c1_133 = arith.constant 1 : index
    %c0_134 = arith.constant 0 : index
    %c0_135 = arith.constant 0 : index
    %296 = vector.load %arg13[%c1_133, %c0_134, %c0_135] : memref<2x1x512xf32, #tpu.memory_space<vmem>>, vector<1x1x512xf32>
    %297 = vector.shape_cast %296 : vector<1x1x512xf32> to vector<1x512xf32>
    %298 = vector.broadcast %297 : vector<1x512xf32> to vector<32x512xf32>
    %299 = arith.addf %295, %298 : vector<32x512xf32>
    %cst_136 = arith.constant 1.702000e+00 : f32
    %300 = vector.broadcast %cst_136 : f32 to vector<32x512xf32>
    %301 = arith.mulf %300, %299 : vector<32x512xf32>
    %302 = arith.negf %301 : vector<32x512xf32>
    %303 = math.exp %302 : vector<32x512xf32>
    %cst_137 = arith.constant 1.000000e+00 : f32
    %304 = vector.broadcast %cst_137 : f32 to vector<32x512xf32>
    %305 = arith.addf %304, %303 : vector<32x512xf32>
    %306 = arith.divf %304, %305 : vector<32x512xf32>
    %307 = arith.mulf %299, %306 : vector<32x512xf32>
    %308 = arith.truncf %307 : vector<32x512xf32> to vector<32x512xbf16>
    %c1_138 = arith.constant 1 : index
    %c0_139 = arith.constant 0 : index
    %c0_140 = arith.constant 0 : index
    %309 = vector.load %arg14[%c1_138, %c0_139, %c0_140] : memref<2x512x128xbf16, #tpu.memory_space<vmem>>, vector<1x512x128xbf16>
    %310 = vector.shape_cast %309 : vector<1x512x128xbf16> to vector<512x128xbf16>
    %cst_141 = arith.constant dense<0.000000e+00> : vector<32x128xf32>
    %311 = tpu.matmul %308, %310, %cst_141 {dimension_numbers = #tpu.dot_dimension_numbers<[1], [0], [0], [1], [0, 0, 1, 1], [], []>} : vector<32x512xbf16>, vector<512x128xbf16>, vector<32x128xf32> -> vector<32x128xf32>
    %c1_142 = arith.constant 1 : index
    %c0_143 = arith.constant 0 : index
    %c0_144 = arith.constant 0 : index
    %312 = vector.load %arg15[%c1_142, %c0_143, %c0_144] : memref<2x1x128xf32, #tpu.memory_space<vmem>>, vector<1x1x128xf32>
    %313 = vector.shape_cast %312 : vector<1x1x128xf32> to vector<1x128xf32>
    %314 = vector.broadcast %313 : vector<1x128xf32> to vector<32x128xf32>
    %315 = arith.addf %311, %314 : vector<32x128xf32>
    %316 = arith.addf %283, %315 : vector<32x128xf32>
    %c0_145 = arith.constant 0 : index
    %c0_146 = arith.constant 0 : index
    %317 = vector.load %arg16[%c0_145, %c0_146] : memref<2x128xf32, #tpu.memory_space<vmem>>, vector<1x128xf32>
    %318 = vector.broadcast %317 : vector<1x128xf32> to vector<32x128xf32>
    %319 = arith.mulf %316, %318 : vector<32x128xf32>
    %c1_147 = arith.constant 1 : index
    %c0_148 = arith.constant 0 : index
    %320 = vector.load %arg16[%c1_147, %c0_148] : memref<2x128xf32, #tpu.memory_space<vmem>>, vector<1x128xf32>
    %321 = vector.broadcast %320 : vector<1x128xf32> to vector<32x128xf32>
    %322 = arith.addf %319, %321 : vector<32x128xf32>
    %323 = arith.truncf %322 : vector<32x128xf32> to vector<32x128xbf16>
    %c0_149 = arith.constant 0 : index
    %c0_150 = arith.constant 0 : index
    %324 = vector.load %arg17[%c0_149, %c0_150] : memref<128x256xbf16, #tpu.memory_space<vmem>>, vector<128x256xbf16>
    %cst_151 = arith.constant dense<0.000000e+00> : vector<32x256xf32>
    %325 = tpu.matmul %323, %324, %cst_151 {dimension_numbers = #tpu.dot_dimension_numbers<[1], [0], [0], [1], [0, 0, 1, 1], [], []>} : vector<32x128xbf16>, vector<128x256xbf16>, vector<32x256xf32> -> vector<32x256xf32>
    %c0_152 = arith.constant 0 : index
    %c0_153 = arith.constant 0 : index
    %326 = vector.load %arg18[%c0_152, %c0_153] : memref<1x256xf32, #tpu.memory_space<vmem>>, vector<1x256xf32>
    %327 = vector.broadcast %326 : vector<1x256xf32> to vector<32x256xf32>
    %328 = arith.addf %325, %327 : vector<32x256xf32>
    %329 = vector.extract_strided_slice %328 {offsets = [0, 0], sizes = [16, 256], strides = [1, 1]} : vector<32x256xf32> to vector<16x256xf32>
    %c0_154 = arith.constant 0 : index
    %c0_155 = arith.constant 0 : index
    %c0_156 = arith.constant 0 : index
    %330 = vector.load %arg21[%c0_154, %c0_155, %c0_156] : memref<2x16x256xf32, #tpu.memory_space<vmem>>, vector<1x16x256xf32>
    %331 = vector.shape_cast %330 : vector<1x16x256xf32> to vector<16x256xf32>
    %332 = vector.shape_cast %329 : vector<16x256xf32> to vector<1x16x256xf32>
    tpu.vector_store %arg21[%c0_154, %c0_155, %c0_156], %332 {strides = array<i32>} : memref<2x16x256xf32, #tpu.memory_space<vmem>>, vector<1x16x256xf32>,
    %333 = vector.extract_strided_slice %328 {offsets = [16, 0], sizes = [16, 256], strides = [1, 1]} : vector<32x256xf32> to vector<16x256xf32>
    %c1_157 = arith.constant 1 : index
    %c0_158 = arith.constant 0 : index
    %c0_159 = arith.constant 0 : index
    %334 = vector.load %arg21[%c1_157, %c0_158, %c0_159] : memref<2x16x256xf32, #tpu.memory_space<vmem>>, vector<1x16x256xf32>
    %335 = vector.shape_cast %334 : vector<1x16x256xf32> to vector<16x256xf32>
    %336 = vector.shape_cast %333 : vector<16x256xf32> to vector<1x16x256xf32>
    tpu.vector_store %arg21[%c1_157, %c0_158, %c0_159], %336 {strides = array<i32>} : memref<2x16x256xf32, #tpu.memory_space<vmem>>, vector<1x16x256xf32>,
    %337 = arith.truncf %328 : vector<32x256xf32> to vector<32x256xbf16>
    %c0_160 = arith.constant 0 : index
    %c0_161 = arith.constant 0 : index
    %338 = vector.load %arg19[%c0_160, %c0_161] : memref<256x16xbf16, #tpu.memory_space<vmem>>, vector<256x16xbf16>
    %cst_162 = arith.constant dense<0.000000e+00> : vector<32x16xf32>
    %339 = tpu.matmul %337, %338, %cst_162 {dimension_numbers = #tpu.dot_dimension_numbers<[1], [0], [0], [1], [0, 0, 1, 1], [], []>} : vector<32x256xbf16>, vector<256x16xbf16>, vector<32x16xf32> -> vector<32x16xf32>
    %c0_163 = arith.constant 0 : index
    %c0_164 = arith.constant 0 : index
    %340 = vector.load %arg20[%c0_163, %c0_164] : memref<1x16xf32, #tpu.memory_space<vmem>>, vector<1x16xf32>
    %341 = vector.broadcast %340 : vector<1x16xf32> to vector<32x16xf32>
    %342 = arith.addf %339, %341 : vector<32x16xf32>
    %343 = vector.extract_strided_slice %342 {offsets = [0, 0], sizes = [1, 16], strides = [1, 1]} : vector<32x16xf32> to vector<1x16xf32>
    %c0_165 = arith.constant 0 : index
    %c0_166 = arith.constant 0 : index
    %344 = vector.load %arg22[%c0_165, %c0_166] : memref<2x16xf32, #tpu.memory_space<vmem>>, vector<1x16xf32>
    tpu.vector_store %arg22[%c0_165, %c0_166], %343 {strides = array<i32>} : memref<2x16xf32, #tpu.memory_space<vmem>>, vector<1x16xf32>,
    %345 = vector.extract_strided_slice %342 {offsets = [16, 0], sizes = [1, 16], strides = [1, 1]} : vector<32x16xf32> to vector<1x16xf32>
    %c1_167 = arith.constant 1 : index
    %c0_168 = arith.constant 0 : index
    %346 = vector.load %arg22[%c1_167, %c0_168] : memref<2x16xf32, #tpu.memory_space<vmem>>, vector<1x16xf32>
    tpu.vector_store %arg22[%c1_167, %c0_168], %345 {strides = array<i32>} : memref<2x16xf32, #tpu.memory_space<vmem>>, vector<1x16xf32>,
    %c0_169 = arith.constant 0 : index
    %c0_170 = arith.constant 0 : index
    %347 = memref.load %arg2[%c0_169, %c0_170] : memref<1x1xf32, #tpu.memory_space<smem>>
    %348 = vector.extract_strided_slice %328 {offsets = [1, 0], sizes = [15, 256], strides = [1, 1]} : vector<32x256xf32> to vector<15x256xf32>
    %c0_171 = arith.constant 0 : index
    %c1_172 = arith.constant 1 : index
    %c0_173 = arith.constant 0 : index
    %349 = vector.load %arg1[%c0_171, %c1_172, %c0_173] : memref<2x16x256xf32, #tpu.memory_space<vmem>>, vector<1x15x256xf32>
    %350 = vector.shape_cast %349 : vector<1x15x256xf32> to vector<15x256xf32>
    %351 = arith.mulf %348, %348 : vector<15x256xf32>
    %cst_174 = arith.constant dense<0.000000e+00> : vector<15xf32>
    %352 = vector.multi_reduction <add>, %351, %cst_174 [1] : vector<15x256xf32> to vector<15xf32>
    %353 = vector.shape_cast %352 : vector<15xf32> to vector<15x1xf32>
    %354 = arith.mulf %350, %350 : vector<15x256xf32>
    %cst_175 = arith.constant dense<0.000000e+00> : vector<15xf32>
    %355 = vector.multi_reduction <add>, %354, %cst_175 [1] : vector<15x256xf32> to vector<15xf32>
    %356 = vector.shape_cast %355 : vector<15xf32> to vector<15x1xf32>
    %357 = math.rsqrt %353 : vector<15x1xf32>
    %358 = math.rsqrt %356 : vector<15x1xf32>
    %cst_176 = arith.constant dense<0.000000e+00> : vector<1xf32>
    %359 = vector.multi_reduction <add>, %353, %cst_176 [0] : vector<15x1xf32> to vector<1xf32>
    %360 = vector.shape_cast %359 : vector<1xf32> to vector<1x1xf32>
    %cst_177 = arith.constant dense<0.000000e+00> : vector<1xf32>
    %361 = vector.multi_reduction <add>, %356, %cst_177 [0] : vector<15x1xf32> to vector<1xf32>
    %362 = vector.shape_cast %361 : vector<1xf32> to vector<1x1xf32>
    %363 = vector.extract_strided_slice %328 {offsets = [17, 0], sizes = [15, 256], strides = [1, 1]} : vector<32x256xf32> to vector<15x256xf32>
    %c1_178 = arith.constant 1 : index
    %c1_179 = arith.constant 1 : index
    %c0_180 = arith.constant 0 : index
    %364 = vector.load %arg1[%c1_178, %c1_179, %c0_180] : memref<2x16x256xf32, #tpu.memory_space<vmem>>, vector<1x15x256xf32>
    %365 = vector.shape_cast %364 : vector<1x15x256xf32> to vector<15x256xf32>
    %366 = arith.mulf %363, %363 : vector<15x256xf32>
    %cst_181 = arith.constant dense<0.000000e+00> : vector<15xf32>
    %367 = vector.multi_reduction <add>, %366, %cst_181 [1] : vector<15x256xf32> to vector<15xf32>
    %368 = vector.shape_cast %367 : vector<15xf32> to vector<15x1xf32>
    %369 = arith.mulf %365, %365 : vector<15x256xf32>
    %cst_182 = arith.constant dense<0.000000e+00> : vector<15xf32>
    %370 = vector.multi_reduction <add>, %369, %cst_182 [1] : vector<15x256xf32> to vector<15xf32>
    %371 = vector.shape_cast %370 : vector<15xf32> to vector<15x1xf32>
    %372 = math.rsqrt %368 : vector<15x1xf32>
    %373 = math.rsqrt %371 : vector<15x1xf32>
    %cst_183 = arith.constant dense<0.000000e+00> : vector<1xf32>
    %374 = vector.multi_reduction <add>, %368, %cst_183 [0] : vector<15x1xf32> to vector<1xf32>
    %375 = vector.shape_cast %374 : vector<1xf32> to vector<1x1xf32>
    %cst_184 = arith.constant dense<0.000000e+00> : vector<1xf32>
    %376 = vector.multi_reduction <add>, %371, %cst_184 [0] : vector<15x1xf32> to vector<1xf32>
    %377 = vector.shape_cast %376 : vector<1xf32> to vector<1x1xf32>
    %378 = arith.mulf %348, %350 : vector<15x256xf32>
    %cst_185 = arith.constant dense<0.000000e+00> : vector<15xf32>
    %379 = vector.multi_reduction <add>, %378, %cst_185 [1] : vector<15x256xf32> to vector<15xf32>
    %380 = vector.shape_cast %379 : vector<15xf32> to vector<15x1xf32>
    %381 = arith.mulf %380, %357 : vector<15x1xf32>
    %382 = arith.mulf %381, %358 : vector<15x1xf32>
    %cst_186 = arith.constant dense<0.000000e+00> : vector<1xf32>
    %383 = vector.multi_reduction <add>, %380, %cst_186 [0] : vector<15x1xf32> to vector<1xf32>
    %384 = vector.shape_cast %383 : vector<1xf32> to vector<1x1xf32>
    %385 = math.rsqrt %360 : vector<1x1xf32>
    %386 = arith.mulf %384, %385 : vector<1x1xf32>
    %387 = math.rsqrt %362 : vector<1x1xf32>
    %388 = arith.mulf %386, %387 : vector<1x1xf32>
    %389 = tpu.concatenate %382, %388 in 0 : vector<15x1xf32>, vector<1x1xf32> -> vector<16x1xf32>
    %390 = arith.mulf %348, %365 : vector<15x256xf32>
    %cst_187 = arith.constant dense<0.000000e+00> : vector<15xf32>
    %391 = vector.multi_reduction <add>, %390, %cst_187 [1] : vector<15x256xf32> to vector<15xf32>
    %392 = vector.shape_cast %391 : vector<15xf32> to vector<15x1xf32>
    %393 = arith.mulf %392, %357 : vector<15x1xf32>
    %394 = arith.mulf %393, %373 : vector<15x1xf32>
    %cst_188 = arith.constant dense<0.000000e+00> : vector<1xf32>
    %395 = vector.multi_reduction <add>, %392, %cst_188 [0] : vector<15x1xf32> to vector<1xf32>
    %396 = vector.shape_cast %395 : vector<1xf32> to vector<1x1xf32>
    %397 = math.rsqrt %360 : vector<1x1xf32>
    %398 = arith.mulf %396, %397 : vector<1x1xf32>
    %399 = math.rsqrt %377 : vector<1x1xf32>
    %400 = arith.mulf %398, %399 : vector<1x1xf32>
    %401 = tpu.concatenate %394, %400 in 0 : vector<15x1xf32>, vector<1x1xf32> -> vector<16x1xf32>
    %402 = arith.mulf %363, %350 : vector<15x256xf32>
    %cst_189 = arith.constant dense<0.000000e+00> : vector<15xf32>
    %403 = vector.multi_reduction <add>, %402, %cst_189 [1] : vector<15x256xf32> to vector<15xf32>
    %404 = vector.shape_cast %403 : vector<15xf32> to vector<15x1xf32>
    %405 = arith.mulf %404, %372 : vector<15x1xf32>
    %406 = arith.mulf %405, %358 : vector<15x1xf32>
    %cst_190 = arith.constant dense<0.000000e+00> : vector<1xf32>
    %407 = vector.multi_reduction <add>, %404, %cst_190 [0] : vector<15x1xf32> to vector<1xf32>
    %408 = vector.shape_cast %407 : vector<1xf32> to vector<1x1xf32>
    %409 = math.rsqrt %375 : vector<1x1xf32>
    %410 = arith.mulf %408, %409 : vector<1x1xf32>
    %411 = math.rsqrt %362 : vector<1x1xf32>
    %412 = arith.mulf %410, %411 : vector<1x1xf32>
    %413 = tpu.concatenate %406, %412 in 0 : vector<15x1xf32>, vector<1x1xf32> -> vector<16x1xf32>
    %414 = arith.mulf %363, %365 : vector<15x256xf32>
    %cst_191 = arith.constant dense<0.000000e+00> : vector<15xf32>
    %415 = vector.multi_reduction <add>, %414, %cst_191 [1] : vector<15x256xf32> to vector<15xf32>
    %416 = vector.shape_cast %415 : vector<15xf32> to vector<15x1xf32>
    %417 = arith.mulf %416, %372 : vector<15x1xf32>
    %418 = arith.mulf %417, %373 : vector<15x1xf32>
    %cst_192 = arith.constant dense<0.000000e+00> : vector<1xf32>
    %419 = vector.multi_reduction <add>, %416, %cst_192 [0] : vector<15x1xf32> to vector<1xf32>
    %420 = vector.shape_cast %419 : vector<1xf32> to vector<1x1xf32>
    %421 = math.rsqrt %375 : vector<1x1xf32>
    %422 = arith.mulf %420, %421 : vector<1x1xf32>
    %423 = math.rsqrt %377 : vector<1x1xf32>
    %424 = arith.mulf %422, %423 : vector<1x1xf32>
    %425 = tpu.concatenate %418, %424 in 0 : vector<15x1xf32>, vector<1x1xf32> -> vector<16x1xf32>
    %426 = tpu.concatenate %389, %401, %413, %425 in 1 : vector<16x1xf32>, vector<16x1xf32>, vector<16x1xf32>, vector<16x1xf32> -> vector<16x4xf32>
    %427 = tpu.concatenate %389, %413, %401, %425 in 1 : vector<16x1xf32>, vector<16x1xf32>, vector<16x1xf32>, vector<16x1xf32> -> vector<16x4xf32>
    %428 = vector.broadcast %347 : f32 to vector<16x4xf32>
    %429 = arith.mulf %428, %426 : vector<16x4xf32>
    %c0_193 = arith.constant 0 : index
    %c0_194 = arith.constant 0 : index
    %430 = vector.load %arg23[%c0_193, %c0_194] : memref<16x4xf32, #tpu.memory_space<vmem>>, vector<16x4xf32>
    tpu.vector_store %arg23[%c0_193, %c0_194], %429 {strides = array<i32>} : memref<16x4xf32, #tpu.memory_space<vmem>>, vector<16x4xf32>,
    %431 = vector.broadcast %347 : f32 to vector<16x4xf32>
    %432 = arith.mulf %431, %427 : vector<16x4xf32>
    %c0_195 = arith.constant 0 : index
    %c0_196 = arith.constant 0 : index
    %433 = vector.load %arg24[%c0_195, %c0_196] : memref<16x4xf32, #tpu.memory_space<vmem>>, vector<16x4xf32>
    tpu.vector_store %arg24[%c0_195, %c0_196], %432 {strides = array<i32>} : memref<16x4xf32, #tpu.memory_space<vmem>>, vector<16x4xf32>,
    return
  }
}

</mosaic_0001>

<bundles_post_ra>
// kernel: tpu_custom_call.1
= control target key start
LH: loop header
LB: loop body
LE: loop exit
PB: predicated region body
PF: predicated region fallthrough
CT: control target
= control target key end

     0   :  { %s8566_s0 = inlined_call_operand.vmem [shape: f32[32,64], index: 0, kind: input, shape index: {}]   ;;  %s8567_s1 = inlined_call_operand.hbm [shape: f32[2,16,256], index: 1, kind: input, shape index: {}]   ;;  %s8568_s2 = inlined_call_operand.<no memory space> [shape: f32[1,1], index: 2, kind: input, shape index: {}]   ;;  %s8569_s3 = inlined_call_operand.hbm [shape: bf16[64,128], index: 3, kind: input, shape index: {}]   ;;  %s8570_s4 = inlined_call_operand.hbm [shape: f32[32,128], index: 4, kind: input, shape index: {}]   ;;  %s8571_s5 = inlined_call_operand.hbm [shape: f32[32,32], index: 5, kind: input, shape index: {}]   ;;  %s8572_s6 = inlined_call_operand.hbm [shape: f32[2,2,128], index: 6, kind: input, shape index: {}]   ;;  %s8573_s7 = inlined_call_operand.hbm [shape: bf16[2,128,384], index: 7, kind: input, shape index: {}]   ;;  %s8574_s8 = inlined_call_operand.hbm [shape: f32[2,1,384], index: 8, kind: input, shape index: {}]   ;;  %s8575_s9 = inlined_call_operand.vmem [shape: bf16[2,128,128], index: 9, kind: input, shape index: {}]   ;;  %s8576_s10 = inlined_call_operand.hbm [shape: f32[2,1,128], index: 10, kind: input, shape index: {}]   ;;  %s8577_s11 = inlined_call_operand.hbm [shape: f32[2,2,128], index: 11, kind: input, shape index: {}]   ;;  %s8578_s12 = inlined_call_operand.hbm [shape: bf16[2,128,512], index: 12, kind: input, shape index: {}]   ;;  %s8579_s13 = inlined_call_operand.vmem [shape: f32[2,1,512], index: 13, kind: input, shape index: {}]   ;;  %s8580_s14 = inlined_call_operand.hbm [shape: bf16[2,512,128], index: 14, kind: input, shape index: {}]   ;;  %s8581_s15 = inlined_call_operand.vmem [shape: f32[2,1,128], index: 15, kind: input, shape index: {}]   ;;  %s8582_s16 = inlined_call_operand.vmem [shape: f32[2,128], index: 16, kind: input, shape index: {}]   ;;  %s8583_s17 = inlined_call_operand.hbm [shape: bf16[128,256], index: 17, kind: input, shape index: {}]   ;;  %s8584_s18 = inlined_call_operand.vmem [shape: f32[1,256], index: 18, kind: input, shape index: {}]   ;;  %s8585_s19 = inlined_call_operand.vmem [shape: bf16[256,16], index: 19, kind: input, shape index: {}]   ;;  %s8586_s20 = inlined_call_operand.vmem [shape: f32[1,16], index: 20, kind: input, shape index: {}]   ;;  %s8587_s21 = inlined_call_operand.hbm [shape: f32[2,16,256], index: 21, kind: output, shape index: {0}]   ;;  %s8588_s22 = inlined_call_operand.hbm [shape: f32[2,16], index: 22, kind: output, shape index: {1}]   ;;  %s8589_s23 = inlined_call_operand.vmem [shape: f32[16,4], index: 23, kind: output, shape index: {2}]   ;;  %s8590_s24 = inlined_call_operand.vmem [shape: f32[16,4], index: 24, kind: output, shape index: {3}]  }
   0x1   :  { %8610 = sst [smem:[#allocation35_spill]] %s8566_s0 }
   0x2   :  { %8611 = sst [smem:[#allocation36_spill]] %s8567_s1 }
   0x3   :  { %8612 = sst [smem:[#allocation37_spill]] %s8568_s2 }
   0x4   :  { %8613 = sst [smem:[#allocation38_spill]] %s8569_s3 }
   0x5   :  { %8614 = sst [smem:[#allocation39_spill]] %s8570_s4 }
   0x6   :  { %8615 = sst [smem:[#allocation40_spill]] %s8571_s5 }
   0x7   :  { %8616 = sst [smem:[#allocation41_spill]] %s8572_s6 }
   0x8   :  { %8617 = sst [smem:[#allocation42_spill]] %s8573_s7 }
   0x9   :  { %8618 = sst [smem:[#allocation43_spill]] %s8574_s8 }
   0xa   :  { %8619 = sst [smem:[#allocation44_spill]] %s8588_s22 }
   0xb   :  { %8620 = sst [smem:[#allocation45_spill]] %s8589_s23 }
   0xc   :  { %8621 = sst [smem:[#allocation46_spill]] %s8590_s24 }
   0xd   :  { %31 = vsyncpa [#allocation4], 0 }
   0xe   :  { %32 = vsyncpa [#allocation7], 0 }
   0xf   :  { %33 = vsyncpa [#allocation10], 0 }
  0x10   :  { %34 = vsyncpa [#allocation13], 0 }
  0x11   :  { %35 = vsyncpa [#allocation16], 0 }
  0x12   :  { %36 = vsyncpa [#allocation19], 0 }
  0x13   :  { %37 = vsyncpa [#allocation22], 0 }
  0x14   :  { %38 = vsyncpa [#allocation5], 0 }
  0x15   :  { %39 = vsyncpa [#allocation25], 0  ;;  %s7253_s5 = smov [#allocation6]   ;;  %s8622_s6 = sld [smem:[#allocation38_spill]] }
  0x16   :  { %s61_s26 = sshll.u32 %s7253_s5, 4  ;;  %s62_s26 = int_to_ptr.vmem [resolvable:$true] %s61_s26 }
  0x1b   :  { %s6927_s2 = scalar_lea.hbm %s8622_s6, 512 }
  0x1c   :  { %p6928_p0 = scmp.ne.s32.totalorder %s8622_s6, %s6927_s2  ;;  %p6931_p1 = scmp.lt.u32.totalorder %s6927_s2, %s8622_s6 }
  0x1e   :  { %p6933_p2 = pnand %p6931_p1, %p6928_p0 }
  0x20   :  { %6936 = shalt.err (!%p6933_p2)
}
  0x21   :  { %s6937_s3 = scalar_lea.vmem %s62_s26, 512  ;;  %p6942_p4 = scmp.lt.s32.totalorder %s62_s26, %s62_s26 }
  0x22   :  { %p6938_p3 = scmp.ne.s32.totalorder %s62_s26, %s6937_s3  ;;  %p6943_p5 = scmp.lt.s32.totalorder %s6937_s3, %s6937_s3 }
  0x24   :  { %p6944_p6 = por %p6943_p5, %p6942_p4 }
  0x26   :  { %p6945_p7 = pnand %p6944_p6, %p6938_p3 }
  0x28   :  { %6948 = shalt.err (!%p6945_p7)
}
  0x29   :  { %s8602_s25 = smov 64   ;;  %s8604_s8 = smov 4  }
  0x2a   :  { %67 = dma.hbm_to_vmem [thread:$0]  %s8622_s6, 512, %s62_s26, [#allocation7], %s8602_s25, %s8602_s25, %s8604_s8  }
  0x2b   :  { %s7256_s5 = smov [#allocation9]   ;;  %s7257_s28 = smov [#allocation12]  }
  0x2c   :  { %s85_s27 = sshll.u32 %s7256_s5, 4  ;;  %s109_s2 = sshll.u32 %s7257_s28, 4  ;;  %s86_s27 = int_to_ptr.vmem [resolvable:$true] %s85_s27  ;;  %s110_s2 = int_to_ptr.vmem [resolvable:$true] %s109_s2 }
  0x2d   :  { %s8623_s7 = sld [smem:[#allocation40_spill]] }
  0x33   :  { %s6949_s30 = scalar_lea.hbm %s8623_s7, 512 }
  0x34   :  { %p6950_p8 = scmp.ne.s32.totalorder %s8623_s7, %s6949_s30  ;;  %p6953_p9 = scmp.lt.u32.totalorder %s6949_s30, %s8623_s7 }
  0x36   :  { %p6955_p10 = pnand %p6953_p9, %p6950_p8 }
  0x38   :  { %6958 = shalt.err (!%p6955_p10)
}
  0x39   :  { %s6959_s26 = scalar_lea.vmem %s86_s27, 512  ;;  %p6964_p12 = scmp.lt.s32.totalorder %s86_s27, %s86_s27 }
  0x3a   :  { %p6960_p11 = scmp.ne.s32.totalorder %s86_s27, %s6959_s26  ;;  %p6965_p13 = scmp.lt.s32.totalorder %s6959_s26, %s6959_s26 }
  0x3c   :  { %p6966_p0 = por %p6965_p13, %p6964_p12 }
  0x3e   :  { %p6967_p1 = pnand %p6966_p0, %p6960_p11 }
  0x40   :  { %6970 = shalt.err (!%p6967_p1)
}
  0x41   :  { %s8609_s6 = smov 128   ;;  %s7259_s4 = smov 8  }
  0x42   :  { %91 = dma.hbm_to_vmem [thread:$0]  %s8623_s7, 512, %s86_s27, [#allocation10], %s8609_s6, %s8609_s6, %s7259_s4  }
  0x43   :  { %s8624_s5 = sld [smem:[#allocation42_spill]] }
  0x49   :  { %s6971_s28 = scalar_lea.hbm %s8624_s5, 6144 }
  0x4a   :  { %p6972_p2 = scmp.ne.s32.totalorder %s8624_s5, %s6971_s28  ;;  %p6975_p3 = scmp.lt.u32.totalorder %s6971_s28, %s8624_s5 }
  0x4c   :  { %p6977_p4 = pnand %p6975_p3, %p6972_p2 }
  0x4e   :  { %6980 = shalt.err (!%p6977_p4)
}
  0x4f   :  { %s6981_s26 = scalar_lea.vmem %s110_s2, 6144  ;;  %p6986_p6 = scmp.lt.s32.totalorder %s110_s2, %s110_s2 }
  0x50   :  { %p6982_p5 = scmp.ne.s32.totalorder %s110_s2, %s6981_s26  ;;  %p6987_p7 = scmp.lt.s32.totalorder %s6981_s26, %s6981_s26 }
  0x52   :  { %p6988_p8 = por %p6987_p7, %p6986_p6 }
  0x54   :  { %p6989_p9 = pnand %p6988_p8, %p6982_p5 }
  0x56   :  { %6992 = shalt.err (!%p6989_p9)
}
  0x57   :  { %s7260_s27 = smov 192   ;;  %s7261_s7 = smov 12  }
  0x58   :  { %115 = dma.hbm_to_vmem [thread:$0]  %s8624_s5, 6144, %s110_s2, [#allocation13], %s7260_s27, %s7260_s27, %s7261_s7  }
  0x59   :  { %s7262_s22 = smov [#allocation15]   ;;  %s6993_s0 = scalar_lea.hbm %s8576_s10, 32 }
  0x5a   :  { %s135_s23 = sshll.u32 %s7262_s22, 4  ;;  %p6994_p10 = scmp.ne.s32.totalorder %s8576_s10, %s6993_s0  ;;  %s136_s23 = int_to_ptr.vmem [resolvable:$true] %s135_s23 }
  0x5b   :  { %p6997_p11 = scmp.lt.u32.totalorder %s6993_s0, %s8576_s10 }
  0x5d   :  { %p6999_p12 = pnand %p6997_p11, %p6994_p10 }
  0x5f   :  { %7002 = shalt.err (!%p6999_p12)
}
  0x60   :  { %s7003_s8 = scalar_lea.vmem %s136_s23, 32  ;;  %p7008_p0 = scmp.lt.s32.totalorder %s136_s23, %s136_s23 }
  0x61   :  { %p7004_p13 = scmp.ne.s32.totalorder %s136_s23, %s7003_s8  ;;  %p7009_p1 = scmp.lt.s32.totalorder %s7003_s8, %s7003_s8 }
  0x63   :  { %p7010_p2 = por %p7009_p1, %p7008_p0 }
  0x65   :  { %p7011_p3 = pnand %p7010_p2, %p7004_p13 }
  0x67   :  { %7014 = shalt.err (!%p7011_p3)
}
  0x68   :  { %s8608_s2 = smov 16   ;;  %s8605_s5 = smov 1  }
  0x69   :  { %141 = dma.hbm_to_vmem [thread:$0]  %s8576_s10, 32, %s136_s23, [#allocation16], %s8608_s2, %s8608_s2, %s8605_s5  }
  0x6a   :  { %s7265_s25 = smov [#allocation18]   ;;  %s7266_s1 = smov [#allocation3]  }
  0x6b   :  { %s159_s24 = sshll.u32 %s7265_s25, 4  ;;  %s47_s22 = sshll.u32 %s7266_s1, 4  ;;  %s160_s24 = int_to_ptr.vmem [resolvable:$true] %s159_s24  ;;  %s48_s22 = int_to_ptr.vmem [resolvable:$true] %s47_s22 }
  0x6c   :  { %s7015_s8 = scalar_lea.hbm %s8578_s12, 8192 }
  0x6d   :  { %p7016_p4 = scmp.ne.s32.totalorder %s8578_s12, %s7015_s8  ;;  %p7019_p5 = scmp.lt.u32.totalorder %s7015_s8, %s8578_s12 }
  0x6f   :  { %p7021_p6 = pnand %p7019_p5, %p7016_p4 }
  0x71   :  { %7024 = shalt.err (!%p7021_p6)
}
  0x72   :  { %s7025_s10 = scalar_lea.vmem %s160_s24, 8192  ;;  %p7030_p8 = scmp.lt.s32.totalorder %s160_s24, %s160_s24 }
  0x73   :  { %p7026_p7 = scmp.ne.s32.totalorder %s160_s24, %s7025_s10  ;;  %p7031_p9 = scmp.lt.s32.totalorder %s7025_s10, %s7025_s10 }
  0x75   :  { %p7032_p10 = por %p7031_p9, %p7030_p8 }
  0x77   :  { %p7033_p11 = pnand %p7032_p10, %p7026_p7 }
  0x79   :  { %7036 = shalt.err (!%p7033_p11)
}
  0x7a   :  { %s8607_s23 = smov 256   ;;  %s8625_s29 = sld [smem:[#allocation36_spill]] }
  0x7b   :  { %165 = dma.hbm_to_vmem [thread:$0]  %s8578_s12, 8192, %s160_s24, [#allocation19], %s8607_s23, %s8607_s23, %s8608_s2  }
  0x80   :  { %s7037_s28 = scalar_lea.hbm %s8625_s29, 1024 }
  0x81   :  { %p7038_p12 = scmp.ne.s32.totalorder %s8625_s29, %s7037_s28  ;;  %p7041_p13 = scmp.lt.u32.totalorder %s7037_s28, %s8625_s29 }
  0x83   :  { %p7043_p0 = pnand %p7041_p13, %p7038_p12 }
  0x85   :  { %7046 = shalt.err (!%p7043_p0)
}
  0x86   :  { %s7047_s26 = scalar_lea.vmem %s48_s22, 1024  ;;  %p7052_p2 = scmp.lt.s32.totalorder %s48_s22, %s48_s22 }
  0x87   :  { %p7048_p1 = scmp.ne.s32.totalorder %s48_s22, %s7047_s26  ;;  %p7053_p3 = scmp.lt.s32.totalorder %s7047_s26, %s7047_s26 }
  0x89   :  { %p7054_p4 = por %p7053_p3, %p7052_p2 }
  0x8b   :  { %p7055_p5 = pnand %p7054_p4, %p7048_p1 }
  0x8d   :  { %7058 = shalt.err (!%p7055_p5)
}
  0x8e   :  { %53 = dma.hbm_to_vmem [thread:$0]  %s8625_s29, 1024, %s48_s22, [#allocation4], %s8607_s23, %s8607_s23, %s8608_s2  }
  0x8f   :  { %s7268_s10 = smov [#allocation8]   ;;  %s7269_s7 = smov [#allocation11]  }
  0x90   :  { %s73_s27 = sshll.u32 %s7268_s10, 4  ;;  %s97_s25 = sshll.u32 %s7269_s7, 4  ;;  %s74_s27 = int_to_ptr.vmem [resolvable:$true] %s73_s27  ;;  %s98_s25 = int_to_ptr.vmem [resolvable:$true] %s97_s25 }
  0x91   :  { %s8626_s8 = sld [smem:[#allocation39_spill]] }
  0x97   :  { %s7059_s0 = scalar_lea.hbm %s8626_s8, 512 }
  0x98   :  { %p7060_p6 = scmp.ne.s32.totalorder %s8626_s8, %s7059_s0  ;;  %p7063_p7 = scmp.lt.u32.totalorder %s7059_s0, %s8626_s8 }
  0x9a   :  { %p7065_p8 = pnand %p7063_p7, %p7060_p6 }
  0x9c   :  { %7068 = shalt.err (!%p7065_p8)
}
  0x9d   :  { %s7069_s22 = scalar_lea.vmem %s74_s27, 512  ;;  %p7074_p10 = scmp.lt.s32.totalorder %s74_s27, %s74_s27 }
  0x9e   :  { %p7070_p9 = scmp.ne.s32.totalorder %s74_s27, %s7069_s22  ;;  %p7075_p11 = scmp.lt.s32.totalorder %s7069_s22, %s7069_s22 }
  0xa0   :  { %p7076_p12 = por %p7075_p11, %p7074_p10 }
  0xa2   :  { %p7077_p13 = pnand %p7076_p12, %p7070_p9 }
  0xa4   :  { %7080 = shalt.err (!%p7077_p13)
}
  0xa5   :  { %79 = dma.hbm_to_vmem [thread:$0]  %s8626_s8, 512, %s74_s27, [#allocation7], %s8609_s6, %s8609_s6, %s7259_s4  }
  0xa6   :  { %s8627_s10 = sld [smem:[#allocation41_spill]] }
  0xac   :  { %s7081_s7 = scalar_lea.hbm %s8627_s10, 64 }
  0xad   :  { %p7082_p0 = scmp.ne.s32.totalorder %s8627_s10, %s7081_s7  ;;  %p7085_p1 = scmp.lt.u32.totalorder %s7081_s7, %s8627_s10 }
  0xaf   :  { %p7087_p2 = pnand %p7085_p1, %p7082_p0 }
  0xb1   :  { %7090 = shalt.err (!%p7087_p2)
}
  0xb2   :  { %s7091_s3 = scalar_lea.vmem %s98_s25, 64  ;;  %p7096_p4 = scmp.lt.s32.totalorder %s98_s25, %s98_s25 }
  0xb3   :  { %p7092_p3 = scmp.ne.s32.totalorder %s98_s25, %s7091_s3  ;;  %p7097_p5 = scmp.lt.s32.totalorder %s7091_s3, %s7091_s3 }
  0xb5   :  { %p7098_p6 = por %p7097_p5, %p7096_p4 }
  0xb7   :  { %p7099_p7 = pnand %p7098_p6, %p7092_p3 }
  0xb9   :  { %7102 = shalt.err (!%p7099_p7)
}
  0xba   :  { %s7270_s27 = smov 32   ;;  %s7271_s8 = smov 2  }
  0xbb   :  { %103 = dma.hbm_to_vmem [thread:$0]  %s8627_s10, 64, %s98_s25, [#allocation10], %s7270_s27, %s7270_s27, %s7271_s8  }
  0xbc   :  { %s7272_s29 = smov [#allocation14]   ;;  %s8628_s7 = sld [smem:[#allocation43_spill]] }
  0xbd   :  { %s121_s12 = sshll.u32 %s7272_s29, 4  ;;  %s122_s12 = int_to_ptr.vmem [resolvable:$true] %s121_s12 }
  0xc2   :  { %s7103_s1 = scalar_lea.hbm %s8628_s7, 96 }
  0xc3   :  { %p7104_p8 = scmp.ne.s32.totalorder %s8628_s7, %s7103_s1  ;;  %p7107_p9 = scmp.lt.u32.totalorder %s7103_s1, %s8628_s7 }
  0xc5   :  { %p7109_p10 = pnand %p7107_p9, %p7104_p8 }
  0xc7   :  { %7112 = shalt.err (!%p7109_p10)
}
  0xc8   :  { %s7113_s23 = scalar_lea.vmem %s122_s12, 96  ;;  %p7118_p12 = scmp.lt.s32.totalorder %s122_s12, %s122_s12 }
  0xc9   :  { %p7114_p11 = scmp.ne.s32.totalorder %s122_s12, %s7113_s23  ;;  %p7119_p13 = scmp.lt.s32.totalorder %s7113_s23, %s7113_s23 }
  0xcb   :  { %p7120_p0 = por %p7119_p13, %p7118_p12 }
  0xcd   :  { %p7121_p1 = pnand %p7120_p0, %p7114_p11 }
  0xcf   :  { %7124 = shalt.err (!%p7121_p1)
}
  0xd0   :  { %s7273_s25 = smov 48   ;;  %s7274_s10 = smov 3  }
  0xd1   :  { %127 = dma.hbm_to_vmem [thread:$0]  %s8628_s7, 96, %s122_s12, [#allocation13], %s7273_s25, %s7273_s25, %s7274_s10  }
  0xd2   :  { %s7275_s29 = smov [#allocation17]   ;;  %s7276_s5 = smov [#allocation20]  }
  0xd3   :  { %s147_s24 = sshll.u32 %s7275_s29, 4  ;;  %s173_s1 = sshll.u32 %s7276_s5, 4  ;;  %s148_s24 = int_to_ptr.vmem [resolvable:$true] %s147_s24  ;;  %s7537_s1 = int_to_ptr.vmem [resolvable:$true] %s173_s1 }
  0xd4   :  { %s7125_s23 = scalar_lea.hbm %s8577_s11, 64 }
  0xd5   :  { %p7126_p2 = scmp.ne.s32.totalorder %s8577_s11, %s7125_s23  ;;  %p7129_p3 = scmp.lt.u32.totalorder %s7125_s23, %s8577_s11 }
  0xd7   :  { %p7131_p4 = pnand %p7129_p3, %p7126_p2 }
  0xd9   :  { %7134 = shalt.err (!%p7131_p4)
}
  0xda   :  { %s7135_s12 = scalar_lea.vmem %s148_s24, 64  ;;  %p7140_p6 = scmp.lt.s32.totalorder %s148_s24, %s148_s24 }
  0xdb   :  { %p7136_p5 = scmp.ne.s32.totalorder %s148_s24, %s7135_s12  ;;  %p7141_p7 = scmp.lt.s32.totalorder %s7135_s12, %s7135_s12 }
  0xdd   :  { %p7142_p8 = por %p7141_p7, %p7140_p6 }
  0xdf   :  { %p7143_p9 = pnand %p7142_p8, %p7136_p5 }
  0xe1   :  { %7146 = shalt.err (!%p7143_p9)
}
  0xe2   :  { %153 = dma.hbm_to_vmem [thread:$0]  %s8577_s11, 64, %s148_s24, [#allocation16], %s7270_s27, %s7270_s27, %s7271_s8  }
  0xe3   :  { %s7147_s6 = scalar_lea.hbm %s8580_s14, 8192 }
  0xe4   :  { %p7148_p10 = scmp.ne.s32.totalorder %s8580_s14, %s7147_s6  ;;  %p7151_p11 = scmp.lt.u32.totalorder %s7147_s6, %s8580_s14 }
  0xe6   :  { %p7153_p12 = pnand %p7151_p11, %p7148_p10 }
  0xe8   :  { %7156 = shalt.err (!%p7153_p12)
}
  0xe9   :  { %s7157_s0 = scalar_lea.vmem %s7537_s1, 8192  ;;  %p7162_p0 = scmp.lt.s32.totalorder %s7537_s1, %s7537_s1 }
  0xea   :  { %p7158_p13 = scmp.ne.s32.totalorder %s7537_s1, %s7157_s0  ;;  %p7163_p1 = scmp.lt.s32.totalorder %s7157_s0, %s7157_s0 }
  0xec   :  { %p7164_p2 = por %p7163_p1, %p7162_p0 }
  0xee   :  { %p7165_p3 = pnand %p7164_p2, %p7158_p13 }
  0xf0   :  { %7168 = shalt.err (!%p7165_p3)
}
  0xf1   :  { %s8629_s11 = smov 4   ;;  %s8630_s24 = smov 64  }
  0xf2   :  { %179 = dma.hbm_to_vmem [thread:$0]  %s8580_s14, 8192, %s7537_s1, [#allocation19], %s8630_s24, %s8630_s24, %s8629_s11  }
  0xf3   :  { %s7277_s3 = smov [#allocation21]   ;;  %s7169_s26 = scalar_lea.hbm %s8583_s17, 2048 }
  0xf4   :  { %s189_s12 = sshll.u32 %s7277_s3, 4  ;;  %p7170_p4 = scmp.ne.s32.totalorder %s8583_s17, %s7169_s26  ;;  %s190_s12 = int_to_ptr.vmem [resolvable:$true] %s189_s12 }
  0xf5   :  { %p7173_p5 = scmp.lt.u32.totalorder %s7169_s26, %s8583_s17 }
  0xf7   :  { %p7175_p6 = pnand %p7173_p5, %p7170_p4 }
  0xf9   :  { %7178 = shalt.err (!%p7175_p6)
}
  0xfa   :  { %s7179_s5 = scalar_lea.vmem %s190_s12, 2048  ;;  %p7184_p8 = scmp.lt.s32.totalorder %s190_s12, %s190_s12 }
  0xfb   :  { %p7180_p7 = scmp.ne.s32.totalorder %s190_s12, %s7179_s5  ;;  %p7185_p9 = scmp.lt.s32.totalorder %s7179_s5, %s7179_s5 }
  0xfd   :  { %p7186_p10 = por %p7185_p9, %p7184_p8 }
  0xff   :  { %p7187_p11 = pnand %p7186_p10, %p7180_p7 }
 0x101   :  { %7190 = shalt.err (!%p7187_p11)
}
 0x102   :  { %s8631_s14 = smov 128  }
 0x103   :  { %195 = dma.hbm_to_vmem [thread:$0]  %s8583_s17, 2048, %s190_s12, [#allocation22], %s8631_s14, %s8631_s14, %s7259_s4  }
 0x104   :  { %7235 = dma.done.wait [#allocation4], 1024  }
 0x105   :  { %7236 = vsyncadd [#allocation4], 4294966272 }
 0x106   :  { %7237 = dma.done.wait [#allocation7], 1024  }
 0x107   :  { %7238 = vsyncadd [#allocation7], 4294966272 }
 0x108   :  { %7239 = dma.done.wait [#allocation10], 576  }
 0x109   :  { %7240 = vsyncadd [#allocation10], 4294966720 }
 0x10a   :  { %7241 = dma.done.wait [#allocation13], 6240  }
 0x10b   :  { %7242 = vsyncadd [#allocation13], 4294961056 }
 0x10c   :  { %7243 = dma.done.wait [#allocation16], 96  }
 0x10d   :  { %7244 = vsyncadd [#allocation16], 4294967200 }
 0x10e   :  { %7245 = dma.done.wait [#allocation19], 16384  }
 0x10f   :  { %7246 = vsyncadd [#allocation19], 4294950912 }
 0x110   :  { %7247 = dma.done.wait [#allocation22], 2048  }
 0x111   :  { %7248 = vsyncadd [#allocation22], 4294965248  ;;  %v6359_v0 = vld [vmem:[#allocation6] sm:$0xff]   ;;  %v6360_v1 = vld [vmem:[#allocation6 + $0x8] sm:$0xff]   ;;  %s8632_s0 = sld [smem:[#allocation35_spill]]  ;;  %vm281_vm0 = vcmask 523264   ;;  %v395_v59 = vlaneseq }
 0x112   :  { %6046 = vmatprep.subr.bf16.mxu0 %v6359_v0  ;;  %v6361_v2 = vld [vmem:[#allocation6 + $0x10] sm:$0xff]   ;;  %v6362_v8 = vld [vmem:[#allocation6 + $0x18] sm:$0xff]   ;;  %v6367_v9 = vld [vmem:[#allocation12 + $0x1c] ss:$12 sps:$4 sm:$0xff]   ;;  %v7278_v34 = vmov 0   ;;  %vm646_vm1 = vcmask 261120  }
 0x113   :  { %6047 = vmatpush3.bf16.msra.mxu0 %v6359_v0  ;;  %v6363_v6 = vld [vmem:[#allocation12 + $0x4] ss:$12 sps:$4 sm:$0xff]   ;;  %v6365_v7 = vld [vmem:[#allocation12] ss:$12 sps:$4 sm:$0xff]   ;;  %v6366_v14 = vld [vmem:[#allocation12 + $0x8] ss:$12 sps:$4 sm:$0xff]   ;;  %570 = vmatprep.mubr.bf16.mxu1 %v7278_v34 }
 0x114   :  { %6048 = vmatprep.subr.bf16.mxu0 %v6360_v1  ;;  %538 = vmatprep.subr.bf16.mxu1 %v6363_v6  ;;  %v6369_v11 = vld [vmem:[#allocation12 + $0x18] ss:$12 sps:$4 sm:$0xff]   ;;  %v6371_v12 = vld [vmem:[#allocation12 + $0x34] ss:$12 sps:$4 sm:$0xff]   ;;  %v6373_v15 = vld [vmem:[#allocation12 + $0x30] ss:$12 sps:$4 sm:$0xff]  }
 0x115   :  { %539 = vmatpush1.bf16.msra.mxu1 %v6365_v7  ;;  %v6375_v17 = vld [vmem:[#allocation12 + $0x4c] ss:$12 sps:$4 sm:$0xff]   ;;  %v6377_v19 = vld [vmem:[#allocation12 + $0x48] ss:$12 sps:$4 sm:$0xff]   ;;  %v6379_v20 = vld [vmem:[#allocation12 + $0x64] ss:$12 sps:$4 sm:$0xff]  }
 0x116   :  { %540 = vmatprep.subr.bf16.mxu1 %v6367_v9  ;;  %v6370_v18 = vld [vmem:[#allocation12 + $0x20] ss:$12 sps:$4 sm:$0xff]   ;;  %v6374_v21 = vld [vmem:[#allocation12 + $0x38] ss:$12 sps:$4 sm:$0xff]   ;;  %v6378_v23 = vld [vmem:[#allocation12 + $0x50] ss:$12 sps:$4 sm:$0xff]  }
 0x117   :  { %v239_v3 = vld [vmem:[%s8632_s0] sm:$0xff]  ;;  %v240_v4 = vld [vmem:[%s8632_s0 + $0x8] sm:$0xff]  ;;  %6049 = vmatpush3.bf16.msra.mxu0 %v6360_v1  ;;  %v241_v10 = vld [vmem:[%s8632_s0 + $0x10] sm:$0xff]  ;;  %v7617_v60 = vshrl.u32 %v395_v59, 7  ;;  %s7279_s25 = smov 96   ;;  %vm5054_vm2 = vcmask 1047553  }
 0x118   :  { %v243_v5 = vpack.c.bf16 %v240_v4, %v239_v3  ;;  %6050 = vmatprep.subr.bf16.mxu0 %v6361_v2  ;;  %v242_v13 = vld [vmem:[%s8632_s0 + $0x18] sm:$0xff]  ;;  %v6381_v22 = vld [vmem:[#allocation12 + $0x60] ss:$12 sps:$4 sm:$0xff]   ;;  %v6383_v25 = vld [vmem:[#allocation12 + $0x7c] ss:$12 sps:$4 sm:$0xff]   ;;  %vm5081_vm3 = vcmask 1046528  }
 0x119   :  { %541 = vmatpush1.bf16.msra.mxu1 %v6369_v11  ;;  %v244_v16 = vpack.c.bf16 %v242_v13, %v241_v10  ;;  %v6382_v24 = vld [vmem:[#allocation12 + $0x68] ss:$12 sps:$4 sm:$0xff]   ;;  %v6385_v26 = vld [vmem:[#allocation12 + $0x78] ss:$12 sps:$4 sm:$0xff]   ;;  %v6386_v27 = vld [vmem:[#allocation12 + $0x80] ss:$12 sps:$4 sm:$0xff]  }
 0x11a   :  { %6054 = vmatprep.mubr.msk.bf16.mxu0 %vm281_vm0, %v243_v5  ;;  %542 = vmatprep.subr.bf16.mxu1 %v6371_v12  ;;  %v6387_v28 = vld [vmem:[#allocation12 + $0x94] ss:$12 sps:$4 sm:$0xff]   ;;  %v6389_v29 = vld [vmem:[#allocation12 + $0x90] ss:$12 sps:$4 sm:$0xff]   ;;  %v6390_v30 = vld [vmem:[#allocation12 + $0x98] ss:$12 sps:$4 sm:$0xff]  }
 0x11b   :  { %6051 = vmatpush3.bf16.msra.mxu0 %v6361_v2  ;;  %v6391_v31 = vld [vmem:[#allocation12 + $0xac] ss:$12 sps:$4 sm:$0xff]   ;;  %v6393_v32 = vld [vmem:[#allocation12 + $0xa8] ss:$12 sps:$4 sm:$0xff]   ;;  %v6394_v33 = vld [vmem:[#allocation12 + $0xb0] ss:$12 sps:$4 sm:$0xff]  }
 0x11c   :  { %6052 = vmatprep.subr.bf16.mxu0 %v6362_v8  ;;  %v255_v35 = vld [vmem:[#allocation8 + $0x10] sm:$0xff]  ;;  %v253_v36 = vld [vmem:[#allocation8] sm:$0xff]  ;;  %v256_v38 = vld [vmem:[#allocation8 + $0x18] sm:$0xff]  ;;  %v7620_v61 = vsub.s32 0, %v7617_v60  ;;  %v7623_v63 = vsub.s32 1, %v7617_v60  ;;  %v7626_v0 = vsub.s32 2, %v7617_v60 }
 0x11d   :  { %543 = vmatpush1.bf16.msra.mxu1 %v6373_v15  ;;  %v5447_v40 = vld [vmem:[#allocation11] ss:$0 sm:$0xff]  ;;  %v254_v42 = vld [vmem:[#allocation8 + $0x8] sm:$0xff]  ;;  %v5448_v50 = vld [vmem:[#allocation11 + $0x1] ss:$0 sm:$0xff] }
 0x11e   :  { %544 = vmatprep.subr.bf16.mxu1 %v6375_v17  ;;  %v393_v62 = vld [vmem:[#allocation14] sm:$0x7] }
 0x11f   :  { %6053 = vmatpush3.bf16.msra.mxu0 %v6362_v8  ;;  %v398_v1 = vrot.slane %v393_v62, %v7620_v61  ;;  %v402_v3 = vrot.slane %v393_v62, %v7623_v63  ;;  %v406_v4 = vrot.slane %v393_v62, %v7626_v0 }
 0x120   :  { %6058 = vmatprep.subr.bf16.mxu0 %v6366_v14 }
 0x121   :  { %545 = vmatpush1.bf16.msra.mxu1 %v6377_v19 }
 0x122   :  { %6055 = vmatmul.mubr.msk.bf16.vlgmr.msra.gmra.mrb[0].mxu0 %vm281_vm0, %v244_v16  ;;  %546 = vmatprep.subr.bf16.mxu1 %v6379_v20 }
 0x123   :  { %6059 = vmatpush3.bf16.msra.mxu0 %v6366_v14 }
 0x124   :  { %6060 = vmatprep.subr.bf16.mxu0 %v6370_v18 }
 0x125   :  { %547 = vmatpush1.bf16.msra.mxu1 %v6381_v22 }
 0x126   :  { %548 = vmatprep.subr.bf16.mxu1 %v6383_v25 }
 0x127   :  { %6061 = vmatpush3.bf16.msra.mxu0 %v6370_v18 }
 0x128   :  { %6062 = vmatprep.subr.bf16.mxu0 %v6374_v21 }
 0x129   :  { %549 = vmatpush1.bf16.msra.mxu1 %v6385_v26 }
 0x12a   :  { %550 = vmatprep.subr.bf16.mxu1 %v6387_v28 }
 0x12b   :  { %6063 = vmatpush3.bf16.msra.mxu0 %v6374_v21 }
 0x12c   :  { %6064 = vmatprep.subr.bf16.mxu0 %v6378_v23 }
 0x12d   :  { %551 = vmatpush1.bf16.msra.mxu1 %v6389_v29 }
 0x12e   :  { %552 = vmatprep.subr.bf16.mxu1 %v6391_v31 }
 0x12f   :  { %6065 = vmatpush3.bf16.msra.mxu0 %v6378_v23 }
 0x130   :  { %6066 = vmatprep.subr.bf16.mxu0 %v6382_v24 }
 0x131   :  { %553 = vmatpush1.bf16.msra.mxu1 %v6393_v32 }
 0x133   :  { %6067 = vmatpush3.bf16.msra.mxu0 %v6382_v24 }
 0x134   :  { %6068 = vmatprep.subr.bf16.mxu0 %v6386_v27 }
 0x137   :  { %6069 = vmatpush3.bf16.msra.mxu0 %v6386_v27 }
 0x138   :  { %6070 = vmatprep.subr.bf16.mxu0 %v6390_v30 }
 0x13b   :  { %6071 = vmatpush3.bf16.msra.mxu0 %v6390_v30 }
 0x13c   :  { %6072 = vmatprep.subr.bf16.mxu0 %v6394_v33 }
 0x13f   :  { %6073 = vmatpush3.bf16.msra.mxu0 %v6394_v33 }
 0x1f5   :  { %v6056_v37 = vpop.f32.mrb[0].mxu0 }
 0x1f6   :  { %v7604_v39 = vadd.f32 %v6056_v37, %v255_v35  ;;  %v322_v41 = vpop.f32.mrb[1].mxu0  ;;  %v7659_v37 = vld [vmem:[#allocation9 + $0x10] sm:$0xff] }
 0x1f7   :  { %v7606_v43 = vadd.f32 %v322_v41, %v253_v36  ;;  %v6057_v44 = vpop.f32.mrb[2].mxu0  ;;  %v7663_v41 = vld [vmem:[#allocation9 + $0x18] sm:$0xff] }
 0x1f8   :  { %v7608_v45 = vadd.f32 %v6057_v44, %v256_v38  ;;  %v325_v46 = vpop.f32.mrb[3].mxu0  ;;  %v348_v49 = vmul.f32 %v5447_v40, %v7604_v39  ;;  %v7661_v38 = vld [vmem:[#allocation9] sm:$0xff] }
 0x1f9   :  { %v346_v47 = vmul.f32 %v5447_v40, %v7606_v43  ;;  %v7611_v48 = vadd.f32 %v325_v46, %v254_v42  ;;  %v7666_v46 = vld [vmem:[#allocation9 + $0x8] sm:$0xff] }
 0x1fa   :  { %v349_v51 = vmul.f32 %v5447_v40, %v7608_v45  ;;  %v357_v56 = vadd.f32 %v5448_v50, %v348_v49 }
 0x1fb   :  { %v347_v52 = vmul.f32 %v5447_v40, %v7611_v48  ;;  %v355_v54 = vadd.f32 %v5448_v50, %v346_v47 }
 0x1fc   :  { %v358_v53 = vadd.f32 %v5448_v50, %v349_v51 }
 0x1fd   :  { %v356_v55 = vadd.f32 %v5448_v50, %v347_v52 }
 0x1fe   :  { %v360_v58 = vpack.c.bf16 %v358_v53, %v357_v56 }
 0x1ff   :  { %v359_v57 = vpack.c.bf16 %v356_v55, %v355_v54 }
 0x201   :  { %571 = vmatmul.mubr.bf16.vlgmr.msra.gmra.mrb[0].mxu1 %v359_v57  ;;  %6074 = vmatprep.mubr.bf16.mxu0 %v359_v57 }
 0x202   :  { %6075 = vmatmul.mubr.bf16.vlgmr.msra.gmra.mrb[4].mxu0 %v360_v58  ;;  %580 = vmatprep.mubr.bf16.mxu1 %v7278_v34 }
 0x209   :  { %581 = vmatmul.mubr.bf16.gmra.mrb[4].mxu1 %v360_v58 }
 0x2d4   :  { %v572_v2 = vpop.f32.mrb[0].mxu1 }
 0x2d5   :  { %v574_v5 = vpop.f32.mrb[1].mxu1  ;;  %v6076_v6 = vpop.f32.mrb[4].mxu0  ;;  %v573_v9 = vadd.f32 %v572_v2, %v398_v1 }
 0x2d6   :  { %v576_v7 = vpop.f32.mrb[2].mxu1  ;;  %v625_v8 = vpop.f32.mrb[5].mxu0  ;;  %v575_v13 = vadd.f32 %v574_v5, %v402_v3  ;;  %v634_v14 = vadd.f32 %v6076_v6, %v406_v4 }
 0x2d7   :  { %v577_v10 = vadd.f32 %v576_v7, %v398_v1  ;;  %v578_v11 = vpop.f32.mrb[3].mxu1  ;;  %v6077_v12 = vpop.f32.mrb[6].mxu0  ;;  %v626_v19 = vadd.f32 %v625_v8, %v406_v4 }
 0x2d8   :  { %v579_v15 = vadd.f32 %v578_v11, %v402_v3  ;;  %v637_v16 = vadd.f32 %v6077_v12, %v406_v4  ;;  %v628_v17 = vpop.f32.mrb[7].mxu0 }
 0x2d9   :  { %v7631_v18 = vpack.c.bf16 %v577_v10, %v573_v9  ;;  %v629_v20 = vadd.f32 %v628_v17, %v406_v4 }
 0x2da   :  { %v7633_v21 = vpack.c.bf16 %v579_v15, %v575_v13  ;;  %v7635_v22 = vpack.c.bf16 %v637_v16, %v634_v14 }
 0x2db   :  { %v7637_v23 = vpack.c.bf16 %v629_v20, %v626_v19  ;;  %6082 = vmatprep.mubr.msk.bf16.mxu1 %vm646_vm1, %v7631_v18 }
 0x2dc   :  { %v582_v24 = vpop.f32.mrb[4].mxu1  ;;  %6314 = vmatprep.subr.msk.bf16.mxu1 %vm646_vm1, %v7633_v21  ;;  %v654_v25 = vsel %vm646_vm1, %v7633_v21, 0 }
 0x2dd   :  { %v584_v26 = vpop.f32.mrb[5].mxu1  ;;  %6079 = vmatpush3.bf16.xpose.msra.mxu1 %v654_v25  ;;  %v583_v28 = vadd.f32 %v582_v24, %v398_v1 }
 0x2de   :  { %v586_v27 = vpop.f32.mrb[6].mxu1  ;;  %v585_v31 = vadd.f32 %v584_v26, %v402_v3 }
 0x2df   :  { %v587_v29 = vadd.f32 %v586_v27, %v398_v1  ;;  %v588_v30 = vpop.f32.mrb[7].mxu1 }
 0x2e0   :  { %v589_v32 = vadd.f32 %v588_v30, %v402_v3 }
 0x2e1   :  { %v7645_v33 = vpack.c.bf16 %v587_v29, %v583_v28 }
 0x2e2   :  { %v7647_v35 = vpack.c.bf16 %v589_v32, %v585_v31 }
 0x2e4   :  { %6315 = vmatprep.subr.msk.bf16.mxu1 %vm646_vm1, %v7647_v35  ;;  %v657_v36 = vsel %vm646_vm1, %v7647_v35, 0 }
 0x2e5   :  { %6081 = vmatpush3.bf16.xpose.msra.mxu1 %v657_v36 }
 0x2e6   :  { %6086 = vmatprep.subr.bf16.mxu1 %v7637_v23 }
 0x2ec   :  { %6083 = vmatmul.mubr.msk.bf16.vlgmr.msra.gmra.mrb[8].mxu1 %vm646_vm1, %v7645_v33 }
 0x2ed   :  { %6087 = vmatpush3.bf16.msra.mxu1 %v7637_v23 }
 0x2ee   :  { %6088 = vmatprep.subr.bf16.mxu1 %v7635_v22 }
 0x2f1   :  { %6089 = vmatpush3.bf16.msra.mxu1 %v7635_v22 }
 0x3bf   :  { %v6084_v40 = vpop.f32.mrb[8].mxu1 }
 0x3c0   :  { %v702_v42 = vadd.f32 %v6084_v40, %v7659_v37  ;;  %v693_v44 = vpop.f32.mrb[9].mxu1 }
 0x3c1   :  { %v694_v47 = vadd.f32 %v693_v44, %v7661_v38  ;;  %v6085_v49 = vpop.f32.mrb[10].mxu1 }
 0x3c2   :  { %v705_v50 = vadd.f32 %v6085_v49, %v7663_v41  ;;  %v696_v51 = vpop.f32.mrb[11].mxu1  ;;  %v714_v52 = vsel %vm646_vm1, %v702_v42, -inf }
 0x3c3   :  { %v697_v53 = vadd.f32 %v696_v51, %v7666_v46  ;;  %715 = vmax.xlane.f32.xlu1 %v714_v52  ;;  %v708_v54 = vsel %vm646_vm1, %v694_v47, -inf }
 0x3c4   :  { %709 = vmax.xlane.f32.xlu0 %v708_v54  ;;  %v717_v55 = vsel %vm646_vm1, %v705_v50, -inf }
 0x3c5   :  { %v711_v56 = vsel %vm646_vm1, %v697_v53, -inf }
 0x3c7   :  { %718 = vmax.xlane.f32.xlu1 %v717_v55 }
 0x3c8   :  { %712 = vmax.xlane.f32.xlu0 %v711_v56 }
 0x450   :  { %v716_v57 = vpop.xlane.xlu1 %715 }
 0x451   :  { %v722_v58 = vsub.f32 %v702_v42, %v716_v57  ;;  %v710_v59 = vpop.xlane.xlu0 %709 }
 0x452   :  { %v720_v62 = vsub.f32 %v694_v47, %v710_v59 }
 0x453   :  { %v728_v1 = vmul.f32 1.442695, %v722_v58 }
 0x454   :  { %v724_v2 = vmul.f32 1.442695, %v720_v62  ;;  %v719_v3 = vpop.xlane.xlu1 %718 }
 0x455   :  { %6643 = vpow2.f32 %v728_v1  ;;  %v723_v4 = vsub.f32 %v705_v50, %v719_v3  ;;  %v713_v5 = vpop.xlane.xlu0 %712 }
 0x456   :  { %v721_v6 = vsub.f32 %v697_v53, %v713_v5  ;;  %6645 = vpow2.f32 %v724_v2 }
 0x457   :  { %v730_v7 = vmul.f32 1.442695, %v723_v4 }
 0x458   :  { %v726_v8 = vmul.f32 1.442695, %v721_v6 }
 0x45a   :  { %6647 = vpow2.f32 %v726_v8 }
 0x45b   :  { %6649 = vpow2.f32 %v730_v7 }
 0x45f   :  { %v6644_v9 = vpop.eup %6643 }
 0x460   :  { %v738_v10 = vsel %vm646_vm1, %v6644_v9, 0.0  ;;  %v6646_v11 = vpop.eup %6645 }
 0x461   :  { %739 = vadd.xlane.f32.xlu0 %v738_v10  ;;  %v732_v13 = vsel %vm646_vm1, %v6646_v11, 0.0 }
 0x464   :  { %v6648_v12 = vpop.eup %6647 }
 0x465   :  { %733 = vadd.xlane.f32.xlu0 %v732_v13  ;;  %v735_v14 = vsel %vm646_vm1, %v6648_v12, 0.0  ;;  %v6650_v15 = vpop.eup %6649 }
 0x466   :  { %736 = vadd.xlane.f32.xlu1 %v735_v14  ;;  %v741_v16 = vsel %vm646_vm1, %v6650_v15, 0.0 }
 0x46a   :  { %742 = vadd.xlane.f32.xlu1 %v741_v16 }
 0x47b   :  { %823 = vrot.lane.b32.xlu0 %v7633_v21, %s7279_s25  ;;  %825 = vrot.lane.b32.xlu1 %v7647_v35, %s7279_s25 }
 0x47f   :  { %1141 = vrot.lane.b32.xlu0 %v7633_v21, %s8630_s24  ;;  %817 = vrot.lane.b32.xlu1 %v7631_v18, %s7279_s25 }
 0x483   :  { %1137 = vrot.lane.b32.xlu0 %v7631_v18, %s8630_s24  ;;  %819 = vrot.lane.b32.xlu1 %v7645_v33, %s7279_s25 }
 0x487   :  { %1143 = vrot.lane.b32.xlu1 %v7647_v35, %s8630_s24 }
 0x48b   :  { %1139 = vrot.lane.b32.xlu1 %v7645_v33, %s8630_s24 }
 0x4ee   :  { %v740_v17 = vpop.xlane.xlu0 %739 }
 0x4f2   :  { %v734_v19 = vpop.xlane.xlu0 %733 }
 0x4f3   :  { %6651 = vrcp.f32 %v734_v19  ;;  %v737_v20 = vpop.xlane.xlu1 %736 }
 0x4f4   :  { %6653 = vrcp.f32 %v737_v20 }
 0x4f5   :  { %6655 = vrcp.f32 %v740_v17 }
 0x4f6   :  { %v824_v24 = vpop.permute.xlu0 %823 }
 0x4f7   :  { %v743_v25 = vpop.xlane.xlu1 %742  ;;  %6316 = vmatprep.subr.msk.bf16.mxu1 %vm646_vm1, %v824_v24  ;;  %v834_v49 = vsel %vm646_vm1, %v824_v24, 0 }
 0x4f8   :  { %6657 = vrcp.f32 %v743_v25 }
 0x4fa   :  { %v1142_v51 = vpop.permute.xlu0 %1141 }
 0x4fb   :  { %v826_v31 = vpop.permute.xlu1 %825  ;;  %v1152_v54 = vsel %vm646_vm1, %v1142_v51, 0 }
 0x4fc   :  { %v837_v50 = vsel %vm646_vm1, %v826_v31, 0 }
 0x4fd   :  { %v6652_v26 = vpop.eup %6651 }
 0x4fe   :  { %v6654_v27 = vpop.eup %6653  ;;  %v748_v28 = vmul.f32 %v6652_v26, %v6646_v11  ;;  %v1138_v53 = vpop.permute.xlu0 %1137 }
 0x4ff   :  { %v749_v29 = vmul.f32 %v6654_v27, %v6648_v12  ;;  %v6656_v30 = vpop.eup %6655  ;;  %v818_v47 = vpop.permute.xlu1 %817 }
 0x500   :  { %v750_v40 = vmul.f32 %v6656_v30, %v6644_v9 }
 0x501   :  { %v752_v32 = vpack.c.bf16 %v749_v29, %v748_v28 }
 0x502   :  { %v6658_v36 = vpop.eup %6657 }
 0x503   :  { %v751_v42 = vmul.f32 %v6658_v36, %v6650_v15  ;;  %6090 = vmatprep.mubr.msk.bf16.mxu1 %vm646_vm1, %v752_v32  ;;  %v820_v52 = vpop.permute.xlu1 %819 }
 0x505   :  { %v753_v44 = vpack.c.bf16 %v751_v42, %v750_v40 }
 0x507   :  { %6091 = vmatmul.mubr.msk.bf16.vlgmr.msra.gmra.mrb[12].mxu1 %vm646_vm1, %v753_v44  ;;  %v1144_v55 = vpop.permute.xlu1 %1143 }
 0x508   :  { %6095 = vmatpush3.bf16.xpose.msra.mxu1 %v834_v49  ;;  %6098 = vmatprep.mubr.msk.bf16.mxu1 %vm646_vm1, %v818_v47  ;;  %v1155_v56 = vsel %vm646_vm1, %v1144_v55, 0 }
 0x509   :  { %6317 = vmatprep.subr.msk.bf16.mxu1 %vm646_vm1, %v826_v31 }
 0x50b   :  { %v1140_v57 = vpop.permute.xlu1 %1139 }
 0x510   :  { %6097 = vmatpush3.bf16.xpose.msra.mxu1 %v837_v50 }
 0x511   :  { %6318 = vmatprep.subr.msk.bf16.mxu1 %vm646_vm1, %v1142_v51 }
 0x517   :  { %6099 = vmatmul.mubr.msk.bf16.vlgmr.msra.gmra.mrb[16].mxu1 %vm646_vm1, %v820_v52 }
 0x518   :  { %6127 = vmatpush3.bf16.xpose.msra.mxu1 %v1152_v54  ;;  %6130 = vmatprep.mubr.msk.bf16.mxu1 %vm646_vm1, %v1138_v53 }
 0x519   :  { %6319 = vmatprep.subr.msk.bf16.mxu1 %vm646_vm1, %v1144_v55 }
 0x520   :  { %6129 = vmatpush3.bf16.xpose.msra.mxu1 %v1155_v56 }
 0x527   :  { %6131 = vmatmul.mubr.msk.bf16.vlgmr.msra.gmra.mrb[20].mxu1 %vm646_vm1, %v1140_v57 }
 0x5da   :  { %v7709_v58 = vpop.f32.mrb[12].mxu1 }
 0x5db   :  { %v7711_v59 = vpop.f32.mrb[13].mxu1 }
 0x5dc   :  { %v7713_v62 = vpop.f32.mrb[14].mxu1 }
 0x5dd   :  { %v810_v1 = vpack.c.bf16 %v7713_v62, %v7709_v58  ;;  %v7717_v2 = vpop.f32.mrb[15].mxu1  ;;  %v6399_v58 = vld [vmem:[%s8575_s9 + $0x20] sm:$0xff]   ;;  %v6400_v62 = vld [vmem:[%s8575_s9 + $0x28] sm:$0xff]  }
 0x5de   :  { %v809_v3 = vpack.c.bf16 %v7717_v2, %v7711_v59 }
 0x5ea   :  { %v6100_v4 = vpop.f32.mrb[16].mxu1 }
 0x5eb   :  { %v873_v5 = vpop.f32.mrb[17].mxu1  ;;  %v882_v9 = vadd.f32 %v6100_v4, %v7659_v37 }
 0x5ec   :  { %v874_v6 = vadd.f32 %v873_v5, %v7661_v38  ;;  %v6101_v7 = vpop.f32.mrb[18].mxu1 }
 0x5ed   :  { %v876_v8 = vpop.f32.mrb[19].mxu1  ;;  %v885_v13 = vadd.f32 %v6101_v7, %v7663_v41  ;;  %v894_v14 = vsel %vm646_vm1, %v882_v9, -inf }
 0x5ee   :  { %v877_v10 = vadd.f32 %v876_v8, %v7666_v46  ;;  %v888_v11 = vsel %vm646_vm1, %v874_v6, -inf }
 0x5ef   :  { %889 = vmax.xlane.f32.xlu0 %v888_v11  ;;  %v897_v15 = vsel %vm646_vm1, %v885_v13, -inf }
 0x5f0   :  { %v891_v12 = vsel %vm646_vm1, %v877_v10, -inf }
 0x5f1   :  { %892 = vmax.xlane.f32.xlu1 %v891_v12 }
 0x5f3   :  { %895 = vmax.xlane.f32.xlu0 %v894_v14 }
 0x5f7   :  { %898 = vmax.xlane.f32.xlu0 %v897_v15 }
 0x5fa   :  { %v6132_v16 = vpop.f32.mrb[20].mxu1 }
 0x5fb   :  { %v1191_v17 = vpop.f32.mrb[21].mxu1  ;;  %v1200_v56 = vadd.f32 %v6132_v16, %v7659_v37 }
 0x5fc   :  { %v6133_v19 = vpop.f32.mrb[22].mxu1  ;;  %v1192_v55 = vadd.f32 %v1191_v17, %v7661_v38 }
 0x5fd   :  { %v1194_v20 = vpop.f32.mrb[23].mxu1  ;;  %v1203_v4 = vadd.f32 %v6133_v19, %v7663_v41 }
 0x5fe   :  { %v1206_v57 = vsel %vm646_vm1, %v1192_v55, -inf }
 0x5ff   :  { %v1215_v5 = vsel %vm646_vm1, %v1203_v4, -inf }
 0x67c   :  { %v890_v24 = vpop.xlane.xlu0 %889 }
 0x67d   :  { %v900_v25 = vsub.f32 %v874_v6, %v890_v24 }
 0x67e   :  { %v893_v26 = vpop.xlane.xlu1 %892 }
 0x67f   :  { %v904_v29 = vmul.f32 1.442695, %v900_v25  ;;  %v901_v30 = vsub.f32 %v877_v10, %v893_v26 }
 0x680   :  { %v896_v27 = vpop.xlane.xlu0 %895 }
 0x681   :  { %v902_v28 = vsub.f32 %v882_v9, %v896_v27  ;;  %v906_v40 = vmul.f32 1.442695, %v901_v30 }
 0x683   :  { %v908_v31 = vmul.f32 1.442695, %v902_v28 }
 0x684   :  { %v899_v32 = vpop.xlane.xlu0 %898 }
 0x685   :  { %6659 = vpow2.f32 %v908_v31  ;;  %v903_v36 = vsub.f32 %v885_v13, %v899_v32 }
 0x686   :  { %6661 = vpow2.f32 %v904_v29 }
 0x687   :  { %v910_v42 = vmul.f32 1.442695, %v903_v36 }
 0x689   :  { %6663 = vpow2.f32 %v910_v42 }
 0x68a   :  { %6665 = vpow2.f32 %v906_v40 }
 0x68f   :  { %v6660_v44 = vpop.eup %6659 }
 0x690   :  { %v918_v47 = vsel %vm646_vm1, %v6660_v44, 0.0  ;;  %v6662_v49 = vpop.eup %6661 }
 0x691   :  { %919 = vadd.xlane.f32.xlu0 %v918_v47  ;;  %v912_v51 = vsel %vm646_vm1, %v6662_v49, 0.0 }
 0x693   :  { %v6664_v50 = vpop.eup %6663 }
 0x694   :  { %v921_v52 = vsel %vm646_vm1, %v6664_v50, 0.0  ;;  %v6666_v53 = vpop.eup %6665 }
 0x695   :  { %913 = vadd.xlane.f32.xlu0 %v912_v51  ;;  %922 = vadd.xlane.f32.xlu1 %v921_v52  ;;  %v915_v54 = vsel %vm646_vm1, %v6666_v53, 0.0 }
 0x699   :  { %916 = vadd.xlane.f32.xlu1 %v915_v54 }
 0x6aa   :  { %938 = vrot.lane.b32.xlu1 %v7635_v22, %s7279_s25 }
 0x6ab   :  { %936 = vrot.lane.b32.xlu0 %v7637_v23, %s7279_s25 }
 0x6ae   :  { %1394 = vrot.lane.b32.xlu1 %v7633_v21, %s7270_s27  ;;  %v1212_v21 = vsel %vm646_vm1, %v1200_v56, -inf }
 0x6af   :  { %1390 = vrot.lane.b32.xlu0 %v7631_v18, %s7270_s27  ;;  %v1195_v18 = vadd.f32 %v1194_v20, %v7666_v46 }
 0x6b2   :  { %1396 = vrot.lane.b32.xlu1 %v7647_v35, %s7270_s27  ;;  %v1209_v35 = vsel %vm646_vm1, %v1195_v18, -inf }
 0x6b6   :  { %1392 = vrot.lane.b32.xlu1 %v7645_v33, %s7270_s27 }
 0x6ce   :  { %1207 = vmax.xlane.f32.xlu0 %v1206_v57 }
 0x6d2   :  { %1213 = vmax.xlane.f32.xlu0 %v1212_v21 }
 0x6d6   :  { %1216 = vmax.xlane.f32.xlu0 %v1215_v5 }
 0x6da   :  { %1210 = vmax.xlane.f32.xlu1 %v1209_v35  ;;  %v6395_v35 = vld [vmem:[%s8575_s9 + $0x10] sm:$0xff]  }
 0x71e   :  { %v920_v33 = vpop.xlane.xlu0 %919 }
 0x722   :  { %v923_v6 = vpop.xlane.xlu1 %922  ;;  %v914_v7 = vpop.xlane.xlu0 %913 }
 0x723   :  { %6667 = vrcp.f32 %v923_v6  ;;  %v6397_v6 = vld [vmem:[%s8575_s9] sm:$0xff]  }
 0x724   :  { %6669 = vrcp.f32 %v914_v7 }
 0x725   :  { %6671 = vrcp.f32 %v920_v33  ;;  %v6396_v33 = vld [vmem:[%s8575_s9 + $0x18] sm:$0xff]  }
 0x726   :  { %v917_v8 = vpop.xlane.xlu1 %916  ;;  %v937_v9 = vpop.permute.xlu0 %936 }
 0x727   :  { %6673 = vrcp.f32 %v917_v8  ;;  %6102 = vmatprep.subr.bf16.mxu0 %v937_v9 }
 0x728   :  { %6103 = vmatpush3.bf16.msra.mxu0 %v937_v9 }
 0x72a   :  { %v939_v10 = vpop.permute.xlu1 %938  ;;  %v1391_v11 = vpop.permute.xlu0 %1390 }
 0x72b   :  { %6104 = vmatprep.subr.bf16.mxu0 %v939_v10  ;;  %6154 = vmatprep.mubr.msk.bf16.mxu1 %vm646_vm1, %v1391_v11 }
 0x72c   :  { %6105 = vmatpush3.bf16.msra.mxu0 %v939_v10 }
 0x72d   :  { %v6668_v12 = vpop.eup %6667  ;;  %6110 = vmatprep.subr.bf16.mxu0 %v6395_v35 }
 0x72e   :  { %v1395_v13 = vpop.permute.xlu1 %1394  ;;  %v6670_v14 = vpop.eup %6669  ;;  %v931_v19 = vmul.f32 %v6668_v12, %v6664_v50 }
 0x72f   :  { %6320 = vmatprep.subr.msk.bf16.mxu1 %vm646_vm1, %v1395_v13  ;;  %v1405_v15 = vsel %vm646_vm1, %v1395_v13, 0  ;;  %v6672_v16 = vpop.eup %6671  ;;  %v928_v24 = vmul.f32 %v6670_v14, %v6662_v49 }
 0x730   :  { %6151 = vmatpush3.bf16.xpose.msra.mxu1 %v1405_v15  ;;  %v930_v26 = vmul.f32 %v6672_v16, %v6660_v44 }
 0x731   :  { %v6674_v17 = vpop.eup %6673 }
 0x732   :  { %v1397_v20 = vpop.permute.xlu1 %1396  ;;  %v929_v25 = vmul.f32 %v6674_v17, %v6666_v53  ;;  %v933_v28 = vpack.c.bf16 %v931_v19, %v930_v26  ;;  %v6398_v17 = vld [vmem:[%s8575_s9 + $0x8] sm:$0xff]  }
 0x733   :  { %6321 = vmatprep.subr.msk.bf16.mxu1 %vm646_vm1, %v1397_v20  ;;  %v1408_v29 = vsel %vm646_vm1, %v1397_v20, 0 }
 0x734   :  { %v932_v27 = vpack.c.bf16 %v929_v25, %v928_v24 }
 0x736   :  { %6106 = vmatprep.mubr.msk.bf16.mxu0 %vm646_vm1, %v932_v27  ;;  %v1393_v30 = vpop.permute.xlu1 %1392 }
 0x737   :  { %6107 = vmatmul.mubr.msk.bf16.vlgmr.msra.gmra.mrb[8].mxu0 %vm646_vm1, %v933_v28 }
 0x738   :  { %6153 = vmatpush3.bf16.xpose.msra.mxu1 %v1408_v29  ;;  %6111 = vmatpush3.bf16.msra.mxu0 %v6395_v35 }
 0x739   :  { %6112 = vmatprep.subr.bf16.mxu0 %v6396_v33 }
 0x73c   :  { %6113 = vmatpush3.bf16.msra.mxu0 %v6396_v33 }
 0x73d   :  { %6118 = vmatprep.subr.bf16.mxu0 %v6397_v6 }
 0x73f   :  { %6155 = vmatmul.mubr.msk.bf16.vlgmr.msra.gmra.mrb[24].mxu1 %vm646_vm1, %v1393_v30 }
 0x740   :  { %1924 = vmatprep.mubr.bf16.mxu1 %v7278_v34 }
 0x75b   :  { %v1208_v31 = vpop.xlane.xlu0 %1207 }
 0x75c   :  { %v1218_v32 = vsub.f32 %v1192_v55, %v1208_v31 }
 0x75e   :  { %v1222_v42 = vmul.f32 1.442695, %v1218_v32 }
 0x75f   :  { %v1214_v36 = vpop.xlane.xlu0 %1213 }
 0x760   :  { %v1220_v40 = vsub.f32 %v1200_v56, %v1214_v36 }
 0x762   :  { %v1226_v44 = vmul.f32 1.442695, %v1220_v40 }
 0x763   :  { %v1217_v47 = vpop.xlane.xlu0 %1216 }
 0x764   :  { %6675 = vpow2.f32 %v1226_v44  ;;  %v1221_v49 = vsub.f32 %v1203_v4, %v1217_v47 }
 0x765   :  { %6677 = vpow2.f32 %v1222_v42 }
 0x766   :  { %v1228_v50 = vmul.f32 1.442695, %v1221_v49 }
 0x767   :  { %v1211_v51 = vpop.xlane.xlu1 %1210 }
 0x768   :  { %6679 = vpow2.f32 %v1228_v50  ;;  %v1219_v52 = vsub.f32 %v1195_v18, %v1211_v51 }
 0x76a   :  { %v1224_v53 = vmul.f32 1.442695, %v1219_v52 }
 0x76c   :  { %6681 = vpow2.f32 %v1224_v53 }
 0x76e   :  { %v7762_v54 = vpop.eup %6675 }
 0x76f   :  { %v1236_v57 = vsel %vm646_vm1, %v7762_v54, 0.0  ;;  %v6678_v55 = vpop.eup %6677 }
 0x770   :  { %1237 = vadd.xlane.f32.xlu0 %v1236_v57  ;;  %v1230_v21 = vsel %vm646_vm1, %v6678_v55, 0.0 }
 0x772   :  { %v7766_v56 = vpop.eup %6679 }
 0x773   :  { %v1239_v4 = vsel %vm646_vm1, %v7766_v56, 0.0 }
 0x774   :  { %1231 = vadd.xlane.f32.xlu0 %v1230_v21  ;;  %1240 = vadd.xlane.f32.xlu1 %v1239_v4 }
 0x776   :  { %v6682_v5 = vpop.eup %6681 }
 0x777   :  { %v1233_v18 = vsel %vm646_vm1, %v6682_v5, 0.0 }
 0x778   :  { %1234 = vadd.xlane.f32.xlu1 %v1233_v18 }
 0x789   :  { %1254 = vrot.lane.b32.xlu1 %v7635_v22, %s8630_s24 }
 0x78a   :  { %1252 = vrot.lane.b32.xlu0 %v7637_v23, %s8630_s24 }
 0x7fd   :  { %v1238_v8 = vpop.xlane.xlu0 %1237 }
 0x801   :  { %v1241_v7 = vpop.xlane.xlu1 %1240  ;;  %v1232_v10 = vpop.xlane.xlu0 %1231 }
 0x805   :  { %v1235_v9 = vpop.xlane.xlu1 %1234  ;;  %v1253_v28 = vpop.permute.xlu0 %1252 }
 0x806   :  { %6683 = vrcp.f32 %v1235_v9 }
 0x807   :  { %6685 = vrcp.f32 %v1232_v10 }
 0x808   :  { %6687 = vrcp.f32 %v1241_v7 }
 0x809   :  { %6689 = vrcp.f32 %v1238_v8 }
 0x80a   :  { %v6108_v11 = vpop.f32.mrb[8].mxu0 }
 0x80b   :  { %v982_v12 = vpop.f32.mrb[9].mxu0 }
 0x80c   :  { %v6109_v13 = vpop.f32.mrb[10].mxu0 }
 0x80d   :  { %v998_v14 = vpack.c.bf16 %v6109_v13, %v6108_v11  ;;  %v985_v15 = vpop.f32.mrb[11].mxu0 }
 0x80e   :  { %v997_v16 = vpack.c.bf16 %v985_v15, %v982_v12 }
 0x810   :  { %6114 = vmatprep.mubr.msk.bf16.mxu0 %vm646_vm1, %v997_v16  ;;  %v6684_v26 = vpop.eup %6683 }
 0x811   :  { %6115 = vmatmul.mubr.msk.bf16.vlgmr.msra.gmra.mrb[12].mxu0 %vm646_vm1, %v998_v14  ;;  %v6686_v59 = vpop.eup %6685  ;;  %v1247_v32 = vmul.f32 %v6684_v26, %v6682_v5 }
 0x812   :  { %6119 = vmatpush3.bf16.msra.mxu0 %v6397_v6  ;;  %6122 = vmatprep.mubr.msk.bf16.mxu0 %vm646_vm1, %v809_v3  ;;  %v6156_v19 = vpop.f32.mrb[24].mxu1  ;;  %v1246_v36 = vmul.f32 %v6686_v59, %v6678_v55  ;;  %v6688_v40 = vpop.eup %6687 }
 0x813   :  { %v1444_v20 = vpop.f32.mrb[25].mxu1  ;;  %6120 = vmatprep.subr.bf16.mxu0 %v6398_v17  ;;  %v1453_v2 = vadd.f32 %v6156_v19, %v7659_v37  ;;  %v1255_v37 = vpop.permute.xlu1 %1254  ;;  %v1249_v44 = vmul.f32 %v6688_v40, %v7766_v56  ;;  %v6405_v40 = vld [vmem:[#allocation18 + $0x4] ss:$16 sps:$4 sm:$0xff]  }
 0x814   :  { %v1445_v24 = vadd.f32 %v1444_v20, %v7661_v38  ;;  %v6157_v25 = vpop.f32.mrb[26].mxu1  ;;  %v1250_v42 = vpack.c.bf16 %v1247_v32, %v1246_v36  ;;  %v6403_v36 = vld [vmem:[#allocation18] ss:$16 sps:$4 sm:$0xff]   ;;  %1892 = vmatprep.subr.bf16.mxu1 %v6405_v40 }
 0x815   :  { %v1447_v27 = vpop.f32.mrb[27].mxu1  ;;  %v1456_v29 = vadd.f32 %v6157_v25, %v7663_v41  ;;  %v1465_v41 = vsel %vm646_vm1, %v1453_v2, -inf  ;;  %v6401_v25 = vld [vmem:[%s8575_s9 + $0x30] sm:$0xff]   ;;  %1893 = vmatpush1.bf16.msra.mxu1 %v6403_v36 }
 0x816   :  { %6121 = vmatpush3.bf16.msra.mxu0 %v6398_v17  ;;  %v1448_v30 = vadd.f32 %v1447_v27, %v7666_v46  ;;  %v1459_v31 = vsel %vm646_vm1, %v1445_v24, -inf  ;;  %v6690_v46 = vpop.eup %6689 }
 0x817   :  { %6134 = vmatprep.subr.bf16.mxu0 %v1253_v28  ;;  %1460 = vmax.xlane.f32.xlu1 %v1459_v31  ;;  %v1468_v38 = vsel %vm646_vm1, %v1456_v29, -inf  ;;  %v1248_v47 = vmul.f32 %v6690_v46, %v7762_v54  ;;  %v6409_v46 = vld [vmem:[#allocation18 + $0x20] ss:$16 sps:$4 sm:$0xff]  }
 0x818   :  { %v1462_v3 = vsel %vm646_vm1, %v1448_v30, -inf }
 0x819   :  { %1463 = vmax.xlane.f32.xlu0 %v1462_v3  ;;  %v1251_v49 = vpack.c.bf16 %v1249_v44, %v1248_v47  ;;  %v6415_v44 = vld [vmem:[#allocation18 + $0x40] ss:$16 sps:$4 sm:$0xff]   ;;  %v6423_v47 = vld [vmem:[#allocation18 + $0x64] ss:$16 sps:$4 sm:$0xff]  }
 0x81b   :  { %1469 = vmax.xlane.f32.xlu1 %v1468_v38  ;;  %v6402_v38 = vld [vmem:[%s8575_s9 + $0x38] sm:$0xff]  }
 0x81d   :  { %6123 = vmatmul.mubr.msk.bf16.vlgmr.msra.gmra.mrb[12].mxu0 %vm646_vm1, %v810_v1  ;;  %1466 = vmax.xlane.f32.xlu0 %v1465_v41  ;;  %v6408_v41 = vld [vmem:[#allocation18 + $0xc] ss:$16 sps:$4 sm:$0xff]  }
 0x81e   :  { %6135 = vmatpush3.bf16.msra.mxu0 %v1253_v28  ;;  %6138 = vmatprep.mubr.msk.bf16.mxu0 %vm646_vm1, %v1250_v42  ;;  %v6411_v42 = vld [vmem:[#allocation18 + $0x24] ss:$16 sps:$4 sm:$0xff]  }
 0x81f   :  { %6136 = vmatprep.subr.bf16.mxu0 %v1255_v37  ;;  %1894 = vmatprep.subr.bf16.mxu1 %v6411_v42 }
 0x820   :  { %1895 = vmatpush1.bf16.msra.mxu1 %v6409_v46  ;;  %v6451_v46 = vld [vmem:[#allocation20 + $0x40] sm:$0xff]  }
 0x822   :  { %6137 = vmatpush3.bf16.msra.mxu0 %v1255_v37  ;;  %v6417_v37 = vld [vmem:[#allocation18 + $0x44] ss:$16 sps:$4 sm:$0xff]  }
 0x823   :  { %6142 = vmatprep.subr.bf16.mxu0 %v6399_v58  ;;  %1896 = vmatprep.subr.bf16.mxu1 %v6417_v37  ;;  %v6452_v37 = vld [vmem:[#allocation20 + $0xc0] sm:$0xff]  }
 0x824   :  { %1897 = vmatpush1.bf16.msra.mxu1 %v6415_v44  ;;  %v6453_v44 = vld [vmem:[#allocation20] sm:$0xff]  }
 0x825   :  { %6139 = vmatmul.mubr.msk.bf16.vlgmr.msra.gmra.mrb[16].mxu0 %vm646_vm1, %v1251_v49  ;;  %v6421_v49 = vld [vmem:[#allocation18 + $0x60] ss:$16 sps:$4 sm:$0xff]   ;;  %1898 = vmatprep.subr.bf16.mxu1 %v6423_v47 }
 0x826   :  { %6143 = vmatpush3.bf16.msra.mxu0 %v6399_v58  ;;  %v6429_v58 = vld [vmem:[#allocation18 + $0x84] ss:$16 sps:$4 sm:$0xff]  }
 0x827   :  { %6144 = vmatprep.subr.bf16.mxu0 %v6400_v62  ;;  %v6454_v47 = vld [vmem:[#allocation20 + $0x80] sm:$0xff]  }
 0x828   :  { %1899 = vmatpush1.bf16.msra.mxu1 %v6421_v49  ;;  %v6455_v49 = vld [vmem:[#allocation20 + $0x48] sm:$0xff]  }
 0x829   :  { %1900 = vmatprep.subr.bf16.mxu1 %v6429_v58  ;;  %v6456_v58 = vld [vmem:[#allocation20 + $0xc8] sm:$0xff]  }
 0x82a   :  { %6145 = vmatpush3.bf16.msra.mxu0 %v6400_v62  ;;  %v6427_v62 = vld [vmem:[#allocation18 + $0x80] ss:$16 sps:$4 sm:$0xff]  }
 0x82c   :  { %1901 = vmatpush1.bf16.msra.mxu1 %v6427_v62  ;;  %v6457_v62 = vld [vmem:[#allocation20 + $0x8] sm:$0xff]  }
 0x8a4   :  { %v1461_v1 = vpop.xlane.xlu1 %1460 }
 0x8a5   :  { %v1471_v53 = vsub.f32 %v1445_v24, %v1461_v1 }
 0x8a6   :  { %v1464_v50 = vpop.xlane.xlu0 %1463 }
 0x8a7   :  { %v1472_v51 = vsub.f32 %v1448_v30, %v1464_v50  ;;  %v1475_v4 = vmul.f32 1.442695, %v1471_v53 }
 0x8a8   :  { %v1470_v52 = vpop.xlane.xlu1 %1469 }
 0x8a9   :  { %v1474_v54 = vsub.f32 %v1456_v29, %v1470_v52  ;;  %v1477_v57 = vmul.f32 1.442695, %v1472_v51 }
 0x8aa   :  { %v1467_v55 = vpop.xlane.xlu0 %1466 }
 0x8ab   :  { %v1481_v56 = vmul.f32 1.442695, %v1474_v54  ;;  %v1473_v21 = vsub.f32 %v1453_v2, %v1467_v55  ;;  %v6414_v55 = vld [vmem:[#allocation18 + $0x2c] ss:$16 sps:$4 sm:$0xff]  }
 0x8ad   :  { %6691 = vpow2.f32 %v1481_v56  ;;  %v1479_v5 = vmul.f32 1.442695, %v1473_v21  ;;  %v6412_v56 = vld [vmem:[#allocation18 + $0x28] ss:$16 sps:$4 sm:$0xff]   ;;  %v6420_v21 = vld [vmem:[#allocation18 + $0x4c] ss:$16 sps:$4 sm:$0xff]  }
 0x8ae   :  { %6693 = vpow2.f32 %v1477_v57  ;;  %v6406_v57 = vld [vmem:[#allocation18 + $0x8] ss:$16 sps:$4 sm:$0xff]  }
 0x8af   :  { %6695 = vpow2.f32 %v1479_v5  ;;  %v6426_v5 = vld [vmem:[#allocation18 + $0x6c] ss:$16 sps:$4 sm:$0xff]  }
 0x8b0   :  { %6697 = vpow2.f32 %v1475_v4  ;;  %v6418_v4 = vld [vmem:[#allocation18 + $0x48] ss:$16 sps:$4 sm:$0xff]  }
 0x8b7   :  { %v6692_v18 = vpop.eup %6691 }
 0x8b8   :  { %v6694_v35 = vpop.eup %6693  ;;  %v1492_v33 = vsel %vm646_vm1, %v6692_v18, 0.0 }
 0x8b9   :  { %v6696_v6 = vpop.eup %6695  ;;  %1493 = vadd.xlane.f32.xlu1 %v1492_v33  ;;  %v1486_v9 = vsel %vm646_vm1, %v6694_v35, 0.0  ;;  %v6430_v33 = vld [vmem:[#allocation18 + $0x88] ss:$16 sps:$4 sm:$0xff]  }
 0x8ba   :  { %v1489_v7 = vsel %vm646_vm1, %v6696_v6, 0.0  ;;  %v6698_v8 = vpop.eup %6697 }
 0x8bb   :  { %1490 = vadd.xlane.f32.xlu0 %v1489_v7  ;;  %v1483_v10 = vsel %vm646_vm1, %v6698_v8, 0.0  ;;  %v6438_v7 = vld [vmem:[#allocation18 + $0xac] ss:$16 sps:$4 sm:$0xff]  }
 0x8bd   :  { %1487 = vadd.xlane.f32.xlu1 %v1486_v9  ;;  %v6436_v9 = vld [vmem:[#allocation18 + $0xa8] ss:$16 sps:$4 sm:$0xff]  }
 0x8bf   :  { %1484 = vadd.xlane.f32.xlu0 %v1483_v10  ;;  %v6441_v10 = vld [vmem:[#allocation18 + $0xc4] ss:$16 sps:$4 sm:$0xff]  }
 0x8ce   :  { %1507 = vrot.lane.b32.xlu1 %v7635_v22, %s7270_s27 }
 0x8d5   :  { %1505 = vrot.lane.b32.xlu0 %v7637_v23, %s7270_s27 }
 0x8f8   :  { %v6140_v11 = vpop.f32.mrb[16].mxu0 }
 0x8f9   :  { %v1298_v12 = vpop.f32.mrb[17].mxu0 }
 0x8fa   :  { %v6141_v13 = vpop.f32.mrb[18].mxu0 }
 0x8fb   :  { %v1314_v14 = vpack.c.bf16 %v6141_v13, %v6140_v11  ;;  %v1301_v15 = vpop.f32.mrb[19].mxu0  ;;  %v6444_v11 = vld [vmem:[#allocation18 + $0xcc] ss:$16 sps:$4 sm:$0xff]   ;;  %v6442_v13 = vld [vmem:[#allocation18 + $0xc8] ss:$16 sps:$4 sm:$0xff]  }
 0x8fc   :  { %v1313_v16 = vpack.c.bf16 %v1301_v15, %v1298_v12  ;;  %v6439_v12 = vld [vmem:[#allocation18 + $0xc0] ss:$16 sps:$4 sm:$0xff]   ;;  %v6450_v15 = vld [vmem:[#allocation18 + $0xec] ss:$16 sps:$4 sm:$0xff]  }
 0x8fe   :  { %6146 = vmatprep.mubr.msk.bf16.mxu0 %vm646_vm1, %v1313_v16  ;;  %v6445_v16 = vld [vmem:[#allocation18 + $0xe0] ss:$16 sps:$4 sm:$0xff]  }
 0x8ff   :  { %6147 = vmatmul.mubr.msk.bf16.vlgmr.msra.gmra.mrb[12].mxu0 %vm646_vm1, %v1314_v14  ;;  %v6447_v14 = vld [vmem:[#allocation18 + $0xe4] ss:$16 sps:$4 sm:$0xff]  }
 0x946   :  { %v1494_v17 = vpop.xlane.xlu1 %1493 }
 0x948   :  { %v1491_v19 = vpop.xlane.xlu0 %1490 }
 0x949   :  { %6699 = vrcp.f32 %v1491_v19 }
 0x94a   :  { %v1488_v20 = vpop.xlane.xlu1 %1487 }
 0x94b   :  { %6701 = vrcp.f32 %v1488_v20  ;;  %v5505_v20 = vld [vmem:[#allocation15] ss:$0 sm:$0xff] }
 0x94c   :  { %6703 = vrcp.f32 %v1494_v17  ;;  %v1485_v22 = vpop.xlane.xlu0 %1484  ;;  %v6448_v17 = vld [vmem:[#allocation18 + $0xe8] ss:$16 sps:$4 sm:$0xff]  }
 0x94d   :  { %6705 = vrcp.f32 %v1485_v22 }
 0x94e   :  { %v1508_v23 = vpop.permute.xlu1 %1507 }
 0x950   :  { %v1506_v24 = vpop.permute.xlu0 %1505 }
 0x951   :  { %6158 = vmatprep.subr.bf16.mxu0 %v1506_v24 }
 0x952   :  { %6159 = vmatpush3.bf16.msra.mxu0 %v1506_v24 }
 0x953   :  { %6160 = vmatprep.subr.bf16.mxu0 %v1508_v23  ;;  %v6700_v26 = vpop.eup %6699 }
 0x954   :  { %v1501_v30 = vmul.f32 %v6700_v26, %v6696_v6  ;;  %v6435_v6 = vld [vmem:[#allocation18 + $0xa4] ss:$16 sps:$4 sm:$0xff]  }
 0x955   :  { %v6702_v27 = vpop.eup %6701  ;;  %1902 = vmatprep.subr.bf16.mxu1 %v6435_v6  ;;  %v6473_v6 = vld [vmem:[#allocation20 + $0x28] sm:$0xff]  }
 0x956   :  { %v6704_v28 = vpop.eup %6703  ;;  %6161 = vmatpush3.bf16.msra.mxu0 %v1508_v23  ;;  %v1500_v59 = vmul.f32 %v6702_v27, %v6694_v35  ;;  %v6432_v35 = vld [vmem:[#allocation18 + $0x8c] ss:$16 sps:$4 sm:$0xff]  }
 0x957   :  { %v6706_v29 = vpop.eup %6705  ;;  %6166 = vmatprep.subr.bf16.mxu0 %v6401_v25  ;;  %v1502_v2 = vmul.f32 %v6704_v28, %v6692_v18  ;;  %v6424_v18 = vld [vmem:[#allocation18 + $0x68] ss:$16 sps:$4 sm:$0xff]  }
 0x958   :  { %v1499_v31 = vmul.f32 %v6706_v29, %v6698_v8  ;;  %v6433_v8 = vld [vmem:[#allocation18 + $0xa0] ss:$16 sps:$4 sm:$0xff]  }
 0x959   :  { %v1504_v32 = vpack.c.bf16 %v1502_v2, %v1501_v30  ;;  %1903 = vmatpush1.bf16.msra.mxu1 %v6433_v8  ;;  %v5507_v2 = vld [vmem:[#allocation17 + $0x1] ss:$0 sm:$0xff]  ;;  %v6475_v8 = vld [vmem:[#allocation20 + $0x70] sm:$0xff]  }
 0x95a   :  { %v1503_v3 = vpack.c.bf16 %v1500_v59, %v1499_v31  ;;  %1904 = vmatprep.subr.bf16.mxu1 %v6441_v10  ;;  %v6477_v10 = vld [vmem:[#allocation20 + $0x30] sm:$0xff]  }
 0x95c   :  { %6162 = vmatprep.mubr.msk.bf16.mxu0 %vm646_vm1, %v1503_v3 }
 0x95d   :  { %6163 = vmatmul.mubr.msk.bf16.vlgmr.msra.gmra.mrb[20].mxu0 %vm646_vm1, %v1504_v32  ;;  %1905 = vmatpush1.bf16.msra.mxu1 %v6439_v12  ;;  %v6479_v12 = vld [vmem:[#allocation20 + $0x78] sm:$0xff]  }
 0x95e   :  { %6167 = vmatpush3.bf16.msra.mxu0 %v6401_v25  ;;  %1906 = vmatprep.subr.bf16.mxu1 %v6447_v14  ;;  %v5506_v25 = vld [vmem:[#allocation17] ss:$0 sm:$0xff] }
 0x95f   :  { %6168 = vmatprep.subr.bf16.mxu0 %v6402_v38  ;;  %v6481_v14 = vld [vmem:[#allocation20 + $0x38] sm:$0xff]  }
 0x961   :  { %1907 = vmatpush1.bf16.msra.mxu1 %v6445_v16  ;;  %v6485_v16 = vld [vmem:[#allocation12 + $0xc4] ss:$12 sps:$4 sm:$0xff]  }
 0x962   :  { %6169 = vmatpush3.bf16.msra.mxu0 %v6402_v38  ;;  %5848 = vmatprep.subr.bf16.mxu1 %v6451_v46 }
 0x963   :  { %1945 = vmatprep.subr.bf16.mxu0 %v6408_v41 }
 0xa30   :  { %v6164_v1 = vpop.f32.mrb[20].mxu0 }
 0xa31   :  { %v1551_v50 = vpop.f32.mrb[21].mxu0 }
 0xa32   :  { %v6165_v51 = vpop.f32.mrb[22].mxu0 }
 0xa33   :  { %v1567_v52 = vpack.c.bf16 %v6165_v51, %v6164_v1  ;;  %v1554_v53 = vpop.f32.mrb[23].mxu0  ;;  %v6458_v1 = vld [vmem:[#allocation20 + $0x88] sm:$0xff]   ;;  %v6460_v51 = vld [vmem:[#allocation20 + $0xd0] sm:$0xff]  }
 0xa34   :  { %v1566_v54 = vpack.c.bf16 %v1554_v53, %v1551_v50  ;;  %v6459_v50 = vld [vmem:[#allocation20 + $0x50] sm:$0xff]  }
 0xa35   :  { %v6462_v53 = vld [vmem:[#allocation20 + $0x90] sm:$0xff]  }
 0xa36   :  { %6170 = vmatprep.mubr.msk.bf16.mxu0 %vm646_vm1, %v1566_v54  ;;  %v6463_v54 = vld [vmem:[#allocation20 + $0x58] sm:$0xff]  }
 0xa37   :  { %6171 = vmatmul.mubr.msk.bf16.vlgmr.msra.gmra.mrb[12].mxu0 %vm646_vm1, %v1567_v52  ;;  %v6461_v52 = vld [vmem:[#allocation20 + $0x10] sm:$0xff]  }
 0xa38   :  { %1946 = vmatpush1.bf16.msra.mxu0 %v6406_v57  ;;  %1977 = vmatprep.mubr.bf16.mxu0 %v7278_v34  ;;  %v6464_v57 = vld [vmem:[#allocation20 + $0xd8] sm:$0xff]  }
 0xa39   :  { %1947 = vmatprep.subr.bf16.mxu0 %v6414_v55  ;;  %v6465_v55 = vld [vmem:[#allocation20 + $0x18] sm:$0xff]  }
 0xa3c   :  { %1948 = vmatpush1.bf16.msra.mxu0 %v6412_v56  ;;  %v6466_v56 = vld [vmem:[#allocation20 + $0x98] sm:$0xff]  }
 0xa3d   :  { %1949 = vmatprep.subr.bf16.mxu0 %v6420_v21  ;;  %v6467_v21 = vld [vmem:[#allocation20 + $0x60] sm:$0xff]  }
 0xa40   :  { %1950 = vmatpush1.bf16.msra.mxu0 %v6418_v4  ;;  %v6468_v4 = vld [vmem:[#allocation20 + $0xe0] sm:$0xff]  }
 0xa41   :  { %1951 = vmatprep.subr.bf16.mxu0 %v6426_v5  ;;  %v6469_v5 = vld [vmem:[#allocation20 + $0x20] sm:$0xff]  }
 0xa44   :  { %1952 = vmatpush1.bf16.msra.mxu0 %v6424_v18  ;;  %v6470_v18 = vld [vmem:[#allocation20 + $0xa0] sm:$0xff]  }
 0xa45   :  { %1953 = vmatprep.subr.bf16.mxu0 %v6432_v35  ;;  %v6471_v35 = vld [vmem:[#allocation20 + $0x68] sm:$0xff]  }
 0xa48   :  { %1954 = vmatpush1.bf16.msra.mxu0 %v6430_v33  ;;  %v6472_v33 = vld [vmem:[#allocation20 + $0xe8] sm:$0xff]  }
 0xa49   :  { %1955 = vmatprep.subr.bf16.mxu0 %v6438_v7  ;;  %v6474_v7 = vld [vmem:[#allocation20 + $0xa8] sm:$0xff]  }
 0xa4c   :  { %1956 = vmatpush1.bf16.msra.mxu0 %v6436_v9  ;;  %v6476_v9 = vld [vmem:[#allocation20 + $0xf0] sm:$0xff]  }
 0xa4d   :  { %1957 = vmatprep.subr.bf16.mxu0 %v6444_v11  ;;  %v6478_v11 = vld [vmem:[#allocation20 + $0xb0] sm:$0xff]  }
 0xa50   :  { %1958 = vmatpush1.bf16.msra.mxu0 %v6442_v13  ;;  %v6480_v13 = vld [vmem:[#allocation20 + $0xf8] sm:$0xff]  }
 0xa51   :  { %1959 = vmatprep.subr.bf16.mxu0 %v6450_v15  ;;  %v6482_v15 = vld [vmem:[#allocation20 + $0xb8] sm:$0xff]  }
 0xa54   :  { %1960 = vmatpush1.bf16.msra.mxu0 %v6448_v17  ;;  %v7855_v17 = vld [vmem:[#allocation12 + $0xc8] ss:$12 sps:$4 sm:$0xff]  }
 0xa55   :  { %5876 = vmatprep.subr.bf16.mxu0 %v6452_v37 }
 0xb0a   :  { %v6172_v19 = vpop.f32.mrb[12].mxu0 }
 0xb0b   :  { %v1624_v22 = vpop.f32.mrb[13].mxu0  ;;  %v1645_v30 = vadd.f32 %v6172_v19, %v7604_v39  ;;  %v1710_v19 = vld [vmem:[%s8579_s13] sm:$0xf] }
 0xb0c   :  { %v1643_v24 = vadd.f32 %v1624_v22, %v7606_v43  ;;  %v6173_v23 = vpop.f32.mrb[14].mxu0  ;;  %v1715_v22 = vrot.slane %v1710_v19, %v7620_v61 }
 0xb0d   :  { %v1627_v26 = vpop.f32.mrb[15].mxu0  ;;  %v1646_v28 = vadd.f32 %v6173_v23, %v7608_v45  ;;  %v7849_v32 = vadd.f32 %v5505_v20, %v1645_v30  ;;  %v7867_v23 = vrot.slane %v1710_v19, %v7623_v63 }
 0xb0e   :  { %v7838_v27 = vadd.f32 %v5505_v20, %v1643_v24  ;;  %v1644_v29 = vadd.f32 %v1627_v26, %v7611_v48  ;;  %v7864_v24 = vrot.slane %v1710_v19, %v7626_v0 }
 0xb0f   :  { %v7846_v3 = vadd.f32 %v5505_v20, %v1646_v28  ;;  %v1665_v48 = vmul.f32 %v5506_v25, %v7849_v32 }
 0xb10   :  { %v1663_v31 = vmul.f32 %v5506_v25, %v7838_v27  ;;  %v7844_v59 = vadd.f32 %v5505_v20, %v1644_v29  ;;  %v1726_v20 = vsub.s32 3, %v7617_v60 }
 0xb11   :  { %v1666_v40 = vmul.f32 %v5506_v25, %v7846_v3  ;;  %v1674_v41 = vadd.f32 %v5507_v2, %v1665_v48 }
 0xb12   :  { %v1664_v43 = vmul.f32 %v5506_v25, %v7844_v59  ;;  %v1672_v38 = vadd.f32 %v5507_v2, %v1663_v31  ;;  %v7871_v25 = vrot.slane %v1710_v19, %v1726_v20 }
 0xb13   :  { %v1675_v39 = vadd.f32 %v5507_v2, %v1666_v40 }
 0xb14   :  { %v1673_v36 = vadd.f32 %v5507_v2, %v1664_v43 }
 0xb15   :  { %v1677_v42 = vpack.c.bf16 %v1675_v39, %v1674_v41 }
 0xb16   :  { %v1676_v45 = vpack.c.bf16 %v1673_v36, %v1672_v38 }
 0xb18   :  { %1925 = vmatmul.mubr.bf16.vlgmr.msra.gmra.mrb[28].mxu1 %v1676_v45  ;;  %1978 = vmatmul.mubr.bf16.vlgmr.msra.gmra.mrb[24].mxu0 %v1676_v45 }
 0xb19   :  { %1934 = vmatprep.mubr.bf16.mxu1 %v7278_v34  ;;  %1987 = vmatprep.mubr.bf16.mxu0 %v7278_v34 }
 0xb1a   :  { %5849 = vmatpush3.bf16.msra.mxu1 %v6453_v44  ;;  %5877 = vmatpush3.bf16.msra.mxu0 %v6454_v47 }
 0xb1b   :  { %5850 = vmatprep.subr.bf16.mxu1 %v6455_v49  ;;  %5878 = vmatprep.subr.bf16.mxu0 %v6456_v58 }
 0xb1e   :  { %5851 = vmatpush3.bf16.msra.mxu1 %v6457_v62  ;;  %5879 = vmatpush3.bf16.msra.mxu0 %v6458_v1 }
 0xb1f   :  { %5852 = vmatprep.subr.bf16.mxu1 %v6459_v50  ;;  %5880 = vmatprep.subr.bf16.mxu0 %v6460_v51 }
 0xb20   :  { %1935 = vmatmul.mubr.bf16.gmra.mrb[32].mxu1 %v1677_v42  ;;  %1988 = vmatmul.mubr.bf16.gmra.mrb[28].mxu0 %v1677_v42 }
 0xb22   :  { %5853 = vmatpush3.bf16.msra.mxu1 %v6461_v52  ;;  %5881 = vmatpush3.bf16.msra.mxu0 %v6462_v53 }
 0xb23   :  { %5854 = vmatprep.subr.bf16.mxu1 %v6463_v54  ;;  %5882 = vmatprep.subr.bf16.mxu0 %v6464_v57 }
 0xb26   :  { %5855 = vmatpush3.bf16.msra.mxu1 %v6465_v55  ;;  %5883 = vmatpush3.bf16.msra.mxu0 %v6466_v56 }
 0xb27   :  { %5856 = vmatprep.subr.bf16.mxu1 %v6467_v21  ;;  %5884 = vmatprep.subr.bf16.mxu0 %v6468_v4 }
 0xb2a   :  { %5857 = vmatpush3.bf16.msra.mxu1 %v6469_v5  ;;  %5885 = vmatpush3.bf16.msra.mxu0 %v6470_v18 }
 0xb2b   :  { %5858 = vmatprep.subr.bf16.mxu1 %v6471_v35  ;;  %5886 = vmatprep.subr.bf16.mxu0 %v6472_v33 }
 0xb2e   :  { %5859 = vmatpush3.bf16.msra.mxu1 %v6473_v6  ;;  %5887 = vmatpush3.bf16.msra.mxu0 %v6474_v7 }
 0xb2f   :  { %5860 = vmatprep.subr.bf16.mxu1 %v6475_v8  ;;  %5888 = vmatprep.subr.bf16.mxu0 %v6476_v9 }
 0xb32   :  { %5861 = vmatpush3.bf16.msra.mxu1 %v6477_v10  ;;  %5889 = vmatpush3.bf16.msra.mxu0 %v6478_v11 }
 0xb33   :  { %5862 = vmatprep.subr.bf16.mxu1 %v6479_v12  ;;  %5890 = vmatprep.subr.bf16.mxu0 %v6480_v13 }
 0xb36   :  { %5863 = vmatpush3.bf16.msra.mxu1 %v6481_v14  ;;  %5891 = vmatpush3.bf16.msra.mxu0 %v6482_v15 }
 0xb37   :  { %2699 = vmatprep.subr.bf16.mxu1 %v6485_v16  ;;  %6174 = vmatprep.subr.bf16.mxu0 %v7855_v17 }
 0xbeb   :  { %v1926_v26 = vpop.f32.mrb[28].mxu1  ;;  %v1979_v28 = vpop.f32.mrb[24].mxu0 }
 0xbec   :  { %v7873_v29 = vadd.f32 %v1926_v26, %v1715_v22  ;;  %v7876_v30 = vadd.f32 %v1979_v28, %v7864_v24  ;;  %v1928_v31 = vpop.f32.mrb[29].mxu1  ;;  %v1981_v2 = vpop.f32.mrb[25].mxu0 }
 0xbed   :  { %v7879_v43 = vadd.f32 %v1928_v31, %v7867_v23  ;;  %v7882_v38 = vadd.f32 %v1981_v2, %v7871_v25  ;;  %v1930_v36 = vpop.f32.mrb[30].mxu1  ;;  %v1983_v40 = vpop.f32.mrb[26].mxu0 }
 0xbee   :  { %v5540_v45 = vmul.f32 -1.702, %v7873_v29  ;;  %v5542_v48 = vmul.f32 -1.702, %v7876_v30  ;;  %v7886_v39 = vadd.f32 %v1930_v36, %v1715_v22  ;;  %v7889_v41 = vadd.f32 %v1983_v40, %v7864_v24  ;;  %v1932_v42 = vpop.f32.mrb[31].mxu1  ;;  %v1985_v46 = vpop.f32.mrb[27].mxu0 }
 0xbef   :  { %v5541_v37 = vmul.f32 -1.702, %v7879_v43  ;;  %v5543_v44 = vmul.f32 -1.702, %v7882_v38  ;;  %v7894_v47 = vadd.f32 %v1932_v42, %v7867_v23  ;;  %v7897_v49 = vadd.f32 %v1985_v46, %v7871_v25 }
 0xbf0   :  { %v2030_v58 = vmul.f32 1.442695, %v5540_v45  ;;  %v2034_v62 = vmul.f32 1.442695, %v5542_v48  ;;  %v5544_v1 = vmul.f32 -1.702, %v7886_v39 }
 0xbf1   :  { %v2032_v50 = vmul.f32 1.442695, %v5541_v37  ;;  %v2036_v51 = vmul.f32 1.442695, %v5543_v44  ;;  %v5546_v52 = vmul.f32 -1.702, %v7889_v41 }
 0xbf2   :  { %6707 = vpow2.f32 %v2030_v58  ;;  %v2038_v53 = vmul.f32 1.442695, %v5544_v1  ;;  %v5545_v54 = vmul.f32 -1.702, %v7894_v47  ;;  %v5547_v57 = vmul.f32 -1.702, %v7897_v49 }
 0xbf3   :  { %6709 = vpow2.f32 %v2034_v62  ;;  %v2042_v55 = vmul.f32 1.442695, %v5546_v52  ;;  %v1936_v56 = vpop.f32.mrb[32].mxu1  ;;  %v1989_v21 = vpop.f32.mrb[28].mxu0 }
 0xbf4   :  { %6711 = vpow2.f32 %v2032_v50  ;;  %v2040_v4 = vmul.f32 1.442695, %v5545_v54  ;;  %v7903_v5 = vadd.f32 %v1936_v56, %v1715_v22  ;;  %v1938_v18 = vpop.f32.mrb[33].mxu1  ;;  %v1991_v35 = vpop.f32.mrb[29].mxu0  ;;  %v2044_v33 = vmul.f32 1.442695, %v5547_v57 }
 0xbf5   :  { %6713 = vpow2.f32 %v2036_v51  ;;  %v7906_v6 = vadd.f32 %v1989_v21, %v7864_v24  ;;  %v7909_v7 = vadd.f32 %v1938_v18, %v7867_v23  ;;  %v1940_v8 = vpop.f32.mrb[34].mxu1  ;;  %v1993_v9 = vpop.f32.mrb[30].mxu0  ;;  %v7918_v2 = vadd.f32 %v1991_v35, %v7871_v25 }
 0xbf6   :  { %6715 = vpow2.f32 %v2038_v53  ;;  %v5548_v10 = vmul.f32 -1.702, %v7903_v5  ;;  %v7912_v11 = vadd.f32 %v1940_v8, %v1715_v22  ;;  %v1942_v12 = vpop.f32.mrb[35].mxu1  ;;  %v1995_v13 = vpop.f32.mrb[31].mxu0  ;;  %v7922_v62 = vadd.f32 %v1993_v9, %v7864_v24 }
 0xbf7   :  { %6717 = vpow2.f32 %v2042_v55  ;;  %v5550_v14 = vmul.f32 -1.702, %v7906_v6  ;;  %v5549_v15 = vmul.f32 -1.702, %v7909_v7  ;;  %v5551_v37 = vmul.f32 -1.702, %v7918_v2 }
 0xbf8   :  { %6719 = vpow2.f32 %v2040_v4  ;;  %v2046_v16 = vmul.f32 1.442695, %v5548_v10  ;;  %v5552_v19 = vmul.f32 -1.702, %v7912_v11  ;;  %v7925_v51 = vadd.f32 %v1942_v12, %v7867_v23 }
 0xbf9   :  { %6721 = vpow2.f32 %v2044_v33  ;;  %v2050_v26 = vmul.f32 1.442695, %v5550_v14  ;;  %v2048_v28 = vmul.f32 1.442695, %v5549_v15  ;;  %v7928_v54 = vadd.f32 %v1995_v13, %v7871_v25 }
 0xbfa   :  { %6723 = vpow2.f32 %v2046_v16  ;;  %v2054_v31 = vmul.f32 1.442695, %v5552_v19  ;;  %v2052_v56 = vmul.f32 1.442695, %v5551_v37  ;;  %v5554_v4 = vmul.f32 -1.702, %v7922_v62 }
 0xbfb   :  { %6725 = vpow2.f32 %v2050_v26  ;;  %v5553_v23 = vmul.f32 -1.702, %v7925_v51  ;;  %v5555_v33 = vmul.f32 -1.702, %v7928_v54 }
 0xbfc   :  { %v6708_v22 = vpop.eup %6707  ;;  %6727 = vpow2.f32 %v2048_v28  ;;  %v2058_v9 = vmul.f32 1.442695, %v5554_v4 }
 0xbfd   :  { %v6710_v36 = vpop.eup %6709  ;;  %v2062_v40 = vadd.f32 1.0, %v6708_v22  ;;  %6729 = vpow2.f32 %v2054_v31  ;;  %v2056_v13 = vmul.f32 1.442695, %v5553_v23  ;;  %v2060_v15 = vmul.f32 1.442695, %v5555_v33 }
 0xbfe   :  { %v6712_v45 = vpop.eup %6711  ;;  %v2064_v48 = vadd.f32 1.0, %v6710_v36 }
 0xbff   :  { %v6714_v42 = vpop.eup %6713  ;;  %6731 = vrcp.f32 %v2062_v40  ;;  %v2063_v46 = vadd.f32 1.0, %v6712_v45 }
 0xc00   :  { %v6716_v44 = vpop.eup %6715  ;;  %6733 = vrcp.f32 %v2064_v48  ;;  %v2065_v58 = vadd.f32 1.0, %v6714_v42 }
 0xc01   :  { %v6718_v1 = vpop.eup %6717  ;;  %6735 = vrcp.f32 %v2063_v46  ;;  %v2066_v50 = vadd.f32 1.0, %v6716_v44 }
 0xc02   :  { %v6720_v52 = vpop.eup %6719  ;;  %6737 = vrcp.f32 %v2065_v58  ;;  %v2068_v53 = vadd.f32 1.0, %v6718_v1 }
 0xc03   :  { %v6722_v57 = vpop.eup %6721  ;;  %6739 = vrcp.f32 %v2066_v50  ;;  %v2067_v55 = vadd.f32 1.0, %v6720_v52  ;;  %v6483_v52 = vld [vmem:[#allocation12 + $0xc0] ss:$12 sps:$4 sm:$0xff]  }
 0xc04   :  { %v6724_v21 = vpop.eup %6723  ;;  %6741 = vrcp.f32 %v2068_v53  ;;  %v2069_v24 = vadd.f32 1.0, %v6722_v57 }
 0xc05   :  { %6743 = vrcp.f32 %v2067_v55  ;;  %v2070_v18 = vadd.f32 1.0, %v6724_v21  ;;  %v6726_v35 = vpop.eup %6725  ;;  %v6488_v55 = vld [vmem:[#allocation12 + $0xdc] ss:$12 sps:$4 sm:$0xff]  }
 0xc06   :  { %6745 = vrcp.f32 %v2069_v24  ;;  %v6728_v8 = vpop.eup %6727  ;;  %v2072_v50 = vadd.f32 1.0, %v6726_v35 }
 0xc07   :  { %6747 = vpow2.f32 %v2052_v56  ;;  %v6730_v25 = vpop.eup %6729  ;;  %v2071_v57 = vadd.f32 1.0, %v6728_v8  ;;  %v6496_v56 = vld [vmem:[#allocation12 + $0xe0] ss:$12 sps:$4 sm:$0xff]  }
 0xc08   :  { %6749 = vrcp.f32 %v2070_v18  ;;  %v2074_v12 = vadd.f32 1.0, %v6730_v25  ;;  %v6491_v18 = vld [vmem:[#allocation12 + $0xf4] ss:$12 sps:$4 sm:$0xff]   ;;  %v6495_v8 = vld [vmem:[#allocation12 + $0x10c] ss:$12 sps:$4 sm:$0xff]  }
 0xc09   :  { %v6732_v10 = vpop.eup %6731  ;;  %v6493_v25 = vld [vmem:[#allocation12 + $0x108] ss:$12 sps:$4 sm:$0xff]  }
 0xc0a   :  { %v6734_v14 = vpop.eup %6733  ;;  %6751 = vrcp.f32 %v2074_v12  ;;  %v2110_v31 = vmul.f32 %v6732_v10, %v7873_v29 }
 0xc0b   :  { %v6736_v16 = vpop.eup %6735  ;;  %6753 = vpow2.f32 %v2058_v9  ;;  %v2112_v40 = vmul.f32 %v6734_v14, %v7876_v30 }
 0xc0c   :  { %v6738_v19 = vpop.eup %6737  ;;  %6755 = vpow2.f32 %v2056_v13  ;;  %v2111_v42 = vmul.f32 %v6736_v16, %v7879_v43 }
 0xc0d   :  { %v6740_v26 = vpop.eup %6739  ;;  %6757 = vpow2.f32 %v2060_v15  ;;  %v2113_v58 = vmul.f32 %v6738_v19, %v7882_v38 }
 0xc0e   :  { %v6742_v28 = vpop.eup %6741  ;;  %v2114_v22 = vmul.f32 %v6740_v26, %v7886_v39  ;;  %6759 = vrcp.f32 %v2072_v50 }
 0xc0f   :  { %v6744_v36 = vpop.eup %6743  ;;  %v2116_v45 = vmul.f32 %v6742_v28, %v7889_v41  ;;  %6761 = vrcp.f32 %v2071_v57 }
 0xc10   :  { %v6746_v48 = vpop.eup %6745  ;;  %v2126_v46 = vpack.c.bf16 %v2114_v22, %v2110_v31  ;;  %v2115_v37 = vmul.f32 %v6744_v36, %v7894_v47 }
 0xc11   :  { %v6748_v44 = vpop.eup %6747  ;;  %v2128_v1 = vpack.c.bf16 %v2116_v45, %v2112_v40  ;;  %v2117_v29 = vmul.f32 %v6746_v48, %v7897_v49  ;;  %v6486_v49 = vld [vmem:[#allocation12 + $0xd8] ss:$12 sps:$4 sm:$0xff]   ;;  %v6508_v48 = vld [vmem:[#allocation12 + $0x128] ss:$12 sps:$4 sm:$0xff]  }
 0xc12   :  { %v2127_v39 = vpack.c.bf16 %v2115_v37, %v2111_v42  ;;  %v6750_v53 = vpop.eup %6749  ;;  %v2073_v41 = vadd.f32 1.0, %v6748_v44  ;;  %v6500_v45 = vld [vmem:[#allocation12 + $0xf8] ss:$12 sps:$4 sm:$0xff]   ;;  %v6505_v42 = vld [vmem:[#allocation12 + $0x150] ss:$12 sps:$4 sm:$0xff]  }
 0xc13   :  { %v2129_v30 = vpack.c.bf16 %v2117_v29, %v2113_v58  ;;  %v2118_v21 = vmul.f32 %v6750_v53, %v7903_v5  ;;  %v6512_v37 = vld [vmem:[#allocation12 + $0x140] ss:$12 sps:$4 sm:$0xff]   ;;  %v6509_v44 = vld [vmem:[#allocation12 + $0x168] ss:$12 sps:$4 sm:$0xff]   ;;  %v6513_v58 = vld [vmem:[#allocation12 + $0x158] ss:$12 sps:$4 sm:$0xff]  }
 0xc14   :  { %2429 = vmatprep.mubr.bf16.mxu1 %v2127_v39  ;;  %v6752_v43 = vpop.eup %6751  ;;  %6763 = vrcp.f32 %v2073_v41  ;;  %v5556_v39 = vld [vmem:[%s8581_s15] ss:$0 sm:$0xff] }
 0xc15   :  { %2478 = vmatprep.mubr.bf16.mxu0 %v2129_v30  ;;  %2430 = vmatmul.mubr.bf16.vlgmr.msra.gmra.mrb[36].mxu1 %v2126_v46  ;;  %v6754_v47 = vpop.eup %6753  ;;  %v2122_v38 = vmul.f32 %v6752_v43, %v7912_v11  ;;  %v6489_v11 = vld [vmem:[#allocation12 + $0xf0] ss:$12 sps:$4 sm:$0xff]   ;;  %v6511_v46 = vld [vmem:[#allocation12 + $0x16c] ss:$12 sps:$4 sm:$0xff]  }
 0xc16   :  { %2479 = vmatmul.mubr.bf16.vlgmr.msra.gmra.mrb[32].mxu0 %v2128_v1  ;;  %2700 = vmatpush1.bf16.msra.mxu1 %v6483_v52  ;;  %v6756_v24 = vpop.eup %6755  ;;  %v2076_v4 = vadd.f32 1.0, %v6754_v47  ;;  %v6514_v1 = vld [vmem:[#allocation12 + $0x170] ss:$12 sps:$4 sm:$0xff]  }
 0xc17   :  { %2701 = vmatprep.subr.bf16.mxu1 %v6488_v55  ;;  %6175 = vmatpush3.bf16.msra.mxu0 %v7855_v17  ;;  %v6758_v23 = vpop.eup %6757  ;;  %v2075_v35 = vadd.f32 1.0, %v6756_v24  ;;  %v2130_v33 = vpack.c.bf16 %v2122_v38, %v2118_v21 }
 0xc18   :  { %6176 = vmatprep.subr.bf16.mxu0 %v6496_v56  ;;  %6765 = vrcp.f32 %v2076_v4  ;;  %v2077_v5 = vadd.f32 1.0, %v6758_v23  ;;  %v6760_v9 = vpop.eup %6759  ;;  %v5589_v4 = vld [vmem:[#allocation11 + $0x2] ss:$0 sm:$0xff] }
 0xc19   :  { %6767 = vrcp.f32 %v2075_v35  ;;  %v6762_v10 = vpop.eup %6761  ;;  %v2120_v14 = vmul.f32 %v6760_v9, %v7906_v6  ;;  %v6497_v6 = vld [vmem:[#allocation12 + $0x120] ss:$12 sps:$4 sm:$0xff]  }
 0xc1a   :  { %2702 = vmatpush1.bf16.msra.mxu1 %v6486_v49  ;;  %6769 = vrcp.f32 %v2077_v5  ;;  %v2119_v19 = vmul.f32 %v6762_v10, %v7909_v7  ;;  %v6501_v7 = vld [vmem:[#allocation12 + $0x138] ss:$12 sps:$4 sm:$0xff]   ;;  %v5590_v5 = vld [vmem:[#allocation11 + $0x3] ss:$0 sm:$0xff] }
 0xc1b   :  { %2703 = vmatprep.subr.bf16.mxu1 %v6491_v18  ;;  %6177 = vmatpush3.bf16.msra.mxu0 %v6496_v56 }
 0xc1c   :  { %6178 = vmatprep.subr.bf16.mxu0 %v6500_v45 }
 0xc1e   :  { %2704 = vmatpush1.bf16.msra.mxu1 %v6489_v11  ;;  %v6764_v17 = vpop.eup %6763 }
 0xc1f   :  { %2705 = vmatprep.subr.bf16.mxu1 %v6495_v8  ;;  %v2121_v28 = vmul.f32 %v6764_v17, %v7918_v2  ;;  %6179 = vmatpush3.bf16.msra.mxu0 %v6500_v45  ;;  %v6503_v2 = vld [vmem:[#allocation12 + $0x13c] ss:$12 sps:$4 sm:$0xff]  }
 0xc22   :  { %2706 = vmatpush1.bf16.msra.mxu1 %v6493_v25  ;;  %v6766_v12 = vpop.eup %6765 }
 0xc23   :  { %v6768_v13 = vpop.eup %6767  ;;  %v2124_v15 = vmul.f32 %v6766_v12, %v7922_v62  ;;  %v6499_v62 = vld [vmem:[#allocation12 + $0x124] ss:$12 sps:$4 sm:$0xff]  }
 0xc24   :  { %v6770_v16 = vpop.eup %6769  ;;  %v2123_v26 = vmul.f32 %v6768_v13, %v7925_v51  ;;  %2707 = vmatprep.subr.bf16.mxu1 %v6499_v62  ;;  %v6504_v51 = vld [vmem:[#allocation12 + $0x110] ss:$12 sps:$4 sm:$0xff]  }
 0xc25   :  { %v2125_v31 = vmul.f32 %v6770_v16, %v7928_v54  ;;  %v2132_v22 = vpack.c.bf16 %v2124_v15, %v2120_v14  ;;  %6180 = vmatprep.subr.bf16.mxu0 %v6504_v51  ;;  %v6507_v54 = vld [vmem:[#allocation12 + $0x154] ss:$12 sps:$4 sm:$0xff]  }
 0xc26   :  { %v2131_v36 = vpack.c.bf16 %v2123_v26, %v2119_v19  ;;  %2708 = vmatpush1.bf16.msra.mxu1 %v6497_v6  ;;  %6181 = vmatpush3.bf16.msra.mxu0 %v6504_v51 }
 0xc27   :  { %v2133_v40 = vpack.c.bf16 %v2125_v31, %v2121_v28  ;;  %2709 = vmatprep.subr.bf16.mxu1 %v6503_v2  ;;  %6182 = vmatprep.subr.bf16.mxu0 %v6508_v48 }
 0xc28   :  { %2437 = vmatprep.mubr.bf16.mxu1 %v2131_v36 }
 0xc29   :  { %2486 = vmatprep.mubr.bf16.mxu0 %v2133_v40  ;;  %2438 = vmatmul.mubr.bf16.gmra.mrb[40].mxu1 %v2130_v33 }
 0xc2a   :  { %2487 = vmatmul.mubr.bf16.gmra.mrb[36].mxu0 %v2132_v22  ;;  %2731 = vmatprep.mubr.bf16.mxu1 %v7278_v34 }
 0xc2b   :  { %2710 = vmatpush1.bf16.msra.mxu1 %v6501_v7  ;;  %6183 = vmatpush3.bf16.msra.mxu0 %v6508_v48  ;;  %v2554_v48 = vld [vmem:[#allocation14 + $0x3] sm:$0x7] }
 0xc2c   :  { %2711 = vmatprep.subr.bf16.mxu1 %v6507_v54  ;;  %6184 = vmatprep.subr.bf16.mxu0 %v6512_v37 }
 0xc2f   :  { %2712 = vmatpush1.bf16.msra.mxu1 %v6505_v42  ;;  %6185 = vmatpush3.bf16.msra.mxu0 %v6512_v37  ;;  %v2559_v42 = vrot.slane %v2554_v48, %v7620_v61 }
 0xc30   :  { %2713 = vmatprep.subr.bf16.mxu1 %v6511_v46  ;;  %6186 = vmatprep.subr.bf16.mxu0 %v6513_v58 }
 0xc33   :  { %2714 = vmatpush1.bf16.msra.mxu1 %v6509_v44  ;;  %6187 = vmatpush3.bf16.msra.mxu0 %v6513_v58 }
 0xc34   :  { %6188 = vmatprep.subr.bf16.mxu0 %v6514_v1 }
 0xc37   :  { %6189 = vmatpush3.bf16.msra.mxu0 %v6514_v1 }
 0xce8   :  { %v5864_v29 = vpop.f32.mrb[36].mxu1 }
 0xce9   :  { %v5892_v50 = vpop.f32.mrb[32].mxu0  ;;  %v5865_v52 = vpop.f32.mrb[37].mxu1 }
 0xcea   :  { %v5866_v53 = vadd.f32 %v5865_v52, %v5864_v29  ;;  %v5893_v57 = vpop.f32.mrb[33].mxu0  ;;  %v5867_v30 = vpop.f32.mrb[38].mxu1 }
 0xceb   :  { %v5894_v55 = vadd.f32 %v5893_v57, %v5892_v50  ;;  %v5895_v41 = vpop.f32.mrb[34].mxu0  ;;  %v5868_v56 = vpop.f32.mrb[39].mxu1  ;;  %v2567_v57 = vrot.slane %v2554_v48, %v7626_v0 }
 0xcec   :  { %v2432_v43 = vadd.f32 %v5866_v53, %v5556_v39  ;;  %v5869_v47 = vadd.f32 %v5868_v56, %v5867_v30  ;;  %v5896_v21 = vpop.f32.mrb[35].mxu0 }
 0xced   :  { %v5897_v38 = vadd.f32 %v5896_v21, %v5895_v41 }
 0xcee   :  { %v2481_v49 = vadd.f32 %v5894_v55, %v2432_v43  ;;  %v2435_v24 = vadd.f32 %v5869_v47, %v5556_v39 }
 0xcf0   :  { %v7955_v18 = vadd.f32 %v2481_v49, %v7838_v27  ;;  %v2484_v23 = vadd.f32 %v5897_v38, %v2435_v24 }
 0xcf2   :  { %v2505_v35 = vmul.f32 %v5589_v4, %v7955_v18  ;;  %v7959_v33 = vadd.f32 %v2484_v23, %v7844_v59 }
 0xcf4   :  { %v2506_v11 = vmul.f32 %v5589_v4, %v7959_v33  ;;  %v2514_v8 = vadd.f32 %v5590_v5, %v2505_v35 }
 0xcf6   :  { %v2515_v25 = vadd.f32 %v5590_v5, %v2506_v11 }
 0xcf8   :  { %v2518_v9 = vpack.c.bf16 %v2515_v25, %v2514_v8 }
 0xcfa   :  { %2732 = vmatmul.mubr.bf16.vlgmr.msra.gmra.mrb[44].mxu1 %v2518_v9  ;;  %6190 = vmatprep.mubr.bf16.mxu0 %v2518_v9 }
 0xcfb   :  { %2741 = vmatprep.mubr.bf16.mxu1 %v7278_v34 }
 0xcfc   :  { %v5870_v10 = vpop.f32.mrb[40].mxu1 }
 0xcfd   :  { %v5898_v17 = vpop.f32.mrb[36].mxu0  ;;  %v5871_v27 = vpop.f32.mrb[41].mxu1 }
 0xcfe   :  { %v5872_v12 = vadd.f32 %v5871_v27, %v5870_v10  ;;  %v5899_v13 = vpop.f32.mrb[37].mxu0  ;;  %v5873_v14 = vpop.f32.mrb[42].mxu1 }
 0xcff   :  { %v5900_v15 = vadd.f32 %v5899_v13, %v5898_v17  ;;  %v5901_v16 = vpop.f32.mrb[38].mxu0  ;;  %v5874_v59 = vpop.f32.mrb[43].mxu1 }
 0xd00   :  { %v2440_v19 = vadd.f32 %v5872_v12, %v5556_v39  ;;  %v5875_v26 = vadd.f32 %v5874_v59, %v5873_v14  ;;  %v5902_v28 = vpop.f32.mrb[39].mxu0 }
 0xd01   :  { %v5903_v31 = vadd.f32 %v5902_v28, %v5901_v16 }
 0xd02   :  { %v2489_v22 = vadd.f32 %v5900_v15, %v2440_v19  ;;  %v2443_v36 = vadd.f32 %v5875_v26, %v5556_v39 }
 0xd04   :  { %v7964_v40 = vadd.f32 %v2489_v22, %v7849_v32  ;;  %v2492_v6 = vadd.f32 %v5903_v31, %v2443_v36  ;;  %v2563_v32 = vrot.slane %v2554_v48, %v7623_v63  ;;  %v8033_v48 = vld [vmem:[#allocation9 + $0x10] sm:$0xff] }
 0xd06   :  { %v2507_v62 = vmul.f32 %v5589_v4, %v7964_v40  ;;  %v7968_v45 = vadd.f32 %v2492_v6, %v7846_v3 }
 0xd08   :  { %v2508_v7 = vmul.f32 %v5589_v4, %v7968_v45  ;;  %v2516_v2 = vadd.f32 %v5590_v5, %v2507_v62 }
 0xd0a   :  { %v2517_v51 = vadd.f32 %v5590_v5, %v2508_v7  ;;  %v8030_v7 = vld [vmem:[#allocation9] sm:$0xff] }
 0xd0c   :  { %v2519_v54 = vpack.c.bf16 %v2517_v51, %v2516_v2 }
 0xd0e   :  { %2742 = vmatmul.mubr.bf16.gmra.mrb[48].mxu1 %v2519_v54  ;;  %6191 = vmatmul.mubr.bf16.vlgmr.msra.gmra.mrb[40].mxu0 %v2519_v54 }
 0xdcd   :  { %v2733_v46 = vpop.f32.mrb[44].mxu1 }
 0xdce   :  { %v2735_v37 = vpop.f32.mrb[45].mxu1  ;;  %v2734_v58 = vadd.f32 %v2733_v46, %v2559_v42  ;;  %v8036_v46 = vld [vmem:[#allocation9 + $0x8] sm:$0xff] }
 0xdcf   :  { %v2737_v44 = vpop.f32.mrb[46].mxu1  ;;  %v2736_v3 = vadd.f32 %v2735_v37, %v2563_v32 }
 0xdd0   :  { %v2738_v1 = vadd.f32 %v2737_v44, %v2559_v42  ;;  %v2739_v29 = vpop.f32.mrb[47].mxu1 }
 0xdd1   :  { %v2740_v50 = vadd.f32 %v2739_v29, %v2563_v32 }
 0xdd2   :  { %v7973_v39 = vpack.c.bf16 %v2738_v1, %v2734_v58  ;;  %v8041_v58 = vld [vmem:[#allocation9 + $0x18] sm:$0xff] }
 0xdd3   :  { %v7975_v52 = vpack.c.bf16 %v2740_v50, %v2736_v3 }
 0xdd4   :  { %2978 = vrot.lane.b32.xlu0 %v7973_v39, %s7279_s25  ;;  %6198 = vmatprep.mubr.msk.bf16.mxu1 %vm646_vm1, %v7973_v39 }
 0xdd5   :  { %2984 = vrot.lane.b32.xlu1 %v7975_v52, %s7279_s25  ;;  %6322 = vmatprep.subr.msk.bf16.mxu1 %vm646_vm1, %v7975_v52  ;;  %v2814_v53 = vsel %vm646_vm1, %v7975_v52, 0 }
 0xdd6   :  { %6195 = vmatpush3.bf16.xpose.msra.mxu1 %v2814_v53 }
 0xdd8   :  { %3302 = vrot.lane.b32.xlu0 %v7975_v52, %s8630_s24 }
 0xddc   :  { %3298 = vrot.lane.b32.xlu0 %v7973_v39, %s8630_s24 }
 0xde1   :  { %v2743_v30 = vpop.f32.mrb[48].mxu1  ;;  %v6192_v55 = vpop.f32.mrb[40].mxu0 }
 0xde2   :  { %v2745_v41 = vpop.f32.mrb[49].mxu1  ;;  %v2786_v56 = vpop.f32.mrb[41].mxu0  ;;  %v2744_v21 = vadd.f32 %v2743_v30, %v2559_v42  ;;  %v2795_v38 = vadd.f32 %v6192_v55, %v2567_v57 }
 0xde3   :  { %v2747_v43 = vpop.f32.mrb[50].mxu1  ;;  %v6193_v47 = vpop.f32.mrb[42].mxu0  ;;  %v2746_v35 = vadd.f32 %v2745_v41, %v2563_v32  ;;  %v2787_v5 = vadd.f32 %v2786_v56, %v2567_v57 }
 0xde4   :  { %v2748_v49 = vadd.f32 %v2747_v43, %v2559_v42  ;;  %v2798_v24 = vadd.f32 %v6193_v47, %v2567_v57  ;;  %v2749_v4 = vpop.f32.mrb[51].mxu1  ;;  %v2789_v23 = vpop.f32.mrb[43].mxu0 }
 0xde5   :  { %v2750_v11 = vadd.f32 %v2749_v4, %v2563_v32  ;;  %v2790_v8 = vadd.f32 %v2789_v23, %v2567_v57 }
 0xde6   :  { %v7992_v25 = vpack.c.bf16 %v2748_v49, %v2744_v21  ;;  %v7994_v9 = vpack.c.bf16 %v2798_v24, %v2795_v38 }
 0xde7   :  { %v7996_v10 = vpack.c.bf16 %v2750_v11, %v2746_v35  ;;  %v7998_v17 = vpack.c.bf16 %v2790_v8, %v2787_v5 }
 0xde9   :  { %6202 = vmatprep.subr.bf16.mxu0 %v7998_v17  ;;  %2986 = vrot.lane.b32.xlu1 %v7996_v10, %s7279_s25  ;;  %v2817_v27 = vsel %vm646_vm1, %v7996_v10, 0 }
 0xdea   :  { %6323 = vmatprep.subr.msk.bf16.mxu1 %vm646_vm1, %v7996_v10  ;;  %6203 = vmatpush3.bf16.msra.mxu0 %v7998_v17 }
 0xdeb   :  { %6197 = vmatpush3.bf16.xpose.msra.mxu1 %v2817_v27  ;;  %6204 = vmatprep.subr.bf16.mxu0 %v7994_v9 }
 0xded   :  { %2980 = vrot.lane.b32.xlu1 %v7992_v25, %s7279_s25 }
 0xdee   :  { %6205 = vmatpush3.bf16.msra.mxu0 %v7994_v9 }
 0xdf1   :  { %3304 = vrot.lane.b32.xlu1 %v7996_v10, %s8630_s24 }
 0xdf2   :  { %6199 = vmatmul.mubr.msk.bf16.vlgmr.msra.gmra.mrb[52].mxu1 %vm646_vm1, %v7992_v25 }
 0xdf5   :  { %3300 = vrot.lane.b32.xlu1 %v7992_v25, %s8630_s24 }
 0xe46   :  { %v2979_v12 = vpop.permute.xlu0 %2978 }
 0xe47   :  { %v2985_v13 = vpop.permute.xlu1 %2984  ;;  %6214 = vmatprep.mubr.msk.bf16.mxu1 %vm646_vm1, %v2979_v12 }
 0xe48   :  { %v2995_v14 = vsel %vm646_vm1, %v2985_v13, 0  ;;  %6324 = vmatprep.subr.msk.bf16.mxu1 %vm646_vm1, %v2985_v13 }
 0xe49   :  { %6211 = vmatpush3.bf16.xpose.msra.mxu1 %v2995_v14 }
 0xe4a   :  { %v3303_v59 = vpop.permute.xlu0 %3302 }
 0xe4b   :  { %v3313_v26 = vsel %vm646_vm1, %v3303_v59, 0 }
 0xe4e   :  { %v3299_v28 = vpop.permute.xlu0 %3298 }
 0xe5b   :  { %v2987_v15 = vpop.permute.xlu1 %2986 }
 0xe5c   :  { %v2998_v16 = vsel %vm646_vm1, %v2987_v15, 0  ;;  %6325 = vmatprep.subr.msk.bf16.mxu1 %vm646_vm1, %v2987_v15 }
 0xe5d   :  { %6213 = vmatpush3.bf16.xpose.msra.mxu1 %v2998_v16 }
 0xe5e   :  { %6326 = vmatprep.subr.msk.bf16.mxu1 %vm646_vm1, %v3303_v59 }
 0xe5f   :  { %v2981_v19 = vpop.permute.xlu1 %2980 }
 0xe63   :  { %v3305_v31 = vpop.permute.xlu1 %3304 }
 0xe64   :  { %6215 = vmatmul.mubr.msk.bf16.vlgmr.msra.gmra.mrb[56].mxu1 %vm646_vm1, %v2981_v19  ;;  %v3316_v22 = vsel %vm646_vm1, %v3305_v31, 0 }
 0xe65   :  { %6243 = vmatpush3.bf16.xpose.msra.mxu1 %v3313_v26  ;;  %6246 = vmatprep.mubr.msk.bf16.mxu1 %vm646_vm1, %v3299_v28 }
 0xe66   :  { %6327 = vmatprep.subr.msk.bf16.mxu1 %vm646_vm1, %v3305_v31 }
 0xe67   :  { %v3301_v36 = vpop.permute.xlu1 %3300 }
 0xe6d   :  { %6245 = vmatpush3.bf16.xpose.msra.mxu1 %v3316_v22 }
 0xe74   :  { %6247 = vmatmul.mubr.msk.bf16.vlgmr.msra.gmra.mrb[60].mxu1 %vm646_vm1, %v3301_v36 }
 0xec5   :  { %v6200_v6 = vpop.f32.mrb[52].mxu1 }
 0xec6   :  { %v2853_v62 = vpop.f32.mrb[53].mxu1  ;;  %v2862_v42 = vadd.f32 %v8033_v48, %v6200_v6 }
 0xec7   :  { %v2854_v2 = vadd.f32 %v8030_v7, %v2853_v62  ;;  %v6201_v51 = vpop.f32.mrb[54].mxu1 }
 0xec8   :  { %v2856_v54 = vpop.f32.mrb[55].mxu1  ;;  %v2865_v1 = vadd.f32 %v8041_v58, %v6201_v51  ;;  %v2874_v29 = vsel %vm646_vm1, %v2862_v42, -inf }
 0xec9   :  { %v2857_v32 = vadd.f32 %v8036_v46, %v2856_v54  ;;  %v2868_v37 = vsel %vm646_vm1, %v2854_v2, -inf }
 0xeca   :  { %2869 = vmax.xlane.f32.xlu0 %v2868_v37  ;;  %v2877_v3 = vsel %vm646_vm1, %v2865_v1, -inf }
 0xecb   :  { %v2871_v44 = vsel %vm646_vm1, %v2857_v32, -inf }
 0xecc   :  { %2872 = vmax.xlane.f32.xlu1 %v2871_v44 }
 0xece   :  { %2875 = vmax.xlane.f32.xlu0 %v2874_v29 }
 0xed2   :  { %2878 = vmax.xlane.f32.xlu0 %v2877_v3 }
 0xf37   :  { %v6216_v50 = vpop.f32.mrb[56].mxu1 }
 0xf38   :  { %v3034_v53 = vpop.f32.mrb[57].mxu1  ;;  %v3043_v41 = vadd.f32 %v8033_v48, %v6216_v50 }
 0xf39   :  { %v3035_v57 = vadd.f32 %v8030_v7, %v3034_v53  ;;  %v6217_v30 = vpop.f32.mrb[58].mxu1 }
 0xf3a   :  { %v3037_v55 = vpop.f32.mrb[59].mxu1  ;;  %v3046_v47 = vadd.f32 %v8041_v58, %v6217_v30  ;;  %v3055_v38 = vsel %vm646_vm1, %v3043_v41, -inf }
 0xf3b   :  { %v3038_v56 = vadd.f32 %v8036_v46, %v3037_v55  ;;  %v3049_v43 = vsel %vm646_vm1, %v3035_v57, -inf }
 0xf3c   :  { %3050 = vmax.xlane.f32.xlu0 %v3049_v43  ;;  %v3058_v49 = vsel %vm646_vm1, %v3046_v47, -inf }
 0xf3d   :  { %v3052_v21 = vsel %vm646_vm1, %v3038_v56, -inf }
 0xf3e   :  { %3053 = vmax.xlane.f32.xlu1 %v3052_v21 }
 0xf40   :  { %3056 = vmax.xlane.f32.xlu0 %v3055_v38 }
 0xf42   :  { %3059 = vmax.xlane.f32.xlu1 %v3058_v49 }
 0xf47   :  { %v8054_v24 = vpop.f32.mrb[60].mxu1 }
 0xf48   :  { %v8056_v4 = vpop.f32.mrb[61].mxu1 }
 0xf49   :  { %v8058_v23 = vpop.f32.mrb[62].mxu1 }
 0xf4a   :  { %v8060_v35 = vpop.f32.mrb[63].mxu1 }
 0xf57   :  { %v2870_v5 = vpop.xlane.xlu0 %2869 }
 0xf58   :  { %v2880_v11 = vsub.f32 %v2854_v2, %v2870_v5 }
 0xf59   :  { %v2873_v8 = vpop.xlane.xlu1 %2872 }
 0xf5a   :  { %v2884_v13 = vmul.f32 1.442695, %v2880_v11  ;;  %v2881_v14 = vsub.f32 %v2857_v32, %v2873_v8 }
 0xf5b   :  { %v2876_v27 = vpop.xlane.xlu0 %2875 }
 0xf5c   :  { %v2882_v12 = vsub.f32 %v2862_v42, %v2876_v27  ;;  %v2886_v19 = vmul.f32 1.442695, %v2881_v14 }
 0xf5e   :  { %v2888_v15 = vmul.f32 1.442695, %v2882_v12 }
 0xf5f   :  { %v2879_v16 = vpop.xlane.xlu0 %2878 }
 0xf60   :  { %6771 = vpow2.f32 %v2888_v15  ;;  %v2883_v59 = vsub.f32 %v2865_v1, %v2879_v16 }
 0xf61   :  { %6773 = vpow2.f32 %v2884_v13 }
 0xf62   :  { %v2890_v26 = vmul.f32 1.442695, %v2883_v59 }
 0xf64   :  { %6775 = vpow2.f32 %v2890_v26 }
 0xf65   :  { %6777 = vpow2.f32 %v2886_v19 }
 0xf6a   :  { %v6772_v28 = vpop.eup %6771 }
 0xf6b   :  { %v2898_v31 = vsel %vm646_vm1, %v6772_v28, 0.0  ;;  %v6774_v22 = vpop.eup %6773 }
 0xf6c   :  { %2899 = vadd.xlane.f32.xlu0 %v2898_v31  ;;  %v2892_v6 = vsel %vm646_vm1, %v6774_v22, 0.0 }
 0xf6e   :  { %v6776_v36 = vpop.eup %6775 }
 0xf6f   :  { %v2901_v62 = vsel %vm646_vm1, %v6776_v36, 0.0  ;;  %v6778_v2 = vpop.eup %6777 }
 0xf70   :  { %2893 = vadd.xlane.f32.xlu0 %v2892_v6  ;;  %2902 = vadd.xlane.f32.xlu1 %v2901_v62  ;;  %v2895_v51 = vsel %vm646_vm1, %v6778_v2, 0.0 }
 0xf74   :  { %2896 = vadd.xlane.f32.xlu1 %v2895_v51 }
 0xfc9   :  { %v3051_v54 = vpop.xlane.xlu0 %3050 }
 0xfca   :  { %v3061_v42 = vsub.f32 %v3035_v57, %v3051_v54 }
 0xfcb   :  { %v3054_v32 = vpop.xlane.xlu1 %3053 }
 0xfcc   :  { %v3062_v44 = vsub.f32 %v3038_v56, %v3054_v32  ;;  %v3065_v29 = vmul.f32 1.442695, %v3061_v42 }
 0xfcd   :  { %v3057_v37 = vpop.xlane.xlu0 %3056 }
 0xfce   :  { %v3063_v1 = vsub.f32 %v3043_v41, %v3057_v37  ;;  %v3067_v30 = vmul.f32 1.442695, %v3062_v44 }
 0xfcf   :  { %v3060_v3 = vpop.xlane.xlu1 %3059 }
 0xfd0   :  { %v3069_v50 = vmul.f32 1.442695, %v3063_v1  ;;  %v3064_v53 = vsub.f32 %v3046_v47, %v3060_v3 }
 0xfd2   :  { %6779 = vpow2.f32 %v3069_v50  ;;  %v3071_v55 = vmul.f32 1.442695, %v3064_v53 }
 0xfd3   :  { %6781 = vpow2.f32 %v3065_v29 }
 0xfd4   :  { %6783 = vpow2.f32 %v3071_v55 }
 0xfd5   :  { %6785 = vpow2.f32 %v3067_v30 }
 0xfdc   :  { %v8066_v43 = vpop.eup %6779 }
 0xfdd   :  { %v8068_v21 = vpop.eup %6781  ;;  %v3079_v57 = vsel %vm646_vm1, %v8066_v43, 0.0 }
 0xfde   :  { %v8072_v38 = vpop.eup %6783  ;;  %3080 = vadd.xlane.f32.xlu0 %v3079_v57  ;;  %v3073_v47 = vsel %vm646_vm1, %v8068_v21, 0.0 }
 0xfdf   :  { %v3082_v41 = vsel %vm646_vm1, %v8072_v38, 0.0  ;;  %v8076_v56 = vpop.eup %6785 }
 0xfe0   :  { %3083 = vadd.xlane.f32.xlu1 %v3082_v41  ;;  %v3076_v49 = vsel %vm646_vm1, %v8076_v56, 0.0 }
 0xfe2   :  { %3074 = vadd.xlane.f32.xlu0 %v3073_v47 }
 0xfe4   :  { %3077 = vadd.xlane.f32.xlu1 %v3076_v49 }
 0xff5   :  { %3099 = vrot.lane.b32.xlu1 %v7994_v9, %s7279_s25 }
 0xff8   :  { %3097 = vrot.lane.b32.xlu0 %v7998_v17, %s7279_s25 }
 0xff9   :  { %v2900_v5 = vpop.xlane.xlu0 %2899  ;;  %3555 = vrot.lane.b32.xlu1 %v7975_v52, %s7270_s27 }
 0xffc   :  { %3551 = vrot.lane.b32.xlu0 %v7973_v39, %s7270_s27 }
 0xffd   :  { %v2903_v11 = vpop.xlane.xlu1 %2902  ;;  %v2894_v8 = vpop.xlane.xlu0 %2893  ;;  %3557 = vrot.lane.b32.xlu1 %v7996_v10, %s7270_s27  ;;  %v3353_v10 = vadd.f32 %v8030_v7, %v8056_v4 }
 0xffe   :  { %6787 = vrcp.f32 %v2903_v11 }
 0xfff   :  { %6789 = vrcp.f32 %v2894_v8  ;;  %v3367_v31 = vsel %vm646_vm1, %v3353_v10, -inf }
0x1000   :  { %6791 = vrcp.f32 %v2900_v5 }
0x1001   :  { %v2897_v27 = vpop.xlane.xlu1 %2896  ;;  %3553 = vrot.lane.b32.xlu1 %v7992_v25, %s7270_s27  ;;  %v3361_v25 = vadd.f32 %v8033_v48, %v8054_v24 }
0x1002   :  { %6793 = vrcp.f32 %v2897_v27 }
0x1008   :  { %v6788_v12 = vpop.eup %6787 }
0x1009   :  { %v6790_v13 = vpop.eup %6789  ;;  %v2911_v15 = vmul.f32 %v6788_v12, %v6776_v36  ;;  %v3356_v36 = vadd.f32 %v8036_v46, %v8060_v35 }
0x100a   :  { %v6792_v14 = vpop.eup %6791  ;;  %v2908_v16 = vmul.f32 %v6790_v13, %v6774_v22  ;;  %v3364_v22 = vadd.f32 %v8041_v58, %v8058_v23 }
0x100b   :  { %v2910_v59 = vmul.f32 %v6792_v14, %v6772_v28  ;;  %v3373_v28 = vsel %vm646_vm1, %v3361_v25, -inf  ;;  %v3370_v4 = vsel %vm646_vm1, %v3356_v36, -inf }
0x100c   :  { %v6794_v52 = vpop.eup %6793  ;;  %v3376_v6 = vsel %vm646_vm1, %v3364_v22, -inf }
0x100d   :  { %v2909_v39 = vmul.f32 %v6794_v52, %v6778_v2  ;;  %v2913_v26 = vpack.c.bf16 %v2911_v15, %v2910_v59 }
0x100f   :  { %v2912_v19 = vpack.c.bf16 %v2909_v39, %v2908_v16 }
0x1011   :  { %6206 = vmatprep.mubr.msk.bf16.mxu0 %vm646_vm1, %v2912_v19 }
0x1012   :  { %6207 = vmatmul.mubr.msk.bf16.vlgmr.msra.gmra.mrb[44].mxu0 %vm646_vm1, %v2913_v26 }
0x101b   :  { %3368 = vmax.xlane.f32.xlu0 %v3367_v31  ;;  %v6515_v31 = vld [vmem:[%s8575_s9 + $0x50] sm:$0xff]  }
0x101f   :  { %3374 = vmax.xlane.f32.xlu0 %v3373_v28  ;;  %v6517_v28 = vld [vmem:[%s8575_s9 + $0x40] sm:$0xff]  }
0x1023   :  { %3377 = vmax.xlane.f32.xlu0 %v3376_v6 }
0x1025   :  { %3371 = vmax.xlane.f32.xlu1 %v3370_v4 }
0x106b   :  { %v3081_v62 = vpop.xlane.xlu0 %3080 }
0x106d   :  { %v3084_v24 = vpop.xlane.xlu1 %3083 }
0x106e   :  { %6795 = vrcp.f32 %v3084_v24 }
0x106f   :  { %v3075_v2 = vpop.xlane.xlu0 %3074 }
0x1070   :  { %6797 = vrcp.f32 %v3075_v2 }
0x1071   :  { %6799 = vrcp.f32 %v3081_v62  ;;  %v3078_v51 = vpop.xlane.xlu1 %3077 }
0x1072   :  { %6801 = vrcp.f32 %v3078_v51 }
0x1073   :  { %v3098_v23 = vpop.permute.xlu0 %3097 }
0x1074   :  { %6218 = vmatprep.subr.bf16.mxu0 %v3098_v23 }
0x1075   :  { %v3100_v54 = vpop.permute.xlu1 %3099  ;;  %6219 = vmatpush3.bf16.msra.mxu0 %v3098_v23 }
0x1076   :  { %6220 = vmatprep.subr.bf16.mxu0 %v3100_v54 }
0x1077   :  { %v3552_v35 = vpop.permute.xlu0 %3551 }
0x1078   :  { %6270 = vmatprep.mubr.msk.bf16.mxu1 %vm646_vm1, %v3552_v35  ;;  %v6796_v42 = vpop.eup %6795 }
0x1079   :  { %v3556_v32 = vpop.permute.xlu1 %3555  ;;  %6221 = vmatpush3.bf16.msra.mxu0 %v3100_v54  ;;  %v3092_v3 = vmul.f32 %v6796_v42, %v8072_v38 }
0x107a   :  { %v6798_v37 = vpop.eup %6797  ;;  %v3566_v44 = vsel %vm646_vm1, %v3556_v32, 0  ;;  %6328 = vmatprep.subr.msk.bf16.mxu1 %vm646_vm1, %v3556_v32  ;;  %6226 = vmatprep.subr.bf16.mxu0 %v6515_v31 }
0x107b   :  { %v6800_v1 = vpop.eup %6799  ;;  %6267 = vmatpush3.bf16.xpose.msra.mxu1 %v3566_v44  ;;  %v3089_v53 = vmul.f32 %v6798_v37, %v8068_v21 }
0x107c   :  { %v6802_v29 = vpop.eup %6801  ;;  %v3091_v55 = vmul.f32 %v6800_v1, %v8066_v43 }
0x107d   :  { %v3558_v50 = vpop.permute.xlu1 %3557  ;;  %v3090_v30 = vmul.f32 %v6802_v29, %v8076_v56 }
0x107e   :  { %6329 = vmatprep.subr.msk.bf16.mxu1 %vm646_vm1, %v3558_v50  ;;  %v3094_v41 = vpack.c.bf16 %v3092_v3, %v3091_v55  ;;  %v3569_v47 = vsel %vm646_vm1, %v3558_v50, 0  ;;  %v6518_v3 = vld [vmem:[%s8575_s9 + $0x48] sm:$0xff]  }
0x107f   :  { %v3093_v57 = vpack.c.bf16 %v3090_v30, %v3089_v53 }
0x1081   :  { %6222 = vmatprep.mubr.msk.bf16.mxu0 %vm646_vm1, %v3093_v57  ;;  %v3554_v49 = vpop.permute.xlu1 %3553 }
0x1082   :  { %6223 = vmatmul.mubr.msk.bf16.vlgmr.msra.gmra.mrb[48].mxu0 %vm646_vm1, %v3094_v41 }
0x1083   :  { %6269 = vmatpush3.bf16.xpose.msra.mxu1 %v3569_v47  ;;  %6227 = vmatpush3.bf16.msra.mxu0 %v6515_v31 }
0x108a   :  { %6271 = vmatmul.mubr.msk.bf16.vlgmr.msra.gmra.mrb[64].mxu1 %vm646_vm1, %v3554_v49 }
0x108b   :  { %4089 = vmatprep.mubr.bf16.mxu1 %v7278_v34 }
0x10a8   :  { %v3369_v21 = vpop.xlane.xlu0 %3368 }
0x10a9   :  { %v3379_v38 = vsub.f32 %v3353_v10, %v3369_v21 }
0x10ab   :  { %v3383_v5 = vmul.f32 1.442695, %v3379_v38 }
0x10ac   :  { %v3375_v56 = vpop.xlane.xlu0 %3374 }
0x10ad   :  { %v3381_v43 = vsub.f32 %v3361_v25, %v3375_v56 }
0x10af   :  { %v3387_v11 = vmul.f32 1.442695, %v3381_v43 }
0x10b0   :  { %v3378_v8 = vpop.xlane.xlu0 %3377 }
0x10b1   :  { %6803 = vpow2.f32 %v3387_v11  ;;  %v3382_v27 = vsub.f32 %v3364_v22, %v3378_v8  ;;  %v6516_v22 = vld [vmem:[%s8575_s9 + $0x58] sm:$0xff]  }
0x10b2   :  { %v3372_v12 = vpop.xlane.xlu1 %3371  ;;  %6805 = vpow2.f32 %v3383_v5  ;;  %6228 = vmatprep.subr.bf16.mxu0 %v6516_v22 }
0x10b3   :  { %v3389_v13 = vmul.f32 1.442695, %v3382_v27  ;;  %v3380_v14 = vsub.f32 %v3356_v36, %v3372_v12  ;;  %6229 = vmatpush3.bf16.msra.mxu0 %v6516_v22 }
0x10b4   :  { %6234 = vmatprep.subr.bf16.mxu0 %v6517_v28 }
0x10b5   :  { %6807 = vpow2.f32 %v3389_v13  ;;  %v3385_v52 = vmul.f32 1.442695, %v3380_v14 }
0x10b7   :  { %6809 = vpow2.f32 %v3385_v52 }
0x10bb   :  { %v8121_v15 = vpop.eup %6803 }
0x10bc   :  { %v3397_v16 = vsel %vm646_vm1, %v8121_v15, 0.0  ;;  %v8125_v39 = vpop.eup %6805 }
0x10bd   :  { %3398 = vadd.xlane.f32.xlu0 %v3397_v16  ;;  %v3391_v19 = vsel %vm646_vm1, %v8125_v39, 0.0  ;;  %v6519_v16 = vld [vmem:[%s8575_s9 + $0x60] sm:$0xff]  }
0x10bf   :  { %v8127_v59 = vpop.eup %6807 }
0x10c0   :  { %v3400_v26 = vsel %vm646_vm1, %v8127_v59, 0.0 }
0x10c1   :  { %v6810_v10 = vpop.eup %6809  ;;  %3392 = vadd.xlane.f32.xlu0 %v3391_v19  ;;  %3401 = vadd.xlane.f32.xlu1 %v3400_v26 }
0x10c2   :  { %v3394_v25 = vsel %vm646_vm1, %v6810_v10, 0.0 }
0x10c5   :  { %3395 = vadd.xlane.f32.xlu1 %v3394_v25 }
0x10d6   :  { %3415 = vrot.lane.b32.xlu1 %v7994_v9, %s8630_s24 }
0x10d7   :  { %3413 = vrot.lane.b32.xlu0 %v7998_v17, %s8630_s24 }
0x10e5   :  { %v6208_v36 = vpop.f32.mrb[44].mxu0 }
0x10e6   :  { %v2954_v6 = vpop.f32.mrb[45].mxu0 }
0x10e7   :  { %v6209_v4 = vpop.f32.mrb[46].mxu0 }
0x10e8   :  { %v2970_v62 = vpack.c.bf16 %v6209_v4, %v6208_v36  ;;  %v2957_v24 = vpop.f32.mrb[47].mxu0 }
0x10e9   :  { %v2969_v2 = vpack.c.bf16 %v2957_v24, %v2954_v6 }
0x114a   :  { %v3399_v23 = vpop.xlane.xlu0 %3398 }
0x114e   :  { %v3402_v51 = vpop.xlane.xlu1 %3401  ;;  %v3393_v35 = vpop.xlane.xlu0 %3392 }
0x1152   :  { %v3396_v54 = vpop.xlane.xlu1 %3395  ;;  %v3414_v47 = vpop.permute.xlu0 %3413 }
0x1153   :  { %6811 = vrcp.f32 %v3396_v54 }
0x1154   :  { %6813 = vrcp.f32 %v3393_v35 }
0x1155   :  { %v6224_v42 = vpop.f32.mrb[48].mxu0  ;;  %6815 = vrcp.f32 %v3402_v51 }
0x1156   :  { %v3143_v32 = vpop.f32.mrb[49].mxu0  ;;  %6817 = vrcp.f32 %v3399_v23  ;;  %v3416_v13 = vpop.permute.xlu1 %3415 }
0x1157   :  { %v6225_v37 = vpop.f32.mrb[50].mxu0 }
0x1158   :  { %v3159_v44 = vpack.c.bf16 %v6225_v37, %v6224_v42  ;;  %v3146_v1 = vpop.f32.mrb[51].mxu0 }
0x1159   :  { %v3158_v29 = vpack.c.bf16 %v3146_v1, %v3143_v32 }
0x115b   :  { %6230 = vmatprep.mubr.msk.bf16.mxu0 %vm646_vm1, %v3158_v29 }
0x115c   :  { %6231 = vmatmul.mubr.msk.bf16.vlgmr.msra.gmra.mrb[52].mxu0 %vm646_vm1, %v3159_v44 }
0x115d   :  { %6235 = vmatpush3.bf16.msra.mxu0 %v6517_v28  ;;  %6238 = vmatprep.mubr.msk.bf16.mxu0 %vm646_vm1, %v2969_v2  ;;  %v6272_v50 = vpop.f32.mrb[64].mxu1  ;;  %v6812_v57 = vpop.eup %6811 }
0x115e   :  { %v3605_v53 = vpop.f32.mrb[65].mxu1  ;;  %6236 = vmatprep.subr.bf16.mxu0 %v6518_v3  ;;  %v6814_v56 = vpop.eup %6813  ;;  %v3614_v43 = vadd.f32 %v8033_v48, %v6272_v50  ;;  %v3408_v11 = vmul.f32 %v6812_v57, %v6810_v10  ;;  %v6521_v57 = vld [vmem:[%s8575_s9 + $0x70] sm:$0xff]  }
0x115f   :  { %v3606_v30 = vadd.f32 %v8030_v7, %v3605_v53  ;;  %v6273_v55 = vpop.f32.mrb[66].mxu1  ;;  %v3407_v8 = vmul.f32 %v6814_v56, %v8125_v39  ;;  %v6520_v39 = vld [vmem:[%s8575_s9 + $0x68] sm:$0xff]  }
0x1160   :  { %v3608_v41 = vpop.f32.mrb[67].mxu1  ;;  %v3617_v49 = vadd.f32 %v8041_v58, %v6273_v55  ;;  %v6816_v58 = vpop.eup %6815  ;;  %v3626_v27 = vsel %vm646_vm1, %v3614_v43, -inf }
0x1161   :  { %6237 = vmatpush3.bf16.msra.mxu0 %v6518_v3  ;;  %v3609_v21 = vadd.f32 %v8036_v46, %v3608_v41  ;;  %v3620_v38 = vsel %vm646_vm1, %v3606_v30, -inf  ;;  %v3411_v46 = vpack.c.bf16 %v3408_v11, %v3407_v8  ;;  %v6818_v12 = vpop.eup %6817  ;;  %v3410_v48 = vmul.f32 %v6816_v58, %v8127_v59  ;;  %v6522_v8 = vld [vmem:[%s8575_s9 + $0x78] sm:$0xff]   ;;  %v6523_v58 = vld [vmem:[#allocation18 + $0x100] ss:$16 sps:$4 sm:$0xff]  }
0x1162   :  { %6250 = vmatprep.subr.bf16.mxu0 %v3414_v47  ;;  %3621 = vmax.xlane.f32.xlu1 %v3620_v38  ;;  %v3629_v7 = vsel %vm646_vm1, %v3617_v49, -inf  ;;  %v3409_v14 = vmul.f32 %v6818_v12, %v8121_v15  ;;  %v6531_v12 = vld [vmem:[#allocation18 + $0x124] ss:$16 sps:$4 sm:$0xff]  }
0x1163   :  { %v3623_v5 = vsel %vm646_vm1, %v3609_v21, -inf }
0x1164   :  { %3624 = vmax.xlane.f32.xlu0 %v3623_v5  ;;  %v3412_v52 = vpack.c.bf16 %v3410_v48, %v3409_v14  ;;  %v6537_v48 = vld [vmem:[#allocation18 + $0x144] ss:$16 sps:$4 sm:$0xff]   ;;  %v6535_v14 = vld [vmem:[#allocation18 + $0x140] ss:$16 sps:$4 sm:$0xff]  }
0x1166   :  { %3630 = vmax.xlane.f32.xlu1 %v3629_v7 }
0x1168   :  { %6239 = vmatmul.mubr.msk.bf16.vlgmr.msra.gmra.mrb[52].mxu0 %vm646_vm1, %v2970_v62  ;;  %3627 = vmax.xlane.f32.xlu0 %v3626_v27  ;;  %v6525_v27 = vld [vmem:[#allocation18 + $0x104] ss:$16 sps:$4 sm:$0xff]  }
0x1169   :  { %6251 = vmatpush3.bf16.msra.mxu0 %v3414_v47  ;;  %6254 = vmatprep.mubr.msk.bf16.mxu0 %vm646_vm1, %v3411_v46  ;;  %v6528_v46 = vld [vmem:[#allocation18 + $0x10c] ss:$16 sps:$4 sm:$0xff]  }
0x116a   :  { %6252 = vmatprep.subr.bf16.mxu0 %v3416_v13  ;;  %4057 = vmatprep.subr.bf16.mxu1 %v6525_v27 }
0x116b   :  { %4058 = vmatpush1.bf16.msra.mxu1 %v6523_v58 }
0x116c   :  { %4059 = vmatprep.subr.bf16.mxu1 %v6531_v12 }
0x116d   :  { %6253 = vmatpush3.bf16.msra.mxu0 %v3416_v13  ;;  %v6529_v13 = vld [vmem:[#allocation18 + $0x120] ss:$16 sps:$4 sm:$0xff]  }
0x116e   :  { %6258 = vmatprep.subr.bf16.mxu0 %v6519_v16 }
0x116f   :  { %4060 = vmatpush1.bf16.msra.mxu1 %v6529_v13 }
0x1170   :  { %6255 = vmatmul.mubr.msk.bf16.vlgmr.msra.gmra.mrb[56].mxu0 %vm646_vm1, %v3412_v52  ;;  %4061 = vmatprep.subr.bf16.mxu1 %v6537_v48  ;;  %v6543_v52 = vld [vmem:[#allocation18 + $0x164] ss:$16 sps:$4 sm:$0xff]  }
0x1171   :  { %6259 = vmatpush3.bf16.msra.mxu0 %v6519_v16  ;;  %v6541_v16 = vld [vmem:[#allocation18 + $0x160] ss:$16 sps:$4 sm:$0xff]  }
0x1172   :  { %6260 = vmatprep.subr.bf16.mxu0 %v6520_v39  ;;  %v6571_v48 = vld [vmem:[#allocation20 + $0x140] sm:$0xff]  }
0x1173   :  { %4062 = vmatpush1.bf16.msra.mxu1 %v6535_v14  ;;  %v6572_v14 = vld [vmem:[#allocation20 + $0x1c0] sm:$0xff]  }
0x1174   :  { %4063 = vmatprep.subr.bf16.mxu1 %v6543_v52  ;;  %v6573_v52 = vld [vmem:[#allocation20 + $0x100] sm:$0xff]  }
0x1175   :  { %6261 = vmatpush3.bf16.msra.mxu0 %v6520_v39  ;;  %v6549_v39 = vld [vmem:[#allocation18 + $0x184] ss:$16 sps:$4 sm:$0xff]  }
0x1177   :  { %4064 = vmatpush1.bf16.msra.mxu1 %v6541_v16  ;;  %v6574_v16 = vld [vmem:[#allocation20 + $0x180] sm:$0xff]  }
0x1178   :  { %4065 = vmatprep.subr.bf16.mxu1 %v6549_v39  ;;  %v6575_v39 = vld [vmem:[#allocation20 + $0x148] sm:$0xff]  }
0x11ef   :  { %v3622_v59 = vpop.xlane.xlu1 %3621 }
0x11f0   :  { %v3632_v10 = vsub.f32 %v3606_v30, %v3622_v59  ;;  %v6547_v59 = vld [vmem:[#allocation18 + $0x180] ss:$16 sps:$4 sm:$0xff]  }
0x11f1   :  { %v3625_v19 = vpop.xlane.xlu0 %3624  ;;  %4066 = vmatpush1.bf16.msra.mxu1 %v6547_v59  ;;  %v6576_v59 = vld [vmem:[#allocation20 + $0x1c8] sm:$0xff]  }
0x11f2   :  { %v3633_v26 = vsub.f32 %v3609_v21, %v3625_v19  ;;  %v3636_v6 = vmul.f32 1.442695, %v3632_v10 }
0x11f3   :  { %v3631_v15 = vpop.xlane.xlu1 %3630 }
0x11f4   :  { %v3635_v25 = vsub.f32 %v3617_v49, %v3631_v15  ;;  %v3638_v31 = vmul.f32 1.442695, %v3633_v26 }
0x11f5   :  { %v3628_v22 = vpop.xlane.xlu0 %3627 }
0x11f6   :  { %v3642_v28 = vmul.f32 1.442695, %v3635_v25  ;;  %v3634_v36 = vsub.f32 %v3614_v43, %v3628_v22  ;;  %v6526_v22 = vld [vmem:[#allocation18 + $0x108] ss:$16 sps:$4 sm:$0xff]  }
0x11f8   :  { %6819 = vpow2.f32 %v3642_v28  ;;  %v3640_v4 = vmul.f32 1.442695, %v3634_v36  ;;  %v6534_v28 = vld [vmem:[#allocation18 + $0x12c] ss:$16 sps:$4 sm:$0xff]   ;;  %v6532_v36 = vld [vmem:[#allocation18 + $0x128] ss:$16 sps:$4 sm:$0xff]  }
0x11f9   :  { %6821 = vpow2.f32 %v3638_v31 }
0x11fa   :  { %6823 = vpow2.f32 %v3640_v4  ;;  %v6538_v4 = vld [vmem:[#allocation18 + $0x148] ss:$16 sps:$4 sm:$0xff]  }
0x11fb   :  { %6825 = vpow2.f32 %v3636_v6  ;;  %v6540_v6 = vld [vmem:[#allocation18 + $0x14c] ss:$16 sps:$4 sm:$0xff]  }
0x1202   :  { %v6820_v62 = vpop.eup %6819 }
0x1203   :  { %v6822_v24 = vpop.eup %6821  ;;  %v3653_v2 = vsel %vm646_vm1, %v6820_v62, 0.0 }
0x1204   :  { %v6824_v51 = vpop.eup %6823  ;;  %3654 = vadd.xlane.f32.xlu1 %v3653_v2  ;;  %v3647_v35 = vsel %vm646_vm1, %v6822_v24, 0.0  ;;  %v6552_v2 = vld [vmem:[#allocation18 + $0x18c] ss:$16 sps:$4 sm:$0xff]  }
0x1205   :  { %v3650_v23 = vsel %vm646_vm1, %v6824_v51, 0.0  ;;  %v6826_v54 = vpop.eup %6825 }
0x1206   :  { %3651 = vadd.xlane.f32.xlu0 %v3650_v23  ;;  %v3644_v42 = vsel %vm646_vm1, %v6826_v54, 0.0  ;;  %v6555_v23 = vld [vmem:[#allocation18 + $0x1a4] ss:$16 sps:$4 sm:$0xff]  }
0x1207   :  { %4067 = vmatprep.subr.bf16.mxu1 %v6555_v23  ;;  %v6592_v23 = vld [vmem:[#allocation20 + $0x1e8] sm:$0xff]  }
0x1208   :  { %3648 = vadd.xlane.f32.xlu1 %v3647_v35  ;;  %v6553_v35 = vld [vmem:[#allocation18 + $0x1a0] ss:$16 sps:$4 sm:$0xff]  }
0x1209   :  { %4068 = vmatpush1.bf16.msra.mxu1 %v6553_v35  ;;  %v6594_v35 = vld [vmem:[#allocation20 + $0x1a8] sm:$0xff]  }
0x120a   :  { %3645 = vadd.xlane.f32.xlu0 %v3644_v42  ;;  %v6556_v42 = vld [vmem:[#allocation18 + $0x1a8] ss:$16 sps:$4 sm:$0xff]  }
0x1219   :  { %3668 = vrot.lane.b32.xlu1 %v7994_v9, %s7270_s27 }
0x1220   :  { %3666 = vrot.lane.b32.xlu0 %v7998_v17, %s7270_s27 }
0x1243   :  { %v6256_v32 = vpop.f32.mrb[56].mxu0 }
0x1244   :  { %v3459_v37 = vpop.f32.mrb[57].mxu0 }
0x1245   :  { %v6257_v44 = vpop.f32.mrb[58].mxu0 }
0x1246   :  { %v3475_v1 = vpack.c.bf16 %v6257_v44, %v6256_v32  ;;  %v3462_v29 = vpop.f32.mrb[59].mxu0  ;;  %v6561_v32 = vld [vmem:[#allocation18 + $0x1c4] ss:$16 sps:$4 sm:$0xff]   ;;  %v6559_v44 = vld [vmem:[#allocation18 + $0x1c0] ss:$16 sps:$4 sm:$0xff]  }
0x1247   :  { %v3474_v3 = vpack.c.bf16 %v3462_v29, %v3459_v37  ;;  %v6564_v37 = vld [vmem:[#allocation18 + $0x1cc] ss:$16 sps:$4 sm:$0xff]   ;;  %4069 = vmatprep.subr.bf16.mxu1 %v6561_v32  ;;  %v6565_v29 = vld [vmem:[#allocation18 + $0x1e0] ss:$16 sps:$4 sm:$0xff]  }
0x1248   :  { %4070 = vmatpush1.bf16.msra.mxu1 %v6559_v44  ;;  %v6596_v32 = vld [vmem:[#allocation20 + $0x1f0] sm:$0xff]  }
0x1249   :  { %6262 = vmatprep.mubr.msk.bf16.mxu0 %vm646_vm1, %v3474_v3  ;;  %v6567_v3 = vld [vmem:[#allocation18 + $0x1e4] ss:$16 sps:$4 sm:$0xff]  }
0x124a   :  { %6263 = vmatmul.mubr.msk.bf16.vlgmr.msra.gmra.mrb[52].mxu0 %vm646_vm1, %v3475_v1  ;;  %v6562_v1 = vld [vmem:[#allocation18 + $0x1c8] ss:$16 sps:$4 sm:$0xff]   ;;  %4071 = vmatprep.subr.bf16.mxu1 %v6567_v3  ;;  %v6598_v44 = vld [vmem:[#allocation20 + $0x1b0] sm:$0xff]  }
0x124b   :  { %v6601_v3 = vld [vmem:[#allocation20 + $0x138] sm:$0xff]  }
0x124c   :  { %4072 = vmatpush1.bf16.msra.mxu1 %v6565_v29  ;;  %v6600_v29 = vld [vmem:[#allocation20 + $0x1f8] sm:$0xff]  }
0x124d   :  { %5962 = vmatprep.subr.bf16.mxu1 %v6571_v48 }
0x1291   :  { %v3655_v50 = vpop.xlane.xlu1 %3654 }
0x1293   :  { %v3652_v53 = vpop.xlane.xlu0 %3651 }
0x1294   :  { %6827 = vrcp.f32 %v3652_v53  ;;  %v6570_v53 = vld [vmem:[#allocation18 + $0x1ec] ss:$16 sps:$4 sm:$0xff]  }
0x1295   :  { %v3649_v30 = vpop.xlane.xlu1 %3648 }
0x1296   :  { %6829 = vrcp.f32 %v3649_v30 }
0x1297   :  { %6831 = vrcp.f32 %v3655_v50  ;;  %v3646_v9 = vpop.xlane.xlu0 %3645  ;;  %v6568_v50 = vld [vmem:[#allocation18 + $0x1e8] ss:$16 sps:$4 sm:$0xff]  }
0x1298   :  { %6833 = vrcp.f32 %v3646_v9  ;;  %v5663_v9 = vld [vmem:[#allocation15 + $0x1] ss:$0 sm:$0xff] }
0x1299   :  { %v3669_v17 = vpop.permute.xlu1 %3668 }
0x129b   :  { %v3667_v55 = vpop.permute.xlu0 %3666 }
0x129c   :  { %6274 = vmatprep.subr.bf16.mxu0 %v3667_v55 }
0x129d   :  { %6275 = vmatpush3.bf16.msra.mxu0 %v3667_v55 }
0x129e   :  { %6276 = vmatprep.subr.bf16.mxu0 %v3669_v17  ;;  %v6828_v41 = vpop.eup %6827 }
0x129f   :  { %v3662_v38 = vmul.f32 %v6828_v41, %v6824_v51  ;;  %v6550_v51 = vld [vmem:[#allocation18 + $0x188] ss:$16 sps:$4 sm:$0xff]   ;;  %v5664_v41 = vld [vmem:[#allocation17 + $0x2] ss:$0 sm:$0xff] }
0x12a0   :  { %v6830_v47 = vpop.eup %6829 }
0x12a1   :  { %v6832_v49 = vpop.eup %6831  ;;  %6277 = vmatpush3.bf16.msra.mxu0 %v3669_v17  ;;  %v3661_v43 = vmul.f32 %v6830_v47, %v6822_v24  ;;  %v6544_v24 = vld [vmem:[#allocation18 + $0x168] ss:$16 sps:$4 sm:$0xff]  }
0x12a2   :  { %v6834_v21 = vpop.eup %6833  ;;  %6282 = vmatprep.subr.bf16.mxu0 %v6521_v57  ;;  %v3663_v5 = vmul.f32 %v6832_v49, %v6820_v62  ;;  %v6546_v62 = vld [vmem:[#allocation18 + $0x16c] ss:$16 sps:$4 sm:$0xff]  }
0x12a3   :  { %v3660_v56 = vmul.f32 %v6834_v21, %v6826_v54  ;;  %v6558_v54 = vld [vmem:[#allocation18 + $0x1ac] ss:$16 sps:$4 sm:$0xff]  }
0x12a4   :  { %v3665_v7 = vpack.c.bf16 %v3663_v5, %v3662_v38 }
0x12a5   :  { %v3664_v11 = vpack.c.bf16 %v3661_v43, %v3660_v56 }
0x12a7   :  { %6278 = vmatprep.mubr.msk.bf16.mxu0 %vm646_vm1, %v3664_v11  ;;  %v5665_v11 = vld [vmem:[#allocation17 + $0x3] ss:$0 sm:$0xff] }
0x12a8   :  { %6279 = vmatmul.mubr.msk.bf16.vlgmr.msra.gmra.mrb[60].mxu0 %vm646_vm1, %v3665_v7 }
0x12a9   :  { %6283 = vmatpush3.bf16.msra.mxu0 %v6521_v57 }
0x12aa   :  { %6284 = vmatprep.subr.bf16.mxu0 %v6522_v8 }
0x12ad   :  { %6285 = vmatpush3.bf16.msra.mxu0 %v6522_v8 }
0x12ae   :  { %4110 = vmatprep.subr.bf16.mxu0 %v6528_v46 }
0x137b   :  { %v6280_v19 = vpop.f32.mrb[60].mxu0 }
0x137c   :  { %v3712_v26 = vpop.f32.mrb[61].mxu0 }
0x137d   :  { %v6281_v15 = vpop.f32.mrb[62].mxu0 }
0x137e   :  { %v3728_v10 = vpack.c.bf16 %v6281_v15, %v6280_v19  ;;  %v3715_v25 = vpop.f32.mrb[63].mxu0  ;;  %v6577_v19 = vld [vmem:[#allocation20 + $0x108] sm:$0xff]   ;;  %v6579_v15 = vld [vmem:[#allocation20 + $0x150] sm:$0xff]  }
0x137f   :  { %v3727_v31 = vpack.c.bf16 %v3715_v25, %v3712_v26  ;;  %v6578_v26 = vld [vmem:[#allocation20 + $0x188] sm:$0xff]   ;;  %v6581_v25 = vld [vmem:[#allocation20 + $0x110] sm:$0xff]  }
0x1381   :  { %6286 = vmatprep.mubr.msk.bf16.mxu0 %vm646_vm1, %v3727_v31  ;;  %v6582_v31 = vld [vmem:[#allocation20 + $0x190] sm:$0xff]  }
0x1382   :  { %6287 = vmatmul.mubr.msk.bf16.vlgmr.msra.gmra.mrb[52].mxu0 %vm646_vm1, %v3728_v10  ;;  %v6580_v10 = vld [vmem:[#allocation20 + $0x1d0] sm:$0xff]  }
0x1383   :  { %4111 = vmatpush1.bf16.msra.mxu0 %v6526_v22  ;;  %4142 = vmatprep.mubr.bf16.mxu0 %v7278_v34  ;;  %v6583_v22 = vld [vmem:[#allocation20 + $0x158] sm:$0xff]  }
0x1384   :  { %4112 = vmatprep.subr.bf16.mxu0 %v6534_v28  ;;  %v6584_v28 = vld [vmem:[#allocation20 + $0x1d8] sm:$0xff]  }
0x1387   :  { %4113 = vmatpush1.bf16.msra.mxu0 %v6532_v36  ;;  %v6585_v36 = vld [vmem:[#allocation20 + $0x118] sm:$0xff]  }
0x1388   :  { %4114 = vmatprep.subr.bf16.mxu0 %v6540_v6  ;;  %v6586_v6 = vld [vmem:[#allocation20 + $0x198] sm:$0xff]  }
0x138b   :  { %4115 = vmatpush1.bf16.msra.mxu0 %v6538_v4  ;;  %v6587_v4 = vld [vmem:[#allocation20 + $0x160] sm:$0xff]  }
0x138c   :  { %4116 = vmatprep.subr.bf16.mxu0 %v6546_v62  ;;  %v6588_v62 = vld [vmem:[#allocation20 + $0x1e0] sm:$0xff]  }
0x138f   :  { %4117 = vmatpush1.bf16.msra.mxu0 %v6544_v24  ;;  %v6589_v24 = vld [vmem:[#allocation20 + $0x120] sm:$0xff]  }
0x1390   :  { %4118 = vmatprep.subr.bf16.mxu0 %v6552_v2  ;;  %v6590_v2 = vld [vmem:[#allocation20 + $0x1a0] sm:$0xff]  }
0x1393   :  { %4119 = vmatpush1.bf16.msra.mxu0 %v6550_v51  ;;  %v6591_v51 = vld [vmem:[#allocation20 + $0x168] sm:$0xff]  }
0x1394   :  { %4120 = vmatprep.subr.bf16.mxu0 %v6558_v54  ;;  %v6593_v54 = vld [vmem:[#allocation20 + $0x128] sm:$0xff]  }
0x1397   :  { %4121 = vmatpush1.bf16.msra.mxu0 %v6556_v42  ;;  %v6595_v42 = vld [vmem:[#allocation20 + $0x170] sm:$0xff]  }
0x1398   :  { %4122 = vmatprep.subr.bf16.mxu0 %v6564_v37  ;;  %v6597_v37 = vld [vmem:[#allocation20 + $0x130] sm:$0xff]  }
0x139b   :  { %4123 = vmatpush1.bf16.msra.mxu0 %v6562_v1  ;;  %v6599_v1 = vld [vmem:[#allocation20 + $0x178] sm:$0xff]  }
0x139c   :  { %4124 = vmatprep.subr.bf16.mxu0 %v6570_v53  ;;  %v6605_v53 = vld [vmem:[#allocation21 + $0x4] ss:$8 sps:$4 sm:$0xff]  }
0x139f   :  { %4125 = vmatpush1.bf16.msra.mxu0 %v6568_v50  ;;  %v6602_v50 = vld [vmem:[#allocation20 + $0x1b8] sm:$0xff]  }
0x13a0   :  { %5990 = vmatprep.subr.bf16.mxu0 %v6572_v14 }
0x1455   :  { %v6288_v30 = vpop.f32.mrb[52].mxu0 }
0x1456   :  { %v3785_v55 = vpop.f32.mrb[53].mxu0  ;;  %v3806_v56 = vadd.f32 %v6288_v30, %v7964_v40  ;;  %v5666_v30 = vld [vmem:[%s8579_s13 + $0x4] sm:$0xf] }
0x1457   :  { %v3804_v17 = vadd.f32 %v3785_v55, %v7955_v18  ;;  %v6289_v57 = vpop.f32.mrb[54].mxu0  ;;  %v8217_v55 = vrot.slane %v5666_v30, %v7626_v0 }
0x1458   :  { %v3788_v47 = vpop.f32.mrb[55].mxu0  ;;  %v3807_v21 = vadd.f32 %v6289_v57, %v7968_v45  ;;  %v8206_v8 = vadd.f32 %v5663_v9, %v3806_v56  ;;  %v8224_v57 = vrot.slane %v5666_v30, %v1726_v20 }
0x1459   :  { %v8195_v49 = vadd.f32 %v5663_v9, %v3804_v17  ;;  %v3805_v38 = vadd.f32 %v3788_v47, %v7959_v33  ;;  %v8220_v17 = vrot.slane %v5666_v30, %v7623_v63 }
0x145a   :  { %v8203_v7 = vadd.f32 %v5663_v9, %v3807_v21  ;;  %v3828_v33 = vmul.f32 %v5664_v41, %v8206_v8 }
0x145b   :  { %v3826_v43 = vmul.f32 %v5664_v41, %v8195_v49  ;;  %v8201_v5 = vadd.f32 %v5663_v9, %v3805_v38  ;;  %v3880_v9 = vrot.slane %v5666_v30, %v7620_v61 }
0x145c   :  { %v3829_v46 = vmul.f32 %v5664_v41, %v8203_v7  ;;  %v3837_v12 = vadd.f32 %v5665_v11, %v3828_v33 }
0x145d   :  { %v3827_v18 = vmul.f32 %v5664_v41, %v8201_v5  ;;  %v3835_v58 = vadd.f32 %v5665_v11, %v3826_v43 }
0x145e   :  { %v3838_v40 = vadd.f32 %v5665_v11, %v3829_v46 }
0x145f   :  { %v3836_v27 = vadd.f32 %v5665_v11, %v3827_v18 }
0x1460   :  { %v3840_v13 = vpack.c.bf16 %v3838_v40, %v3837_v12 }
0x1461   :  { %v3839_v45 = vpack.c.bf16 %v3836_v27, %v3835_v58 }
0x1463   :  { %4090 = vmatmul.mubr.bf16.vlgmr.msra.gmra.mrb[68].mxu1 %v3839_v45  ;;  %4143 = vmatmul.mubr.bf16.vlgmr.msra.gmra.mrb[64].mxu0 %v3839_v45 }
0x1464   :  { %4099 = vmatprep.mubr.bf16.mxu1 %v7278_v34  ;;  %4152 = vmatprep.mubr.bf16.mxu0 %v7278_v34 }
0x1465   :  { %5963 = vmatpush3.bf16.msra.mxu1 %v6573_v52  ;;  %5991 = vmatpush3.bf16.msra.mxu0 %v6574_v16 }
0x1466   :  { %5964 = vmatprep.subr.bf16.mxu1 %v6575_v39  ;;  %5992 = vmatprep.subr.bf16.mxu0 %v6576_v59 }
0x1469   :  { %5965 = vmatpush3.bf16.msra.mxu1 %v6577_v19  ;;  %5993 = vmatpush3.bf16.msra.mxu0 %v6578_v26 }
0x146a   :  { %5966 = vmatprep.subr.bf16.mxu1 %v6579_v15  ;;  %5994 = vmatprep.subr.bf16.mxu0 %v6580_v10 }
0x146b   :  { %4100 = vmatmul.mubr.bf16.gmra.mrb[72].mxu1 %v3840_v13  ;;  %4153 = vmatmul.mubr.bf16.gmra.mrb[68].mxu0 %v3840_v13 }
0x146d   :  { %5967 = vmatpush3.bf16.msra.mxu1 %v6581_v25  ;;  %5995 = vmatpush3.bf16.msra.mxu0 %v6582_v31 }
0x146e   :  { %5968 = vmatprep.subr.bf16.mxu1 %v6583_v22  ;;  %5996 = vmatprep.subr.bf16.mxu0 %v6584_v28 }
0x1471   :  { %5969 = vmatpush3.bf16.msra.mxu1 %v6585_v36  ;;  %5997 = vmatpush3.bf16.msra.mxu0 %v6586_v6 }
0x1472   :  { %5970 = vmatprep.subr.bf16.mxu1 %v6587_v4  ;;  %5998 = vmatprep.subr.bf16.mxu0 %v6588_v62 }
0x1475   :  { %5971 = vmatpush3.bf16.msra.mxu1 %v6589_v24  ;;  %5999 = vmatpush3.bf16.msra.mxu0 %v6590_v2 }
0x1476   :  { %5972 = vmatprep.subr.bf16.mxu1 %v6591_v51  ;;  %6000 = vmatprep.subr.bf16.mxu0 %v6592_v23 }
0x1479   :  { %5973 = vmatpush3.bf16.msra.mxu1 %v6593_v54  ;;  %6001 = vmatpush3.bf16.msra.mxu0 %v6594_v35 }
0x147a   :  { %5974 = vmatprep.subr.bf16.mxu1 %v6595_v42  ;;  %6002 = vmatprep.subr.bf16.mxu0 %v6596_v32 }
0x147d   :  { %5975 = vmatpush3.bf16.msra.mxu1 %v6597_v37  ;;  %6003 = vmatpush3.bf16.msra.mxu0 %v6598_v44 }
0x147e   :  { %5976 = vmatprep.subr.bf16.mxu1 %v6599_v1  ;;  %6004 = vmatprep.subr.bf16.mxu0 %v6600_v29 }
0x1481   :  { %5977 = vmatpush3.bf16.msra.mxu1 %v6601_v3  ;;  %6005 = vmatpush3.bf16.msra.mxu0 %v6602_v50 }
0x1482   :  { %4794 = vmatprep.subr.bf16.mxu1 %v6605_v53 }
0x1536   :  { %v4091_v41 = vpop.f32.mrb[68].mxu1  ;;  %v4144_v47 = vpop.f32.mrb[64].mxu0 }
0x1537   :  { %v8226_v21 = vadd.f32 %v4091_v41, %v3880_v9  ;;  %v8229_v38 = vadd.f32 %v4144_v47, %v8217_v55  ;;  %v4093_v56 = vpop.f32.mrb[69].mxu1  ;;  %v4146_v43 = vpop.f32.mrb[65].mxu0 }
0x1538   :  { %v8232_v11 = vadd.f32 %v4093_v56, %v8220_v17  ;;  %v8235_v0 = vadd.f32 %v4146_v43, %v8224_v57  ;;  %v4095_v18 = vpop.f32.mrb[70].mxu1  ;;  %v4148_v58 = vpop.f32.mrb[66].mxu0 }
0x1539   :  { %v5699_v60 = vmul.f32 -1.702, %v8226_v21  ;;  %v5701_v20 = vmul.f32 -1.702, %v8229_v38  ;;  %v8239_v27 = vadd.f32 %v4095_v18, %v3880_v9  ;;  %v8242_v46 = vadd.f32 %v4148_v58, %v8217_v55  ;;  %v4097_v45 = vpop.f32.mrb[71].mxu1  ;;  %v4150_v33 = vpop.f32.mrb[67].mxu0 }
0x153a   :  { %v5700_v40 = vmul.f32 -1.702, %v8232_v11  ;;  %v5702_v12 = vmul.f32 -1.702, %v8235_v0  ;;  %v8247_v13 = vadd.f32 %v4097_v45, %v8220_v17  ;;  %v8250_v48 = vadd.f32 %v4150_v33, %v8224_v57 }
0x153b   :  { %v4195_v14 = vmul.f32 1.442695, %v5699_v60  ;;  %v4199_v52 = vmul.f32 1.442695, %v5701_v20  ;;  %v5703_v16 = vmul.f32 -1.702, %v8239_v27 }
0x153c   :  { %v4197_v39 = vmul.f32 1.442695, %v5700_v40  ;;  %v4201_v59 = vmul.f32 1.442695, %v5702_v12  ;;  %v5705_v19 = vmul.f32 -1.702, %v8242_v46 }
0x153d   :  { %6835 = vpow2.f32 %v4195_v14  ;;  %v4203_v26 = vmul.f32 1.442695, %v5703_v16  ;;  %v5704_v15 = vmul.f32 -1.702, %v8247_v13  ;;  %v5706_v10 = vmul.f32 -1.702, %v8250_v48 }
0x153e   :  { %6837 = vpow2.f32 %v4199_v52  ;;  %v4207_v25 = vmul.f32 1.442695, %v5705_v19  ;;  %v4101_v31 = vpop.f32.mrb[72].mxu1  ;;  %v4154_v22 = vpop.f32.mrb[68].mxu0 }
0x153f   :  { %6839 = vpow2.f32 %v4197_v39  ;;  %v4205_v28 = vmul.f32 1.442695, %v5704_v15  ;;  %v8256_v36 = vadd.f32 %v4101_v31, %v3880_v9  ;;  %v4103_v6 = vpop.f32.mrb[73].mxu1  ;;  %v4156_v4 = vpop.f32.mrb[69].mxu0  ;;  %v4209_v62 = vmul.f32 1.442695, %v5706_v10 }
0x1540   :  { %6841 = vpow2.f32 %v4201_v59  ;;  %v8259_v24 = vadd.f32 %v4154_v22, %v8217_v55  ;;  %v8262_v2 = vadd.f32 %v4103_v6, %v8220_v17  ;;  %v4105_v51 = vpop.f32.mrb[74].mxu1  ;;  %v4158_v23 = vpop.f32.mrb[70].mxu0  ;;  %v8271_v30 = vadd.f32 %v4156_v4, %v8224_v57 }
0x1541   :  { %6843 = vpow2.f32 %v4203_v26  ;;  %v5707_v54 = vmul.f32 -1.702, %v8256_v36  ;;  %v8265_v35 = vadd.f32 %v4105_v51, %v3880_v9  ;;  %v4107_v42 = vpop.f32.mrb[75].mxu1  ;;  %v4160_v32 = vpop.f32.mrb[71].mxu0  ;;  %v8275_v33 = vadd.f32 %v4158_v23, %v8217_v55 }
0x1542   :  { %6845 = vpow2.f32 %v4207_v25  ;;  %v5709_v37 = vmul.f32 -1.702, %v8259_v24  ;;  %v5708_v44 = vmul.f32 -1.702, %v8262_v2  ;;  %v5710_v60 = vmul.f32 -1.702, %v8271_v30 }
0x1543   :  { %6847 = vpow2.f32 %v4205_v28  ;;  %v4211_v1 = vmul.f32 1.442695, %v5707_v54  ;;  %v5711_v29 = vmul.f32 -1.702, %v8265_v35  ;;  %v8278_v14 = vadd.f32 %v4107_v42, %v8220_v17 }
0x1544   :  { %6849 = vpow2.f32 %v4209_v62  ;;  %v4215_v3 = vmul.f32 1.442695, %v5709_v37  ;;  %v4213_v50 = vmul.f32 1.442695, %v5708_v44  ;;  %v8281_v39 = vadd.f32 %v4160_v32, %v8224_v57 }
0x1545   :  { %6851 = vpow2.f32 %v4211_v1  ;;  %v4219_v53 = vmul.f32 1.442695, %v5711_v29  ;;  %v4217_v26 = vmul.f32 1.442695, %v5710_v60  ;;  %v5713_v10 = vmul.f32 -1.702, %v8275_v33 }
0x1546   :  { %6853 = vpow2.f32 %v4215_v3  ;;  %v5712_v17 = vmul.f32 -1.702, %v8278_v14  ;;  %v5714_v22 = vmul.f32 -1.702, %v8281_v39 }
0x1547   :  { %v6836_v9 = vpop.eup %6835  ;;  %6855 = vpow2.f32 %v4213_v50  ;;  %v4223_v6 = vmul.f32 1.442695, %v5713_v10 }
0x1548   :  { %v6838_v41 = vpop.eup %6837  ;;  %v4227_v47 = vadd.f32 1.0, %v6836_v9  ;;  %6857 = vpow2.f32 %v4219_v53  ;;  %v4221_v51 = vmul.f32 1.442695, %v5712_v17  ;;  %v4225_v54 = vmul.f32 1.442695, %v5714_v22 }
0x1549   :  { %v6840_v56 = vpop.eup %6839  ;;  %v4229_v43 = vadd.f32 1.0, %v6838_v41 }
0x154a   :  { %v6842_v18 = vpop.eup %6841  ;;  %6859 = vrcp.f32 %v4227_v47  ;;  %v4228_v58 = vadd.f32 1.0, %v6840_v56 }
0x154b   :  { %v6844_v20 = vpop.eup %6843  ;;  %6861 = vrcp.f32 %v4229_v43  ;;  %v4230_v45 = vadd.f32 1.0, %v6842_v18 }
0x154c   :  { %v6846_v40 = vpop.eup %6845  ;;  %6863 = vrcp.f32 %v4228_v58  ;;  %v4231_v12 = vadd.f32 1.0, %v6844_v20  ;;  %v6603_v20 = vld [vmem:[#allocation21] ss:$8 sps:$4 sm:$0xff]  }
0x154d   :  { %v6848_v52 = vpop.eup %6847  ;;  %6865 = vrcp.f32 %v4230_v45  ;;  %v4233_v16 = vadd.f32 1.0, %v6846_v40 }
0x154e   :  { %v6850_v59 = vpop.eup %6849  ;;  %6867 = vrcp.f32 %v4231_v12  ;;  %v4232_v19 = vadd.f32 1.0, %v6848_v52  ;;  %v6608_v12 = vld [vmem:[#allocation21 + $0x14] ss:$8 sps:$4 sm:$0xff]  }
0x154f   :  { %v6852_v15 = vpop.eup %6851  ;;  %6869 = vrcp.f32 %v4233_v16  ;;  %v4234_v55 = vadd.f32 1.0, %v6850_v59 }
0x1550   :  { %6871 = vrcp.f32 %v4232_v19  ;;  %v4235_v25 = vadd.f32 1.0, %v6852_v15  ;;  %v6854_v31 = vpop.eup %6853  ;;  %v6611_v19 = vld [vmem:[#allocation21 + $0x24] ss:$8 sps:$4 sm:$0xff]  }
0x1551   :  { %6873 = vrcp.f32 %v4234_v55  ;;  %v6856_v28 = vpop.eup %6855  ;;  %v4237_v60 = vadd.f32 1.0, %v6854_v31 }
0x1552   :  { %6875 = vpow2.f32 %v4217_v26  ;;  %v6858_v57 = vpop.eup %6857  ;;  %v4236_v40 = vadd.f32 1.0, %v6856_v28 }
0x1553   :  { %6877 = vrcp.f32 %v4235_v25  ;;  %v4239_v62 = vadd.f32 1.0, %v6858_v57  ;;  %v6612_v25 = vld [vmem:[#allocation21 + $0x30] ss:$8 sps:$4 sm:$0xff]  }
0x1554   :  { %v6860_v4 = vpop.eup %6859 }
0x1555   :  { %v6862_v23 = vpop.eup %6861  ;;  %6879 = vrcp.f32 %v4239_v62  ;;  %v4275_v1 = vmul.f32 %v6860_v4, %v8226_v21 }
0x1556   :  { %v6864_v42 = vpop.eup %6863  ;;  %6881 = vpow2.f32 %v4223_v6  ;;  %v4277_v50 = vmul.f32 %v6862_v23, %v8229_v38 }
0x1557   :  { %v6866_v32 = vpop.eup %6865  ;;  %6883 = vpow2.f32 %v4221_v51  ;;  %v4276_v41 = vmul.f32 %v6864_v42, %v8232_v11 }
0x1558   :  { %v6868_v37 = vpop.eup %6867  ;;  %6885 = vpow2.f32 %v4225_v54  ;;  %v4278_v18 = vmul.f32 %v6866_v32, %v8235_v0 }
0x1559   :  { %v6870_v44 = vpop.eup %6869  ;;  %v4279_v29 = vmul.f32 %v6868_v37, %v8239_v27  ;;  %6887 = vrcp.f32 %v4237_v60  ;;  %v6638_v60 = vld [vmem:[%s8585_s19 + $0x28] sm:$0xff]  }
0x155a   :  { %v6872_v3 = vpop.eup %6871  ;;  %v4281_v53 = vmul.f32 %v6870_v44, %v8242_v46  ;;  %6889 = vrcp.f32 %v4236_v40 }
0x155b   :  { %v6874_v9 = vpop.eup %6873  ;;  %v4291_v47 = vpack.c.bf16 %v4279_v29, %v4275_v1  ;;  %v4280_v56 = vmul.f32 %v6872_v3, %v8247_v13  ;;  %v6620_v1 = vld [vmem:[#allocation21 + $0x54] ss:$8 sps:$4 sm:$0xff]   ;;  %v6624_v29 = vld [vmem:[#allocation21 + $0x70] ss:$8 sps:$4 sm:$0xff]  }
0x155c   :  { %v6876_v43 = vpop.eup %6875  ;;  %v4293_v58 = vpack.c.bf16 %v4281_v53, %v4277_v50  ;;  %v4282_v21 = vmul.f32 %v6874_v9, %v8250_v48  ;;  %v6606_v48 = vld [vmem:[#allocation21 + $0x10] ss:$8 sps:$4 sm:$0xff]  }
0x155d   :  { %v4292_v27 = vpack.c.bf16 %v4280_v56, %v4276_v41  ;;  %v6878_v45 = vpop.eup %6877  ;;  %v4238_v46 = vadd.f32 1.0, %v6876_v43  ;;  %v6627_v3 = vld [vmem:[%s8585_s19 + $0x40] sm:$0xff]   ;;  %v6629_v53 = vld [vmem:[%s8585_s19 + $0x48] sm:$0xff]   ;;  %v6631_v41 = vld [vmem:[%s8585_s19 + $0x50] sm:$0xff]  }
0x155e   :  { %v4294_v38 = vpack.c.bf16 %v4282_v21, %v4278_v18  ;;  %v4283_v13 = vmul.f32 %v6878_v45, %v8256_v36  ;;  %v6609_v36 = vld [vmem:[#allocation21 + $0x20] ss:$8 sps:$4 sm:$0xff]   ;;  %v6628_v50 = vld [vmem:[%s8585_s19] sm:$0xff]   ;;  %6018 = vmatprep.subr.bf16.mxu0 %v6627_v3  ;;  %v6630_v9 = vld [vmem:[%s8585_s19 + $0x8] sm:$0xff]  }
0x155f   :  { %4596 = vmatprep.mubr.bf16.mxu1 %v4292_v27  ;;  %v6880_v52 = vpop.eup %6879  ;;  %6891 = vrcp.f32 %v4238_v46  ;;  %v6633_v56 = vld [vmem:[%s8585_s19 + $0x58] sm:$0xff]   ;;  %v6635_v18 = vld [vmem:[%s8585_s19 + $0x60] sm:$0xff]   ;;  %v6637_v21 = vld [vmem:[%s8585_s19 + $0x68] sm:$0xff]  }
0x1560   :  { %4645 = vmatprep.mubr.bf16.mxu0 %v4294_v38  ;;  %4597 = vmatmul.mubr.bf16.vlgmr.msra.gmra.mrb[76].mxu1 %v4291_v47  ;;  %v6882_v11 = vpop.eup %6881  ;;  %v4287_v0 = vmul.f32 %v6880_v52, %v8265_v35  ;;  %v6614_v35 = vld [vmem:[#allocation21 + $0x34] ss:$8 sps:$4 sm:$0xff]   ;;  %v6632_v47 = vld [vmem:[%s8585_s19 + $0x10] sm:$0xff]   ;;  %v6634_v43 = vld [vmem:[%s8585_s19 + $0x18] sm:$0xff]  }
0x1561   :  { %4646 = vmatmul.mubr.bf16.vlgmr.msra.gmra.mrb[72].mxu0 %v4293_v58  ;;  %4795 = vmatpush1.bf16.msra.mxu1 %v6603_v20  ;;  %v6884_v16 = vpop.eup %6883  ;;  %v4241_v59 = vadd.f32 1.0, %v6882_v11  ;;  %v6636_v58 = vld [vmem:[%s8585_s19 + $0x20] sm:$0xff]  }
0x1562   :  { %4796 = vmatprep.subr.bf16.mxu1 %v6608_v12  ;;  %v6886_v26 = vpop.eup %6885  ;;  %v4240_v15 = vadd.f32 1.0, %v6884_v16  ;;  %v4295_v55 = vpack.c.bf16 %v4287_v0, %v4283_v13  ;;  %6019 = vmatpush3.bf16.msra.mxu0 %v6628_v50  ;;  %v5716_v45 = vld [vmem:[%s8581_s15 + $0x1] ss:$0 sm:$0xff]  ;;  %v6639_v50 = vld [vmem:[%s8585_s19 + $0x70] sm:$0xff]  }
0x1563   :  { %6893 = vrcp.f32 %v4241_v59  ;;  %v4242_v10 = vadd.f32 1.0, %v6886_v26  ;;  %v6888_v17 = vpop.eup %6887  ;;  %6020 = vmatprep.subr.bf16.mxu0 %v6629_v53  ;;  %v6640_v53 = vld [vmem:[%s8585_s19 + $0x30] sm:$0xff]  }
0x1564   :  { %6895 = vrcp.f32 %v4240_v15  ;;  %v6890_v31 = vpop.eup %6889  ;;  %v4285_v6 = vmul.f32 %v6888_v17, %v8259_v24  ;;  %v6615_v24 = vld [vmem:[#allocation21 + $0x40] ss:$8 sps:$4 sm:$0xff]   ;;  %v5749_v15 = vld [vmem:[%s8582_s16] ss:$0 sm:$0xff] }
0x1565   :  { %4797 = vmatpush1.bf16.msra.mxu1 %v6606_v48  ;;  %6897 = vrcp.f32 %v4242_v10  ;;  %v4284_v51 = vmul.f32 %v6890_v31, %v8262_v2  ;;  %v6618_v2 = vld [vmem:[#allocation21 + $0x50] ss:$8 sps:$4 sm:$0xff]  }
0x1566   :  { %4798 = vmatprep.subr.bf16.mxu1 %v6611_v19  ;;  %6021 = vmatpush3.bf16.msra.mxu0 %v6630_v9  ;;  %v8359_v9 = vld [vmem:[#allocation3 + $0x10] sm:$0xff] }
0x1567   :  { %6022 = vmatprep.subr.bf16.mxu0 %v6631_v41  ;;  %v8363_v41 = vld [vmem:[#allocation3] sm:$0xfe] }
0x1569   :  { %4799 = vmatpush1.bf16.msra.mxu1 %v6609_v36  ;;  %v6892_v22 = vpop.eup %6891 }
0x156a   :  { %4800 = vmatprep.subr.bf16.mxu1 %v6614_v35  ;;  %v4286_v54 = vmul.f32 %v6892_v22, %v8271_v30  ;;  %v6623_v30 = vld [vmem:[#allocation21 + $0x64] ss:$8 sps:$4 sm:$0xff]   ;;  %6023 = vmatpush3.bf16.msra.mxu0 %v6632_v47 }
0x156b   :  { %6024 = vmatprep.subr.bf16.mxu0 %v6633_v56  ;;  %v8369_v56 = vld [vmem:[#allocation3 + $0x8] sm:$0xfe] }
0x156d   :  { %4801 = vmatpush1.bf16.msra.mxu1 %v6612_v25  ;;  %v6894_v28 = vpop.eup %6893  ;;  %v5750_v25 = vld [vmem:[%s8582_s16 + $0x1] ss:$0 sm:$0xff] }
0x156e   :  { %v6896_v57 = vpop.eup %6895  ;;  %v4289_v4 = vmul.f32 %v6894_v28, %v8275_v33  ;;  %v6617_v33 = vld [vmem:[#allocation21 + $0x44] ss:$8 sps:$4 sm:$0xff]   ;;  %6025 = vmatpush3.bf16.msra.mxu0 %v6634_v43  ;;  %v5063_v43 = vmul.f32 %v8363_v41, %v8363_v41 }
0x156f   :  { %v6898_v62 = vpop.eup %6897  ;;  %v4288_v23 = vmul.f32 %v6896_v57, %v8278_v14  ;;  %4802 = vmatprep.subr.bf16.mxu1 %v6617_v33  ;;  %v6621_v14 = vld [vmem:[#allocation21 + $0x60] ss:$8 sps:$4 sm:$0xff]   ;;  %6026 = vmatprep.subr.bf16.mxu0 %v6635_v18 }
0x1570   :  { %v4290_v42 = vmul.f32 %v6898_v62, %v8281_v39  ;;  %v4297_v32 = vpack.c.bf16 %v4289_v4, %v4285_v6  ;;  %v6626_v39 = vld [vmem:[#allocation21 + $0x74] ss:$8 sps:$4 sm:$0xff]   ;;  %v6641_v18 = vld [vmem:[%s8585_s19 + $0x78] sm:$0xff]  }
0x1571   :  { %v4296_v37 = vpack.c.bf16 %v4288_v23, %v4284_v51  ;;  %4803 = vmatpush1.bf16.msra.mxu1 %v6615_v24 }
0x1572   :  { %v4298_v44 = vpack.c.bf16 %v4290_v42, %v4286_v54  ;;  %4804 = vmatprep.subr.bf16.mxu1 %v6620_v1  ;;  %6027 = vmatpush3.bf16.msra.mxu0 %v6636_v58  ;;  %v6642_v58 = vld [vmem:[%s8585_s19 + $0x38] sm:$0xff]   ;;  %s7280_s19 = smov [#allocation23]  }
0x1573   :  { %4604 = vmatprep.mubr.bf16.mxu1 %v4296_v37  ;;  %6028 = vmatprep.subr.bf16.mxu0 %v6637_v21  ;;  %v5064_v21 = vmul.f32 %v8369_v56, %v8369_v56  ;;  %s5401_s4 = sshll.u32 %s7280_s19, 4  ;;  %s5402_s4 = int_to_ptr.vmem [resolvable:$true] %s5401_s4 }
0x1574   :  { %4653 = vmatprep.mubr.bf16.mxu0 %v4298_v44  ;;  %4605 = vmatmul.mubr.bf16.gmra.mrb[80].mxu1 %v4295_v55  ;;  %s7191_s0 = scalar_lea.vmem %s5402_s4, 1024  ;;  %p7196_p13 = scmp.lt.s32.totalorder %s5402_s4, %s5402_s4 }
0x1575   :  { %4654 = vmatmul.mubr.bf16.gmra.mrb[76].mxu0 %v4297_v32  ;;  %4826 = vmatprep.mubr.bf16.mxu1 %v7278_v34  ;;  %p7192_p12 = scmp.ne.s32.totalorder %s5402_s4, %s7191_s0  ;;  %p7197_p0 = scmp.lt.s32.totalorder %s7191_s0, %s7191_s0 }
0x1576   :  { %4805 = vmatpush1.bf16.msra.mxu1 %v6618_v2  ;;  %6029 = vmatpush3.bf16.msra.mxu0 %v6638_v60 }
0x1577   :  { %4806 = vmatprep.subr.bf16.mxu1 %v6623_v30  ;;  %6030 = vmatprep.subr.bf16.mxu0 %v6639_v50  ;;  %p7198_p1 = por %p7197_p0, %p7196_p13 }
0x1579   :  { %p7199_p2 = pnand %p7198_p1, %p7192_p12 }
0x157a   :  { %4807 = vmatpush1.bf16.msra.mxu1 %v6621_v14  ;;  %6031 = vmatpush3.bf16.msra.mxu0 %v6640_v53 }
0x157b   :  { %4808 = vmatprep.subr.bf16.mxu1 %v6626_v39  ;;  %6032 = vmatprep.subr.bf16.mxu0 %v6641_v18 }
0x157e   :  { %4809 = vmatpush1.bf16.msra.mxu1 %v6624_v29  ;;  %6033 = vmatpush3.bf16.msra.mxu0 %v6642_v58 }
0x1633   :  { %v5978_v27 = vpop.f32.mrb[76].mxu1 }
0x1634   :  { %v6006_v20 = vpop.f32.mrb[72].mxu0  ;;  %v5979_v40 = vpop.f32.mrb[77].mxu1 }
0x1635   :  { %v5980_v38 = vadd.f32 %v5979_v40, %v5978_v27  ;;  %v6007_v12 = vpop.f32.mrb[73].mxu0  ;;  %v5981_v46 = vpop.f32.mrb[78].mxu1  ;;  %v5067_v27 = vsel %vm5054_vm2, %v5063_v43, 0.0  ;;  %v4702_v40 = vld [vmem:[%s8584_s18] sm:$0x3]  ;;  %s8633_s18 = smov 1  }
0x1636   :  { %v6008_v52 = vadd.f32 %v6007_v12, %v6006_v20  ;;  %v6009_v11 = vpop.f32.mrb[74].mxu0  ;;  %v5982_v13 = vpop.f32.mrb[79].mxu1  ;;  %v5068_v20 = vsel %vm5054_vm2, %v5064_v21, 0.0  ;;  %v8388_v12 = vrot.slane %v4702_v40, %v7623_v63 }
0x1637   :  { %v4599_v0 = vadd.f32 %v5980_v38, %v5716_v45  ;;  %v5983_v48 = vadd.f32 %v5982_v13, %v5981_v46  ;;  %v6010_v16 = vpop.f32.mrb[75].mxu0  ;;  %v4707_v38 = vrot.slane %v4702_v40, %v7620_v61 }
0x1638   :  { %v6011_v59 = vadd.f32 %v6010_v16, %v6009_v11 }
0x1639   :  { %v4648_v19 = vadd.f32 %v6008_v52, %v4599_v0  ;;  %v4602_v26 = vadd.f32 %v5983_v48, %v5716_v45  ;;  %v5111_v52 = vld [vmem:[#allocation3 + $0x20] sm:$0xfe]  ;;  %v8390_v0 = vld [vmem:[#allocation3 + $0x28] sm:$0xfe] }
0x163b   :  { %v4662_v55 = vadd.f32 %v4648_v19, %v8195_v49  ;;  %v4651_v10 = vadd.f32 %v6011_v59, %v4602_v26 }
0x163d   :  { %v4671_v36 = vmul.f32 %v5749_v15, %v4662_v55  ;;  %v4663_v35 = vadd.f32 %v4651_v10, %v8201_v5  ;;  %v8395_v10 = vld [vmem:[#allocation3 + $0x30] sm:$0xff] }
0x163f   :  { %v4672_v17 = vmul.f32 %v5749_v15, %v4663_v35  ;;  %v4680_v31 = vadd.f32 %v5750_v25, %v4671_v36  ;;  %v8397_v36 = vld [vmem:[#allocation3 + $0x38] sm:$0xff] }
0x1640   :  { %v5130_v43 = vmul.f32 %v8397_v36, %v8397_v36 }
0x1641   :  { %v4681_v22 = vadd.f32 %v5750_v25, %v4672_v17 }
0x1643   :  { %v4684_v28 = vpack.c.bf16 %v4681_v22, %v4680_v31 }
0x1645   :  { %4827 = vmatmul.mubr.bf16.vlgmr.msra.gmra.mrb[84].mxu1 %v4684_v28 }
0x1646   :  { %4836 = vmatprep.mubr.bf16.mxu1 %v7278_v34 }
0x1647   :  { %v5984_v57 = vpop.f32.mrb[80].mxu1 }
0x1648   :  { %v6012_v6 = vpop.f32.mrb[76].mxu0  ;;  %v5985_v4 = vpop.f32.mrb[81].mxu1 }
0x1649   :  { %v5986_v62 = vadd.f32 %v5985_v4, %v5984_v57  ;;  %v6013_v49 = vpop.f32.mrb[77].mxu0  ;;  %v5987_v51 = vpop.f32.mrb[82].mxu1 }
0x164a   :  { %v6014_v23 = vadd.f32 %v6013_v49, %v6012_v6  ;;  %v6015_v54 = vpop.f32.mrb[78].mxu0  ;;  %v5988_v5 = vpop.f32.mrb[83].mxu1 }
0x164b   :  { %v4607_v42 = vadd.f32 %v5986_v62, %v5716_v45  ;;  %v5989_v32 = vadd.f32 %v5988_v5, %v5987_v51  ;;  %v6016_v37 = vpop.f32.mrb[79].mxu0 }
0x164c   :  { %v6017_v44 = vadd.f32 %v6016_v37, %v6015_v54 }
0x164d   :  { %v4656_v24 = vadd.f32 %v6014_v23, %v4607_v42  ;;  %v4610_v33 = vadd.f32 %v5989_v32, %v5716_v45  ;;  %v5069_v45 = vadd.f32 %v5068_v20, %v5067_v27 }
0x164f   :  { %v4664_v2 = vadd.f32 %v4656_v24, %v8206_v8  ;;  %v4659_v1 = vadd.f32 %v6017_v44, %v4610_v33  ;;  %v8361_v8 = vld [vmem:[#allocation3 + $0x18] sm:$0xff]  ;;  %5070 = vadd.xlane.f32.xlu0 %v5069_v45 }
0x1650   :  { %v5066_v47 = vmul.f32 %v8361_v8, %v8361_v8 }
0x1651   :  { %v4673_v30 = vmul.f32 %v5749_v15, %v4664_v2  ;;  %v4665_v34 = vadd.f32 %v4659_v1, %v8203_v7  ;;  %v5065_v7 = vmul.f32 %v8359_v9, %v8359_v9  ;;  %v5127_v1 = vmul.f32 %v5111_v52, %v5111_v52 }
0x1653   :  { %v4674_v14 = vmul.f32 %v5749_v15, %v4665_v34  ;;  %v4682_v39 = vadd.f32 %v5750_v25, %v4673_v30  ;;  %v5072_v60 = vadd.f32 %v5066_v47, %v5065_v7  ;;  %v5128_v30 = vmul.f32 %v8390_v0, %v8390_v0 }
0x1654   :  { %v5131_v34 = vsel %vm5054_vm2, %v5127_v1, 0.0  ;;  %v5129_v47 = vmul.f32 %v8395_v10, %v8395_v10 }
0x1655   :  { %v4683_v29 = vadd.f32 %v5750_v25, %v4674_v14  ;;  %5073 = vadd.xlane.f32.xlu1 %v5072_v60  ;;  %v5132_v14 = vsel %vm5054_vm2, %v5128_v30, 0.0 }
0x1656   :  { %v5133_v7 = vadd.f32 %v5132_v14, %v5131_v34 }
0x1657   :  { %v4685_v3 = vpack.c.bf16 %v4683_v29, %v4682_v39 }
0x1659   :  { %4837 = vmatmul.mubr.bf16.gmra.mrb[88].mxu1 %v4685_v3 }
0x1718   :  { %v4828_v46 = vpop.f32.mrb[84].mxu1 }
0x1719   :  { %v4829_v11 = vadd.f32 %v4828_v46, %v4707_v38  ;;  %v4830_v13 = vpop.f32.mrb[85].mxu1 }
0x171a   :  { %v4831_v48 = vadd.f32 %v4830_v13, %v8388_v12  ;;  %v4832_v16 = vpop.f32.mrb[86].mxu1 }
0x171b   :  { %4847 = vst [vmem:[#allocation23] sm:$0xff] %v4829_v11  ;;  %v4833_v59 = vadd.f32 %v4832_v16, %v4707_v38  ;;  %v4834_v19 = vpop.f32.mrb[87].mxu1  ;;  %v5050_v26 = vmul.f32 %v4829_v11, %v4829_v11  ;;  %v5216_v15 = vmul.f32 %v5111_v52, %v4829_v11  ;;  %v5173_v55 = vmul.f32 %v8363_v41, %v4829_v11 }
0x171c   :  { %4848 = vst [vmem:[#allocation23 + $0x8] sm:$0xff] %v4831_v48  ;;  %v4835_v61 = vadd.f32 %v4834_v19, %v8388_v12  ;;  %v5051_v63 = vmul.f32 %v4831_v48, %v4831_v48  ;;  %v5217_v35 = vmul.f32 %v8390_v0, %v4831_v48  ;;  %v5174_v25 = vmul.f32 %v8369_v56, %v4831_v48 }
0x171d   :  { %4849 = vst [vmem:[#allocation23 + $0x10] sm:$0xff] %v4833_v59  ;;  %v5055_v17 = vsel %vm5054_vm2, %v5050_v26, 0.0  ;;  %v4856_v31 = vpack.c.bf16 %v4833_v59, %v4829_v11  ;;  %v5052_v22 = vmul.f32 %v4833_v59, %v4833_v59  ;;  %v5220_v28 = vsel %vm5054_vm2, %v5216_v15, 0.0 }
0x171e   :  { %4850 = vst [vmem:[#allocation23 + $0x18] sm:$0xff] %v4835_v61  ;;  %v4857_v57 = vpack.c.bf16 %v4835_v61, %v4831_v48  ;;  %v5056_v6 = vsel %vm5054_vm2, %v5051_v63, 0.0  ;;  %v5053_v4 = vmul.f32 %v4835_v61, %v4835_v61  ;;  %v5221_v62 = vsel %vm5054_vm2, %v5217_v35, 0.0 }
0x171f   :  { %v5057_v49 = vadd.f32 %v5056_v6, %v5055_v17  ;;  %v8405_v51 = vadd.f32 %v5221_v62, %v5220_v28  ;;  %v5218_v23 = vmul.f32 %v8395_v10, %v4833_v59  ;;  %v5219_v54 = vmul.f32 %v8397_v36, %v4835_v61 }
0x1720   :  { %5027 = vmatprep.mubr.bf16.mxu0 %v4857_v57  ;;  %v5060_v5 = vadd.f32 %v5053_v4, %v5052_v22  ;;  %v5177_v42 = vsel %vm5054_vm2, %v5173_v55, 0.0  ;;  %v5178_v32 = vsel %vm5054_vm2, %v5174_v25, 0.0  ;;  %v5175_v37 = vmul.f32 %v8359_v9, %v4833_v59 }
0x1721   :  { %5058 = vadd.xlane.f32.xlu1 %v5057_v49  ;;  %5028 = vmatmul.mubr.bf16.vlgmr.msra.gmra.mrb[80].mxu0 %v4856_v31  ;;  %v5225_v44 = vadd.f32 %v5219_v54, %v5218_v23  ;;  %v5179_v24 = vadd.f32 %v5178_v32, %v5177_v42  ;;  %v5176_v33 = vmul.f32 %v8361_v8, %v4835_v61 }
0x1722   :  { %5061 = vadd.xlane.f32.xlu0 %v5060_v5  ;;  %v5136_v17 = vadd.f32 %v5130_v43, %v5129_v47 }
0x1723   :  { %v5182_v2 = vadd.f32 %v5176_v33, %v5175_v37 }
0x172c   :  { %v4838_v39 = vpop.f32.mrb[88].mxu1 }
0x172d   :  { %v4839_v29 = vadd.f32 %v4838_v39, %v4707_v38  ;;  %v4840_v3 = vpop.f32.mrb[89].mxu1 }
0x172e   :  { %v4841_v50 = vadd.f32 %v4840_v3, %v8388_v12  ;;  %v4842_v53 = vpop.f32.mrb[90].mxu1 }
0x172f   :  { %4852 = vst [vmem:[#allocation23 + $0x20] sm:$0xff] %v4839_v29  ;;  %v4843_v18 = vadd.f32 %v4842_v53, %v4707_v38  ;;  %v4844_v58 = vpop.f32.mrb[91].mxu1  ;;  %v5115_v21 = vmul.f32 %v4839_v29, %v4839_v29  ;;  %v5257_v60 = vmul.f32 %v8363_v41, %v4839_v29  ;;  %v5298_v27 = vmul.f32 %v5111_v52, %v4839_v29 }
0x1730   :  { %4853 = vst [vmem:[#allocation23 + $0x28] sm:$0xff] %v4841_v50  ;;  %v4845_v20 = vadd.f32 %v4844_v58, %v8388_v12  ;;  %v5116_v45 = vmul.f32 %v4841_v50, %v4841_v50  ;;  %v5258_v40 = vmul.f32 %v8369_v56, %v4841_v50  ;;  %v5299_v46 = vmul.f32 %v8390_v0, %v4841_v50 }
0x1731   :  { %4854 = vst [vmem:[#allocation23 + $0x30] sm:$0xff] %v4843_v18  ;;  %v5119_v11 = vsel %vm5054_vm2, %v5115_v21, 0.0  ;;  %v4858_v13 = vpack.c.bf16 %v4843_v18, %v4839_v29  ;;  %v5117_v48 = vmul.f32 %v4843_v18, %v4843_v18  ;;  %v5261_v38 = vsel %vm5054_vm2, %v5257_v60, 0.0 }
0x1732   :  { %4855 = vst [vmem:[#allocation23 + $0x38] sm:$0xff] %v4845_v20  ;;  %v4859_v16 = vpack.c.bf16 %v4845_v20, %v4841_v50  ;;  %v5120_v41 = vsel %vm5054_vm2, %v5116_v45, 0.0  ;;  %v5118_v52 = vmul.f32 %v4845_v20, %v4845_v20  ;;  %v5262_v59 = vsel %vm5054_vm2, %v5258_v40, 0.0 }
0x1733   :  { %v5121_v12 = vadd.f32 %v5120_v41, %v5119_v11  ;;  %v5263_v19 = vadd.f32 %v5262_v59, %v5261_v38  ;;  %v5259_v56 = vmul.f32 %v8359_v9, %v4843_v18  ;;  %v5260_v0 = vmul.f32 %v8361_v8, %v4845_v20  ;;  %v5074_v9 = vpop.xlane.xlu1 %5073  ;;  %v5071_v8 = vpop.xlane.xlu0 %5070 }
0x1734   :  { %5034 = vmatprep.mubr.bf16.mxu0 %v4859_v16  ;;  %v5124_v26 = vadd.f32 %v5118_v52, %v5117_v48  ;;  %v5302_v15 = vsel %vm5054_vm2, %v5298_v27, 0.0  ;;  %v5303_v55 = vsel %vm5054_vm2, %v5299_v46, 0.0  ;;  %v5300_v61 = vmul.f32 %v8395_v10, %v4843_v18 }
0x1735   :  { %5122 = vadd.xlane.f32.xlu0 %v5121_v12  ;;  %5035 = vmatmul.mubr.bf16.gmra.mrb[84].mxu0 %v4858_v13  ;;  %v5266_v63 = vadd.f32 %v5260_v0, %v5259_v56  ;;  %v5304_v35 = vadd.f32 %v5303_v55, %v5302_v15  ;;  %v5301_v25 = vmul.f32 %v8397_v36, %v4845_v20  ;;  %v5098_v57 = vrot.slane %v5074_v9, 1 }
0x1736   :  { %5125 = vadd.xlane.f32.xlu1 %v5124_v26  ;;  %v5097_v6 = vrot.slane %v5071_v8, 1  ;;  %6899 = vrsqrt.f32 %v5074_v9 }
0x1737   :  { %v5307_v31 = vadd.f32 %v5301_v25, %v5300_v61  ;;  %v5102_v49 = vsel %vm5081_vm3, %v5098_v57, 0.0  ;;  %6901 = vrsqrt.f32 %v5071_v8 }
0x1739   :  { %5134 = vadd.xlane.f32.xlu0 %v5133_v7 }
0x173a   :  { %5137 = vadd.xlane.f32.xlu1 %v5136_v17 }
0x173d   :  { %5223 = vadd.xlane.f32.xlu0 %v8405_v51  ;;  %v5099_v51 = vsel %vm5081_vm3, %v5097_v6, %v5098_v57 }
0x173e   :  { %5226 = vadd.xlane.f32.xlu1 %v5225_v44  ;;  %v5103_v54 = vadd.f32 %v5102_v49, %v5099_v51 }
0x1740   :  { %v5104_v42 = vrot.slane %v5103_v54, 4  ;;  %v8445_v27 = vpop.eup %6899 }
0x1741   :  { %5264 = vadd.xlane.f32.xlu0 %v5263_v19  ;;  %v8447_v11 = vpop.eup %6901 }
0x1742   :  { %5267 = vadd.xlane.f32.xlu1 %v5266_v63  ;;  %v5105_v37 = vadd.f32 %v5104_v42, %v5103_v54 }
0x1744   :  { %v5106_v30 = vrot.slane %v5105_v37, 2 }
0x1745   :  { %5305 = vadd.xlane.f32.xlu0 %v5304_v35 }
0x1746   :  { %5308 = vadd.xlane.f32.xlu1 %v5307_v31  ;;  %v5107_v43 = vadd.f32 %v5106_v30, %v5105_v37 }
0x1748   :  { %v5108_v52 = vrot.slane %v5107_v43, 1 }
0x1749   :  { %5180 = vadd.xlane.f32.xlu0 %v5179_v24 }
0x174a   :  { %5183 = vadd.xlane.f32.xlu1 %v5182_v2 }
0x17ae   :  { %v5059_v10 = vpop.xlane.xlu1 %5058 }
0x17af   :  { %v5062_v22 = vpop.xlane.xlu0 %5061  ;;  %v5082_v28 = vrot.slane %v5059_v10, 1 }
0x17b0   :  { %v5083_v36 = vrot.slane %v5062_v22, 1 }
0x17b2   :  { %v5084_v4 = vsel %vm5081_vm3, %v5082_v28, %v5083_v36  ;;  %v5087_v62 = vsel %vm5081_vm3, %v5083_v36, 0.0 }
0x17b3   :  { %v5088_v23 = vadd.f32 %v5087_v62, %v5084_v4 }
0x17b5   :  { %v5089_v5 = vrot.slane %v5088_v23, 4 }
0x17b7   :  { %v5090_v32 = vadd.f32 %v5089_v5, %v5088_v23 }
0x17b9   :  { %v5091_v44 = vrot.slane %v5090_v32, 2 }
0x17bb   :  { %v5092_v34 = vadd.f32 %v5091_v44, %v5090_v32 }
0x17bd   :  { %v5093_v18 = vrot.slane %v5092_v34, 1 }
0x17bf   :  { %v5094_v59 = vadd.f32 %v5093_v18, %v5092_v34 }
0x17c2   :  { %v5123_v24 = vpop.xlane.xlu0 %5122 }
0x17c3   :  { %6903 = vrsqrt.f32 %v5123_v24  ;;  %v5145_v33 = vrot.slane %v5123_v24, 1  ;;  %v5126_v2 = vpop.xlane.xlu1 %5125  ;;  %v5109_v24 = vadd.f32 %v5108_v52, %v5107_v43 }
0x17c4   :  { %6905 = vrsqrt.f32 %v5126_v2  ;;  %v5146_v1 = vrot.slane %v5126_v2, 1 }
0x17c5   :  { %6907 = vrsqrt.f32 %v5059_v10 }
0x17c6   :  { %6909 = vrsqrt.f32 %v5062_v22  ;;  %v5147_v14 = vsel %vm5081_vm3, %v5145_v33, %v5146_v1  ;;  %v5150_v39 = vsel %vm5081_vm3, %v5146_v1, 0.0  ;;  %v5135_v29 = vpop.xlane.xlu0 %5134 }
0x17c7   :  { %v5151_v3 = vadd.f32 %v5150_v39, %v5147_v14  ;;  %6911 = vrsqrt.f32 %v5135_v29  ;;  %v5160_v50 = vrot.slane %v5135_v29, 1  ;;  %v5138_v53 = vpop.xlane.xlu1 %5137 }
0x17c8   :  { %6913 = vrsqrt.f32 %v5138_v53  ;;  %v5161_v7 = vrot.slane %v5138_v53, 1 }
0x17c9   :  { %v5152_v47 = vrot.slane %v5151_v3, 4  ;;  %6915 = vrsqrt.f32 %v5094_v59 }
0x17ca   :  { %v5162_v58 = vsel %vm5081_vm3, %v5160_v50, %v5161_v7  ;;  %v5165_v21 = vsel %vm5081_vm3, %v5161_v7, 0.0  ;;  %v5224_v60 = vpop.xlane.xlu0 %5223 }
0x17cb   :  { %v5153_v20 = vadd.f32 %v5152_v47, %v5151_v3  ;;  %v5166_v45 = vadd.f32 %v5165_v21, %v5162_v58  ;;  %v5234_v40 = vrot.slane %v5224_v60, 1  ;;  %v5227_v46 = vpop.xlane.xlu1 %5226 }
0x17cc   :  { %v5235_v13 = vrot.slane %v5227_v46, 1 }
0x17cd   :  { %v6904_v48 = vpop.eup %6903  ;;  %v5154_v38 = vrot.slane %v5153_v20, 2  ;;  %v5167_v16 = vrot.slane %v5166_v45, 4 }
0x17ce   :  { %v8449_v41 = vpop.eup %6905  ;;  %v5236_v12 = vsel %vm5081_vm3, %v5234_v40, %v5235_v13  ;;  %v5239_v19 = vsel %vm5081_vm3, %v5235_v13, 0.0  ;;  %v5265_v56 = vpop.xlane.xlu0 %5264 }
0x17cf   :  { %v6908_v0 = vpop.eup %6907  ;;  %v5155_v26 = vadd.f32 %v5154_v38, %v5153_v20  ;;  %v5168_v15 = vadd.f32 %v5167_v16, %v5166_v45  ;;  %v5240_v55 = vadd.f32 %v5239_v19, %v5236_v12  ;;  %v5269_v61 = vmul.f32 %v6904_v48, %v5265_v56  ;;  %v5268_v63 = vpop.xlane.xlu1 %5267 }
0x17d0   :  { %v6910_v35 = vpop.eup %6909  ;;  %v5228_v25 = vmul.f32 %v6908_v0, %v5224_v60  ;;  %v5275_v17 = vrot.slane %v5265_v56, 1  ;;  %v5270_v31 = vmul.f32 %v8449_v41, %v5268_v63  ;;  %v5276_v9 = vrot.slane %v5268_v63, 1 }
0x17d1   :  { %v8454_v8 = vpop.eup %6911  ;;  %v5156_v10 = vrot.slane %v5155_v26, 1  ;;  %v5169_v22 = vrot.slane %v5168_v15, 2  ;;  %v5229_v28 = vmul.f32 %v6910_v35, %v5227_v46  ;;  %v5241_v36 = vrot.slane %v5240_v55, 4 }
0x17d2   :  { %v6914_v57 = vpop.eup %6913  ;;  %v5271_v6 = vmul.f32 %v8447_v11, %v5269_v61  ;;  %v8458_v4 = vmul.f32 %v8445_v27, %v5270_v31  ;;  %v5277_v62 = vsel %vm5081_vm3, %v5275_v17, %v5276_v9  ;;  %v5280_v49 = vsel %vm5081_vm3, %v5276_v9, 0.0  ;;  %v5306_v51 = vpop.xlane.xlu0 %5305 }
0x17d3   :  { %v5170_v23 = vadd.f32 %v5169_v22, %v5168_v15  ;;  %v5242_v54 = vadd.f32 %v5241_v36, %v5240_v55  ;;  %v5309_v5 = vpop.xlane.xlu1 %5308  ;;  %v5157_v42 = vadd.f32 %v5156_v10, %v5155_v26  ;;  %v5230_v32 = vmul.f32 %v8454_v8, %v5228_v25 }
0x17d4   :  { %v8463_v37 = vmul.f32 %v6914_v57, %v5229_v28  ;;  %v5281_v44 = vadd.f32 %v5280_v49, %v5277_v62  ;;  %v5293_v1 = vrot.slane %v5271_v6, 1  ;;  %v5294_v34 = vrot.slane %v8458_v4, 1 }
0x17d5   :  { %v5171_v33 = vrot.slane %v5170_v23, 1  ;;  %v5243_v2 = vrot.slane %v5242_v54, 2  ;;  %v5316_v14 = vrot.slane %v5306_v51, 1  ;;  %v5317_v50 = vrot.slane %v5309_v5, 1 }
0x17d6   :  { %v5282_v30 = vrot.slane %v5281_v44, 4  ;;  %v5181_v39 = vpop.xlane.xlu0 %5180  ;;  %6917 = vrsqrt.f32 %v5157_v42  ;;  %v5252_v7 = vrot.slane %v5230_v32, 1  ;;  %v5253_v47 = vrot.slane %v8463_v37, 1 }
0x17d7   :  { %v5172_v29 = vadd.f32 %v5171_v33, %v5170_v23  ;;  %v5244_v3 = vadd.f32 %v5243_v2, %v5242_v54  ;;  %v5185_v53 = vmul.f32 %v6908_v0, %v5181_v39  ;;  %v5184_v58 = vpop.xlane.xlu1 %5183  ;;  %v5318_v43 = vsel %vm5081_vm3, %v5316_v14, %v5317_v50 }
0x17d8   :  { %v5283_v18 = vadd.f32 %v5282_v30, %v5281_v44  ;;  %v5321_v21 = vsel %vm5081_vm3, %v5317_v50, 0.0  ;;  %v5191_v60 = vrot.slane %v5181_v39, 1  ;;  %v5310_v40 = vmul.f32 %v6904_v48, %v5306_v51 }
0x17d9   :  { %6919 = vrsqrt.f32 %v5172_v29  ;;  %v5245_v20 = vrot.slane %v5244_v3, 1  ;;  %v5322_v46 = vadd.f32 %v5321_v21, %v5318_v43  ;;  %v5187_v13 = vmul.f32 %v8447_v11, %v5185_v53 }
0x17da   :  { %v5284_v45 = vrot.slane %v5283_v18, 2  ;;  %v5186_v38 = vmul.f32 %v6910_v35, %v5184_v58  ;;  %v5192_v16 = vrot.slane %v5184_v58, 1  ;;  %v5295_v52 = vsel %vm5081_vm3, %v5293_v1, %v5294_v34  ;;  %v6916_v35 = vpop.eup %6915 }
0x17db   :  { %v5311_v12 = vmul.f32 %v8449_v41, %v5309_v5  ;;  %v5323_v19 = vrot.slane %v5322_v46, 4  ;;  %5368 = vrot.lane.b32.xlu1 %v5295_v52, %s8633_s18  ;;  %v5254_v56 = vsel %vm5081_vm3, %v5252_v7, %v5253_v47  ;;  %v5210_v0 = vrot.slane %v5187_v13, 1 }
0x17dc   :  { %v5285_v59 = vadd.f32 %v5284_v45, %v5283_v18  ;;  %v5188_v48 = vmul.f32 %v8445_v27, %v5186_v38  ;;  %v5193_v26 = vsel %vm5081_vm3, %v5191_v60, %v5192_v16  ;;  %v5196_v11 = vsel %vm5081_vm3, %v5192_v16, 0.0  ;;  %5339 = vrot.lane.b32.xlu0 %v5254_v56, %s8633_s18 }
0x17dd   :  { %v5324_v55 = vadd.f32 %v5323_v19, %v5322_v46  ;;  %v5197_v61 = vadd.f32 %v5196_v11, %v5193_v26  ;;  %v5246_v63 = vadd.f32 %v5245_v20, %v5244_v3  ;;  %6921 = vrsqrt.f32 %v5109_v24 }
0x17de   :  { %v5286_v15 = vrot.slane %v5285_v59, 1  ;;  %v5211_v41 = vrot.slane %v5188_v48, 1  ;;  %v5312_v25 = vmul.f32 %v8454_v8, %v5310_v40  ;;  %v5313_v17 = vmul.f32 %v6914_v57, %v5311_v12 }
0x17df   :  { %v5325_v31 = vrot.slane %v5324_v55, 2  ;;  %v5198_v9 = vrot.slane %v5197_v61, 4  ;;  %v5247_v36 = vmul.f32 %v6916_v35, %v5246_v63 }
0x17e0   :  { %5374 = vrot.lane.b32.xlu0 %v5254_v56, %s7271_s8  ;;  %v8483_v27 = vsel %vm5081_vm3, %v5210_v0, %v5211_v41  ;;  %v6918_v10 = vpop.eup %6917  ;;  %v5287_v6 = vadd.f32 %v5286_v15, %v5285_v59  ;;  %v5333_v49 = vrot.slane %v5312_v25, 1  ;;  %v5334_v51 = vrot.slane %v5313_v17, 1 }
0x17e1   :  { %v5326_v22 = vadd.f32 %v5325_v31, %v5324_v55  ;;  %v5199_v28 = vadd.f32 %v5198_v9, %v5197_v61 }
0x17e2   :  { %v5289_v42 = vmul.f32 %v6918_v10, %v5287_v6  ;;  %v5335_v37 = vsel %vm5081_vm3, %v5333_v49, %v5334_v51 }
0x17e3   :  { %v6920_v62 = vpop.eup %6919  ;;  %v5200_v23 = vrot.slane %v5199_v28, 2  ;;  %v5327_v8 = vrot.slane %v5326_v22, 1 }
0x17e4   :  { %v5249_v54 = vmul.f32 %v6920_v62, %v5247_v36  ;;  %5346 = vrot.lane.b32.xlu0 %v5295_v52, %s7271_s8 }
0x17e5   :  { %v5201_v57 = vadd.f32 %v5200_v23, %v5199_v28  ;;  %v5328_v2 = vadd.f32 %v5327_v8, %v5326_v22 }
0x17e6   :  { %v5256_v5 = vsel %vm5081_vm3, %v5253_v47, %v5249_v54 }
0x17e7   :  { %5341 = vrot.lane.b32.xlu1 %v5256_v5, %s8633_s18  ;;  %v5202_v32 = vrot.slane %v5201_v57, 1  ;;  %v6922_v44 = vpop.eup %6921  ;;  %v5329_v14 = vmul.f32 %v6918_v10, %v5328_v2 }
0x17e8   :  { %5353 = vrot.lane.b32.xlu0 %v5335_v37, %s7274_s10  ;;  %v5290_v33 = vmul.f32 %v6922_v44, %v5289_v42 }
0x17e9   :  { %v5203_v24 = vadd.f32 %v5202_v32, %v5201_v57 }
0x17ea   :  { %v5297_v30 = vsel %vm5081_vm3, %v5294_v34, %v5290_v33 }
0x17eb   :  { %5376 = vrot.lane.b32.xlu1 %v5256_v5, %s7271_s8  ;;  %v5205_v1 = vmul.f32 %v6916_v35, %v5203_v24 }
0x17ed   :  { %v5207_v39 = vmul.f32 %v6922_v44, %v5205_v1 }
0x17ef   :  { %5370 = vrot.lane.b32.xlu1 %v5297_v30, %s8633_s18  ;;  %v8496_v29 = vsel %vm5081_vm3, %v5211_v41, %v5207_v39 }
0x17f0   :  { %7202 = shalt.err (!%p7199_p2)
}
0x17f1   :  { %s7203_s23 = scalar_lea.hbm %s8587_s21, 1024 }
0x17f2   :  { %p7204_p3 = scmp.ne.s32.totalorder %s8587_s21, %s7203_s23  ;;  %p7207_p4 = scmp.lt.u32.totalorder %s7203_s23, %s8587_s21 }
0x17f4   :  { %p7209_p5 = pnand %p7207_p4, %p7204_p3 }
0x17f6   :  { %7212 = shalt.err (!%p7209_p5)
}
0x17f7   :  { %s8634_s12 = smov 16   ;;  %s8635_s7 = smov 256   ;;  %v5330_v4 = vmul.f32 %v6920_v62, %v5329_v14  ;;  %5348 = vrot.lane.b32.xlu1 %v5297_v30, %s7271_s8  ;;  %v6034_v34 = vpop.f32.mrb[80].mxu0  ;;  %v5767_v3 = vld [vmem:[%s8586_s20] ss:$0 sm:$0xff]  ;;  %vm5042_vm4 = vcmask 122880  }
0x17f8   :  { %5407 = dma.vmem_to_hbm [thread:$0]  %s5402_s4, 1024, %s8587_s21, [#allocation5], %s8635_s7, %s8635_s7, %s8634_s12   ;;  %v6035_v50 = vpop.f32.mrb[81].mxu0 }
0x17f9   :  { %v6036_v53 = vadd.f32 %v6035_v50, %v6034_v34  ;;  %v6037_v7 = vpop.f32.mrb[82].mxu0  ;;  %v5337_v47 = vsel %vm5081_vm3, %v5334_v51, %v5330_v4  ;;  %s7281_s21 = smov [#allocation24]  }
0x17fa   :  { %v6038_v18 = vpop.f32.mrb[83].mxu0  ;;  %s5414_s8 = sshll.u32 %s7281_s21, 4  ;;  %s5415_s8 = int_to_ptr.vmem [resolvable:$true] %s5414_s8 }
0x17fb   :  { %5355 = vrot.lane.b32.xlu1 %v5337_v47, %s7274_s10  ;;  %v5030_v58 = vadd.f32 %v6036_v53, %v5767_v3  ;;  %s7213_s20 = scalar_lea.vmem %s5415_s8, 32  ;;  %p7218_p7 = scmp.lt.s32.totalorder %s5415_s8, %s5415_s8 }
0x17fc   :  { %p7214_p6 = scmp.ne.s32.totalorder %s5415_s8, %s7213_s20  ;;  %p7219_p8 = scmp.lt.s32.totalorder %s7213_s20, %s7213_s20 }
0x17fd   :  { %5043 = vst.msk [vmem:[#allocation24] sm:$0x1] %vm5042_vm4, %v5030_v58 }
0x17fe   :  { %p7220_p9 = por %p7219_p8, %p7218_p7 }
0x1800   :  { %p7221_p10 = pnand %p7220_p9, %p7214_p6 }
0x1808   :  { %v6040_v43 = vpop.f32.mrb[84].mxu0 }
0x1809   :  { %v6041_v21 = vpop.f32.mrb[85].mxu0 }
0x180a   :  { %v6042_v60 = vadd.f32 %v6041_v21, %v6040_v43  ;;  %v6043_v20 = vpop.f32.mrb[86].mxu0 }
0x180b   :  { %v6044_v45 = vpop.f32.mrb[87].mxu0 }
0x180c   :  { %v5037_v40 = vadd.f32 %v6042_v60, %v5767_v3 }
0x180e   :  { %5044 = vst.msk [vmem:[#allocation24 + $0x1] sm:$0x1] %vm5042_vm4, %v5037_v40 }
0x180f   :  { %7224 = shalt.err (!%p7221_p10)
}
0x1810   :  { %s8636_s6 = sld [smem:[#allocation44_spill]] }
0x1816   :  { %s7225_s2 = scalar_lea.hbm %s8636_s6, 32 }
0x1817   :  { %p7226_p11 = scmp.ne.s32.totalorder %s8636_s6, %s7225_s2  ;;  %p7229_p12 = scmp.lt.u32.totalorder %s7225_s2, %s8636_s6 }
0x1819   :  { %p7231_p13 = pnand %p7229_p12, %p7226_p11 }
0x181b   :  { %7234 = shalt.err (!%p7231_p13)
}
0x181c   :  { %5417 = dma.vmem_to_hbm [thread:$0]  %s5415_s8, 32, %s8636_s6, [#allocation25]   ;;  %vm5359_vm5 = vcmask 7168   ;;  %vm5362_vm6 = vcmask 15360   ;;  %vm5365_vm7 = vcmask 23552   ;;  %vm5389_vm8 = vcmask 31744  }
0x181d   :  { %s8637_s19 = sld [smem:[#allocation37_spill]]  ;;  %s8639_s30 = sld [smem:[#allocation46_spill]] }
0x181e   :  { %s8638_s27 = sld [smem:[#allocation45_spill]] }
0x1823   :  { %v5386_v19 = vstv %s8637_s19 }
0x184d   :  { %v5369_v38 = vpop.permute.xlu1 %5368 }
0x184e   :  { %v5340_v46 = vpop.permute.xlu0 %5339  ;;  %v5380_v59 = vsel %vm5359_vm5, %v8483_v27, %v5369_v38 }
0x184f   :  { %v5360_v12 = vsel %vm5359_vm5, %v8483_v27, %v5340_v46 }
0x1852   :  { %v5375_v13 = vpop.permute.xlu0 %5374 }
0x1853   :  { %v5382_v56 = vsel %vm5362_vm6, %v5380_v59, %v5375_v13 }
0x1856   :  { %v5347_v16 = vpop.permute.xlu0 %5346 }
0x1857   :  { %v5363_v0 = vsel %vm5362_vm6, %v5360_v12, %v5347_v16 }
0x1859   :  { %v5342_v52 = vpop.permute.xlu1 %5341 }
0x185a   :  { %v5354_v48 = vpop.permute.xlu0 %5353  ;;  %v5361_v25 = vsel %vm5359_vm5, %v8496_v29, %v5342_v52 }
0x185b   :  { %v5366_v26 = vsel %vm5365_vm7, %v5363_v0, %v5354_v48  ;;  %v5384_v11 = vsel %vm5365_vm7, %v5382_v56, %v5354_v48 }
0x185c   :  { %v5387_v15 = vmul.f32 %v5386_v19, %v5366_v26  ;;  %v5392_v55 = vmul.f32 %v5386_v19, %v5384_v11 }
0x185d   :  { %v5377_v61 = vpop.permute.xlu1 %5376 }
0x185e   :  { %5390 = vst.msk [vmem:[%s8638_s27] sm:$0xff] %vm5389_vm8, %v5387_v15  ;;  %5394 = vst.msk [vmem:[%s8639_s30] sm:$0xff] %vm5389_vm8, %v5392_v55 }
0x1861   :  { %v5371_v63 = vpop.permute.xlu1 %5370 }
0x1862   :  { %v5381_v41 = vsel %vm5359_vm5, %v8496_v29, %v5371_v63 }
0x1863   :  { %v5383_v9 = vsel %vm5362_vm6, %v5381_v41, %v5377_v61 }
0x1869   :  { %v5349_v35 = vpop.permute.xlu1 %5348 }
0x186a   :  { %v5364_v17 = vsel %vm5362_vm6, %v5361_v25, %v5349_v35 }
0x186d   :  { %v5356_v31 = vpop.permute.xlu1 %5355 }
0x186e   :  { %v5367_v27 = vsel %vm5365_vm7, %v5364_v17, %v5356_v31  ;;  %v5385_v10 = vsel %vm5365_vm7, %v5383_v9, %v5356_v31 }
0x186f   :  { %v5388_v22 = vmul.f32 %v5386_v19, %v5367_v27  ;;  %v5393_v28 = vmul.f32 %v5386_v19, %v5385_v10 }
0x1871   :  { %5391 = vst.msk [vmem:[%s8638_s27 + $0x8] sm:$0xff] %vm5389_vm8, %v5388_v22  ;;  %5395 = vst.msk [vmem:[%s8639_s30 + $0x8] sm:$0xff] %vm5389_vm8, %v5393_v28 }
0x1872   :  { %7249 = dma.done.wait [#allocation5], 1024  }
0x1873   :  { %7250 = vsyncadd [#allocation5], 4294966272 }
0x1874   :  { %7251 = dma.done.wait [#allocation25], 32  }
0x1875   :  { %7252 = vsyncadd [#allocation25], 4294967264 }
0x1876   :  { %5432 = vsyncpa [#allocation4], 1 }
0x1877   :  { %5433 = vsyncpa [#allocation7], 1 }
0x1878   :  { %5434 = vsyncpa [#allocation10], 1 }
0x1879   :  { %5435 = vsyncpa [#allocation13], 1 }
0x187a   :  { %5436 = vsyncpa [#allocation16], 1 }
0x187b   :  { %5437 = vsyncpa [#allocation19], 1 }
0x187c   :  { %5438 = vsyncpa [#allocation22], 1 }
0x187d   :  { %5439 = vsyncpa [#allocation5], 1 }
0x187e   :  { %5440 = vsyncpa [#allocation25], 1 }

</bundles_post_ra>
